<compile_context>
chip_gen: v6e
topology: v6e:2x2x1
jax: 0.10.0
libtpu: 0.0.40
codegen_flags: <defaults>
</compile_context>

<pallas_src>
import functools

import jax
import jax.numpy as jnp
from jax import lax
from jax.experimental import pallas as pl
from jax.experimental.pallas import tpu as pltpu

# Module sizes from the PyTorch spec
IMG_SIZE = 28
N_IN = IMG_SIZE      # GRU input size
N_MID = 256          # GRU hidden size
N_OUT = IMG_SIZE     # Linear output size

_SUBLANE = 8         # f32 sublane tile
_LANE = 128          # lane tile
_VMEM_LIMIT = 32 * 1024 * 1024


def _gru_fc_kernel(Bp, T, x_ref, wih_t_ref, whh_t_ref, b_gi_ref, b_hn_ref,
                   fcw_t_ref, fcb_ref, y_ref):
    """Single-invocation GRU + FC.

    x_ref     : (T*Bp, n_in)  time-major, batch padded to Bp (= 8k rows)
    wih_t_ref : (n_in, 3H)
    whh_t_ref : (H, 3H)
    b_gi_ref  : (1, 3H)   = b_ih with b_hr/b_hz folded in
    b_hn_ref  : (1, H)    = b_hn (must stay inside the r*(...) term)
    fcw_t_ref : (H, n_out_pad)   zero-padded to a lane multiple
    fcb_ref   : (1, n_out_pad)
    y_ref     : (Bp, n_out_pad)
    """
    H = whh_t_ref.shape[0]

    # Hoisted input projection for every timestep: one MXU call, (T*Bp, 3H).
    gi_all = (jnp.dot(x_ref[...], wih_t_ref[...],
                      preferred_element_type=jnp.float32)
              + b_gi_ref[...])

    whh_t = whh_t_ref[...]                                   # (H, 3H) once
    b_hn_b = jnp.broadcast_to(b_hn_ref[...], (Bp, H))        # hoisted broadcast

    # ---- t = 0 peeled: h0 == 0 so the recurrent matmul is exactly zero. ----
    gi0 = gi_all[:Bp, :]                                     # (Bp, 3H) aligned
    r = jax.nn.sigmoid(gi0[:, :H])
    z = jax.nn.sigmoid(gi0[:, H:2 * H])
    n = jnp.tanh(gi0[:, 2 * H:] + r * b_hn_b)
    h = n - z * n                                            # h = n + z*(0 - n)

    # ---- t = 1 .. T-1: fully unrolled, all slice indices static, h in vregs.
    for t in range(1, T):
        gi = gi_all[t * Bp:(t + 1) * Bp, :]                  # (Bp, 3H) aligned
        gh = jnp.dot(h, whh_t, preferred_element_type=jnp.float32)

        # PyTorch gate order: r, z, n
        r = jax.nn.sigmoid(gi[:, :H] + gh[:, :H])
        z = jax.nn.sigmoid(gi[:, H:2 * H] + gh[:, H:2 * H])
        n = jnp.tanh(gi[:, 2 * H:] + r * (gh[:, 2 * H:] + b_hn_b))
        h = n + z * (h - n)                                  # (1-z)*n + z*h

    # FC head on the last hidden state: one unmasked lane-dense store.
    y_ref[...] = (jnp.dot(h, fcw_t_ref[...],
                          preferred_element_type=jnp.float32)
                  + fcb_ref[...])


def prepare_params(w_ih, w_hh, b_ih, b_hh, fc_w, fc_b):
    """One-time parameter prep (transposes, bias folding, lane padding).

    Call once at init and reuse; keeps per-call XLA glue out of the forward.
    """
    three_h = w_ih.shape[0]
    H = three_h // 3
    n_out = fc_w.shape[0]
    n_out_pad = max(_LANE, ((n_out + _LANE - 1) // _LANE) * _LANE)

    w_ih_t = jnp.asarray(w_ih, jnp.float32).T                      # (n_in, 3H)
    w_hh_t = jnp.asarray(w_hh, jnp.float32).T                      # (H, 3H)

    b_ih = jnp.asarray(b_ih, jnp.float32)
    b_hh = jnp.asarray(b_hh, jnp.float32)
    # Fold b_hr / b_hz into the hoisted input-projection bias; b_hn must stay
    # inside the r * (W_hn h + b_hn) term, so keep it separate.
    b_gi = (b_ih + jnp.concatenate([b_hh[:2 * H], jnp.zeros((H,), jnp.float32)])
            ).reshape(1, three_h)
    b_hn = b_hh[2 * H:].reshape(1, H)

    fc_w_tp = jnp.zeros((H, n_out_pad), jnp.float32).at[:, :n_out].set(
        jnp.asarray(fc_w, jnp.float32).T)
    fc_bp = jnp.zeros((1, n_out_pad), jnp.float32).at[0, :n_out].set(
        jnp.asarray(fc_b, jnp.float32))

    return (w_ih_t, w_hh_t, b_gi, b_hn, fc_w_tp, fc_bp)


@functools.partial(jax.jit, static_argnums=(2,))
def gru_fc_forward(x, params, n_out):
    """x: (B, T, n_in) float32. Returns (B, n_out) float32."""
    w_ih_t, w_hh_t, b_gi, b_hn, fc_w_tp, fc_bp = params
    B, T, n_in = x.shape
    n_out_pad = fc_w_tp.shape[1]

    # Pad batch to the f32 sublane tile so every per-step row block of the
    # hoisted projection is (8,128)-aligned; padded rows are discarded below.
    Bp = max(_SUBLANE, ((B + _SUBLANE - 1) // _SUBLANE) * _SUBLANE)
    x_p = jnp.pad(x.astype(jnp.float32), ((0, Bp - B), (0, 0), (0, 0)))
    x_flat = jnp.transpose(x_p, (1, 0, 2)).reshape(T * Bp, n_in)   # time-major

    kernel = functools.partial(_gru_fc_kernel, Bp, T)

    y_p = pl.pallas_call(
        kernel,
        out_shape=jax.ShapeDtypeStruct((Bp, n_out_pad), jnp.float32),
        in_specs=[pl.BlockSpec(memory_space=pltpu.MemorySpace.VMEM)
                  for _ in range(7)],
        out_specs=pl.BlockSpec(memory_space=pltpu.MemorySpace.VMEM),
        compiler_params=pltpu.CompilerParams(vmem_limit_bytes=_VMEM_LIMIT),
    )(x_flat, w_ih_t, w_hh_t, b_gi, b_hn, fc_w_tp, fc_bp)

    # Drop batch padding and the zero lane padding of the FC head.
    return y_p[:B, :n_out]


def _reference_forward(x, w_ih, w_hh, b_ih, b_hh, fc_w, fc_b):
    """Pure-JAX reference of PyTorch GRU(batch_first) + Linear on last step."""
    B = x.shape[0]
    H = w_hh.shape[1]

    def step(h, x_t):
        gi = x_t @ w_ih.T + b_ih
        gh = h @ w_hh.T + b_hh
        i_r, i_z, i_n = jnp.split(gi, 3, axis=-1)
        h_r, h_z, h_n = jnp.split(gh, 3, axis=-1)
        r = jax.nn.sigmoid(i_r + h_r)
        z = jax.nn.sigmoid(i_z + h_z)
        n = jnp.tanh(i_n + r * h_n)
        h_new = (1.0 - z) * n + z * h
        return h_new, None

    h0 = jnp.zeros((B, H), jnp.float32)
    h_last, _ = lax.scan(step, h0, jnp.transpose(x, (1, 0, 2)))
    return h_last @ fc_w.T + fc_b


if __name__ == "__main__":
    B, T = 2, 8                      # small batch, short sequence of image rows

    key = jax.random.PRNGKey(0)
    keys = jax.random.split(key, 8)

    # Deterministic parameter init (PyTorch-style uniform(-1/sqrt(H), 1/sqrt(H)))
    bound = 1.0 / jnp.sqrt(jnp.float32(N_MID))
    w_ih = jax.random.uniform(keys[0], (3 * N_MID, N_IN), jnp.float32, -bound, bound)
    w_hh = jax.random.uniform(keys[1], (3 * N_MID, N_MID), jnp.float32, -bound, bound)
    b_ih = jax.random.uniform(keys[2], (3 * N_MID,), jnp.float32, -bound, bound)
    b_hh = jax.random.uniform(keys[3], (3 * N_MID,), jnp.float32, -bound, bound)
    fc_w = jax.random.uniform(keys[4], (N_OUT, N_MID), jnp.float32, -bound, bound)
    fc_b = jax.random.uniform(keys[5], (N_OUT,), jnp.float32, -bound, bound)

    x = jax.random.normal(keys[6], (B, T, N_IN), jnp.float32)

    params = prepare_params(w_ih, w_hh, b_ih, b_hh, fc_w, fc_b)  # one-time prep
    params = jax.block_until_ready(params)

    y = gru_fc_forward(x, params, N_OUT)
    y = jax.block_until_ready(y)

    y_ref = _reference_forward(x, w_ih, w_hh, b_ih, b_hh, fc_w, fc_b)
    assert y.shape == (B, N_OUT)
    assert jnp.allclose(y, y_ref, rtol=1e-4, atol=1e-4), "mismatch vs reference"

    print("KERNEL_OK")
</pallas_src>

<mosaic_0001>
module attributes {stable_mosaic.version = 11 : i64} {
  func.func @_gru_fc_kernel(%arg0: memref<64x28xf32, #tpu.memory_space<vmem>>, %arg1: memref<28x768xf32, #tpu.memory_space<vmem>>, %arg2: memref<256x768xf32, #tpu.memory_space<vmem>>, %arg3: memref<1x768xf32, #tpu.memory_space<vmem>>, %arg4: memref<1x256xf32, #tpu.memory_space<vmem>>, %arg5: memref<256x128xf32, #tpu.memory_space<vmem>>, %arg6: memref<1x128xf32, #tpu.memory_space<vmem>>, %arg7: memref<8x128xf32, #tpu.memory_space<vmem>>) attributes {dimension_semantics = [], scalar_prefetch = 0 : i64, scratch_operands = 0 : i64, tpu.core_type = #tpu.core_type<tc>} {
    %c0 = arith.constant 0 : index
    %c0_0 = arith.constant 0 : index
    %0 = vector.load %arg0[%c0, %c0_0] : memref<64x28xf32, #tpu.memory_space<vmem>>, vector<64x28xf32>
    %c0_1 = arith.constant 0 : index
    %c0_2 = arith.constant 0 : index
    %1 = vector.load %arg1[%c0_1, %c0_2] : memref<28x768xf32, #tpu.memory_space<vmem>>, vector<28x768xf32>
    %cst = arith.constant dense<0.000000e+00> : vector<64x768xf32>
    %2 = tpu.matmul %0, %1, %cst {dimension_numbers = #tpu.dot_dimension_numbers<[1], [0], [0], [1], [0, 0, 1, 1], [], []>} : vector<64x28xf32>, vector<28x768xf32>, vector<64x768xf32> -> vector<64x768xf32>
    %c0_3 = arith.constant 0 : index
    %c0_4 = arith.constant 0 : index
    %3 = vector.load %arg3[%c0_3, %c0_4] : memref<1x768xf32, #tpu.memory_space<vmem>>, vector<1x768xf32>
    %4 = vector.broadcast %3 : vector<1x768xf32> to vector<64x768xf32>
    %5 = arith.addf %2, %4 : vector<64x768xf32>
    %c0_5 = arith.constant 0 : index
    %c0_6 = arith.constant 0 : index
    %6 = vector.load %arg2[%c0_5, %c0_6] : memref<256x768xf32, #tpu.memory_space<vmem>>, vector<256x768xf32>
    %c0_7 = arith.constant 0 : index
    %c0_8 = arith.constant 0 : index
    %7 = vector.load %arg4[%c0_7, %c0_8] : memref<1x256xf32, #tpu.memory_space<vmem>>, vector<1x256xf32>
    %8 = vector.shape_cast %7 : vector<1x256xf32> to vector<1x256xf32>
    %9 = vector.broadcast %8 : vector<1x256xf32> to vector<8x256xf32>
    %10 = vector.extract_strided_slice %5 {offsets = [0, 0], sizes = [8, 768], strides = [1, 1]} : vector<64x768xf32> to vector<8x768xf32>
    %11 = vector.extract_strided_slice %10 {offsets = [0, 0], sizes = [8, 256], strides = [1, 1]} : vector<8x768xf32> to vector<8x256xf32>
    %12 = arith.negf %11 : vector<8x256xf32>
    %13 = math.exp %12 : vector<8x256xf32>
    %cst_9 = arith.constant 1.000000e+00 : f32
    %14 = vector.broadcast %cst_9 : f32 to vector<8x256xf32>
    %15 = arith.addf %14, %13 : vector<8x256xf32>
    %16 = arith.divf %14, %15 : vector<8x256xf32>
    %17 = vector.extract_strided_slice %10 {offsets = [0, 256], sizes = [8, 256], strides = [1, 1]} : vector<8x768xf32> to vector<8x256xf32>
    %18 = arith.negf %17 : vector<8x256xf32>
    %19 = math.exp %18 : vector<8x256xf32>
    %cst_10 = arith.constant 1.000000e+00 : f32
    %20 = vector.broadcast %cst_10 : f32 to vector<8x256xf32>
    %21 = arith.addf %20, %19 : vector<8x256xf32>
    %22 = arith.divf %20, %21 : vector<8x256xf32>
    %23 = vector.extract_strided_slice %10 {offsets = [0, 512], sizes = [8, 256], strides = [1, 1]} : vector<8x768xf32> to vector<8x256xf32>
    %24 = arith.mulf %16, %9 : vector<8x256xf32>
    %25 = arith.addf %23, %24 : vector<8x256xf32>
    %26 = math.tanh %25 : vector<8x256xf32>
    %27 = arith.mulf %22, %26 : vector<8x256xf32>
    %28 = arith.subf %26, %27 : vector<8x256xf32>
    %29 = vector.extract_strided_slice %5 {offsets = [8, 0], sizes = [8, 768], strides = [1, 1]} : vector<64x768xf32> to vector<8x768xf32>
    %cst_11 = arith.constant dense<0.000000e+00> : vector<8x768xf32>
    %30 = tpu.matmul %28, %6, %cst_11 {dimension_numbers = #tpu.dot_dimension_numbers<[1], [0], [0], [1], [0, 0, 1, 1], [], []>} : vector<8x256xf32>, vector<256x768xf32>, vector<8x768xf32> -> vector<8x768xf32>
    %31 = vector.extract_strided_slice %29 {offsets = [0, 0], sizes = [8, 256], strides = [1, 1]} : vector<8x768xf32> to vector<8x256xf32>
    %32 = vector.extract_strided_slice %30 {offsets = [0, 0], sizes = [8, 256], strides = [1, 1]} : vector<8x768xf32> to vector<8x256xf32>
    %33 = arith.addf %31, %32 : vector<8x256xf32>
    %34 = arith.negf %33 : vector<8x256xf32>
    %35 = math.exp %34 : vector<8x256xf32>
    %cst_12 = arith.constant 1.000000e+00 : f32
    %36 = vector.broadcast %cst_12 : f32 to vector<8x256xf32>
    %37 = arith.addf %36, %35 : vector<8x256xf32>
    %38 = arith.divf %36, %37 : vector<8x256xf32>
    %39 = vector.extract_strided_slice %29 {offsets = [0, 256], sizes = [8, 256], strides = [1, 1]} : vector<8x768xf32> to vector<8x256xf32>
    %40 = vector.extract_strided_slice %30 {offsets = [0, 256], sizes = [8, 256], strides = [1, 1]} : vector<8x768xf32> to vector<8x256xf32>
    %41 = arith.addf %39, %40 : vector<8x256xf32>
    %42 = arith.negf %41 : vector<8x256xf32>
    %43 = math.exp %42 : vector<8x256xf32>
    %cst_13 = arith.constant 1.000000e+00 : f32
    %44 = vector.broadcast %cst_13 : f32 to vector<8x256xf32>
    %45 = arith.addf %44, %43 : vector<8x256xf32>
    %46 = arith.divf %44, %45 : vector<8x256xf32>
    %47 = vector.extract_strided_slice %29 {offsets = [0, 512], sizes = [8, 256], strides = [1, 1]} : vector<8x768xf32> to vector<8x256xf32>
    %48 = vector.extract_strided_slice %30 {offsets = [0, 512], sizes = [8, 256], strides = [1, 1]} : vector<8x768xf32> to vector<8x256xf32>
    %49 = arith.addf %48, %9 : vector<8x256xf32>
    %50 = arith.mulf %38, %49 : vector<8x256xf32>
    %51 = arith.addf %47, %50 : vector<8x256xf32>
    %52 = math.tanh %51 : vector<8x256xf32>
    %53 = arith.subf %28, %52 : vector<8x256xf32>
    %54 = arith.mulf %46, %53 : vector<8x256xf32>
    %55 = arith.addf %52, %54 : vector<8x256xf32>
    %56 = vector.extract_strided_slice %5 {offsets = [16, 0], sizes = [8, 768], strides = [1, 1]} : vector<64x768xf32> to vector<8x768xf32>
    %cst_14 = arith.constant dense<0.000000e+00> : vector<8x768xf32>
    %57 = tpu.matmul %55, %6, %cst_14 {dimension_numbers = #tpu.dot_dimension_numbers<[1], [0], [0], [1], [0, 0, 1, 1], [], []>} : vector<8x256xf32>, vector<256x768xf32>, vector<8x768xf32> -> vector<8x768xf32>
    %58 = vector.extract_strided_slice %56 {offsets = [0, 0], sizes = [8, 256], strides = [1, 1]} : vector<8x768xf32> to vector<8x256xf32>
    %59 = vector.extract_strided_slice %57 {offsets = [0, 0], sizes = [8, 256], strides = [1, 1]} : vector<8x768xf32> to vector<8x256xf32>
    %60 = arith.addf %58, %59 : vector<8x256xf32>
    %61 = arith.negf %60 : vector<8x256xf32>
    %62 = math.exp %61 : vector<8x256xf32>
    %cst_15 = arith.constant 1.000000e+00 : f32
    %63 = vector.broadcast %cst_15 : f32 to vector<8x256xf32>
    %64 = arith.addf %63, %62 : vector<8x256xf32>
    %65 = arith.divf %63, %64 : vector<8x256xf32>
    %66 = vector.extract_strided_slice %56 {offsets = [0, 256], sizes = [8, 256], strides = [1, 1]} : vector<8x768xf32> to vector<8x256xf32>
    %67 = vector.extract_strided_slice %57 {offsets = [0, 256], sizes = [8, 256], strides = [1, 1]} : vector<8x768xf32> to vector<8x256xf32>
    %68 = arith.addf %66, %67 : vector<8x256xf32>
    %69 = arith.negf %68 : vector<8x256xf32>
    %70 = math.exp %69 : vector<8x256xf32>
    %cst_16 = arith.constant 1.000000e+00 : f32
    %71 = vector.broadcast %cst_16 : f32 to vector<8x256xf32>
    %72 = arith.addf %71, %70 : vector<8x256xf32>
    %73 = arith.divf %71, %72 : vector<8x256xf32>
    %74 = vector.extract_strided_slice %56 {offsets = [0, 512], sizes = [8, 256], strides = [1, 1]} : vector<8x768xf32> to vector<8x256xf32>
    %75 = vector.extract_strided_slice %57 {offsets = [0, 512], sizes = [8, 256], strides = [1, 1]} : vector<8x768xf32> to vector<8x256xf32>
    %76 = arith.addf %75, %9 : vector<8x256xf32>
    %77 = arith.mulf %65, %76 : vector<8x256xf32>
    %78 = arith.addf %74, %77 : vector<8x256xf32>
    %79 = math.tanh %78 : vector<8x256xf32>
    %80 = arith.subf %55, %79 : vector<8x256xf32>
    %81 = arith.mulf %73, %80 : vector<8x256xf32>
    %82 = arith.addf %79, %81 : vector<8x256xf32>
    %83 = vector.extract_strided_slice %5 {offsets = [24, 0], sizes = [8, 768], strides = [1, 1]} : vector<64x768xf32> to vector<8x768xf32>
    %cst_17 = arith.constant dense<0.000000e+00> : vector<8x768xf32>
    %84 = tpu.matmul %82, %6, %cst_17 {dimension_numbers = #tpu.dot_dimension_numbers<[1], [0], [0], [1], [0, 0, 1, 1], [], []>} : vector<8x256xf32>, vector<256x768xf32>, vector<8x768xf32> -> vector<8x768xf32>
    %85 = vector.extract_strided_slice %83 {offsets = [0, 0], sizes = [8, 256], strides = [1, 1]} : vector<8x768xf32> to vector<8x256xf32>
    %86 = vector.extract_strided_slice %84 {offsets = [0, 0], sizes = [8, 256], strides = [1, 1]} : vector<8x768xf32> to vector<8x256xf32>
    %87 = arith.addf %85, %86 : vector<8x256xf32>
    %88 = arith.negf %87 : vector<8x256xf32>
    %89 = math.exp %88 : vector<8x256xf32>
    %cst_18 = arith.constant 1.000000e+00 : f32
    %90 = vector.broadcast %cst_18 : f32 to vector<8x256xf32>
    %91 = arith.addf %90, %89 : vector<8x256xf32>
    %92 = arith.divf %90, %91 : vector<8x256xf32>
    %93 = vector.extract_strided_slice %83 {offsets = [0, 256], sizes = [8, 256], strides = [1, 1]} : vector<8x768xf32> to vector<8x256xf32>
    %94 = vector.extract_strided_slice %84 {offsets = [0, 256], sizes = [8, 256], strides = [1, 1]} : vector<8x768xf32> to vector<8x256xf32>
    %95 = arith.addf %93, %94 : vector<8x256xf32>
    %96 = arith.negf %95 : vector<8x256xf32>
    %97 = math.exp %96 : vector<8x256xf32>
    %cst_19 = arith.constant 1.000000e+00 : f32
    %98 = vector.broadcast %cst_19 : f32 to vector<8x256xf32>
    %99 = arith.addf %98, %97 : vector<8x256xf32>
    %100 = arith.divf %98, %99 : vector<8x256xf32>
    %101 = vector.extract_strided_slice %83 {offsets = [0, 512], sizes = [8, 256], strides = [1, 1]} : vector<8x768xf32> to vector<8x256xf32>
    %102 = vector.extract_strided_slice %84 {offsets = [0, 512], sizes = [8, 256], strides = [1, 1]} : vector<8x768xf32> to vector<8x256xf32>
    %103 = arith.addf %102, %9 : vector<8x256xf32>
    %104 = arith.mulf %92, %103 : vector<8x256xf32>
    %105 = arith.addf %101, %104 : vector<8x256xf32>
    %106 = math.tanh %105 : vector<8x256xf32>
    %107 = arith.subf %82, %106 : vector<8x256xf32>
    %108 = arith.mulf %100, %107 : vector<8x256xf32>
    %109 = arith.addf %106, %108 : vector<8x256xf32>
    %110 = vector.extract_strided_slice %5 {offsets = [32, 0], sizes = [8, 768], strides = [1, 1]} : vector<64x768xf32> to vector<8x768xf32>
    %cst_20 = arith.constant dense<0.000000e+00> : vector<8x768xf32>
    %111 = tpu.matmul %109, %6, %cst_20 {dimension_numbers = #tpu.dot_dimension_numbers<[1], [0], [0], [1], [0, 0, 1, 1], [], []>} : vector<8x256xf32>, vector<256x768xf32>, vector<8x768xf32> -> vector<8x768xf32>
    %112 = vector.extract_strided_slice %110 {offsets = [0, 0], sizes = [8, 256], strides = [1, 1]} : vector<8x768xf32> to vector<8x256xf32>
    %113 = vector.extract_strided_slice %111 {offsets = [0, 0], sizes = [8, 256], strides = [1, 1]} : vector<8x768xf32> to vector<8x256xf32>
    %114 = arith.addf %112, %113 : vector<8x256xf32>
    %115 = arith.negf %114 : vector<8x256xf32>
    %116 = math.exp %115 : vector<8x256xf32>
    %cst_21 = arith.constant 1.000000e+00 : f32
    %117 = vector.broadcast %cst_21 : f32 to vector<8x256xf32>
    %118 = arith.addf %117, %116 : vector<8x256xf32>
    %119 = arith.divf %117, %118 : vector<8x256xf32>
    %120 = vector.extract_strided_slice %110 {offsets = [0, 256], sizes = [8, 256], strides = [1, 1]} : vector<8x768xf32> to vector<8x256xf32>
    %121 = vector.extract_strided_slice %111 {offsets = [0, 256], sizes = [8, 256], strides = [1, 1]} : vector<8x768xf32> to vector<8x256xf32>
    %122 = arith.addf %120, %121 : vector<8x256xf32>
    %123 = arith.negf %122 : vector<8x256xf32>
    %124 = math.exp %123 : vector<8x256xf32>
    %cst_22 = arith.constant 1.000000e+00 : f32
    %125 = vector.broadcast %cst_22 : f32 to vector<8x256xf32>
    %126 = arith.addf %125, %124 : vector<8x256xf32>
    %127 = arith.divf %125, %126 : vector<8x256xf32>
    %128 = vector.extract_strided_slice %110 {offsets = [0, 512], sizes = [8, 256], strides = [1, 1]} : vector<8x768xf32> to vector<8x256xf32>
    %129 = vector.extract_strided_slice %111 {offsets = [0, 512], sizes = [8, 256], strides = [1, 1]} : vector<8x768xf32> to vector<8x256xf32>
    %130 = arith.addf %129, %9 : vector<8x256xf32>
    %131 = arith.mulf %119, %130 : vector<8x256xf32>
    %132 = arith.addf %128, %131 : vector<8x256xf32>
    %133 = math.tanh %132 : vector<8x256xf32>
    %134 = arith.subf %109, %133 : vector<8x256xf32>
    %135 = arith.mulf %127, %134 : vector<8x256xf32>
    %136 = arith.addf %133, %135 : vector<8x256xf32>
    %137 = vector.extract_strided_slice %5 {offsets = [40, 0], sizes = [8, 768], strides = [1, 1]} : vector<64x768xf32> to vector<8x768xf32>
    %cst_23 = arith.constant dense<0.000000e+00> : vector<8x768xf32>
    %138 = tpu.matmul %136, %6, %cst_23 {dimension_numbers = #tpu.dot_dimension_numbers<[1], [0], [0], [1], [0, 0, 1, 1], [], []>} : vector<8x256xf32>, vector<256x768xf32>, vector<8x768xf32> -> vector<8x768xf32>
    %139 = vector.extract_strided_slice %137 {offsets = [0, 0], sizes = [8, 256], strides = [1, 1]} : vector<8x768xf32> to vector<8x256xf32>
    %140 = vector.extract_strided_slice %138 {offsets = [0, 0], sizes = [8, 256], strides = [1, 1]} : vector<8x768xf32> to vector<8x256xf32>
    %141 = arith.addf %139, %140 : vector<8x256xf32>
    %142 = arith.negf %141 : vector<8x256xf32>
    %143 = math.exp %142 : vector<8x256xf32>
    %cst_24 = arith.constant 1.000000e+00 : f32
    %144 = vector.broadcast %cst_24 : f32 to vector<8x256xf32>
    %145 = arith.addf %144, %143 : vector<8x256xf32>
    %146 = arith.divf %144, %145 : vector<8x256xf32>
    %147 = vector.extract_strided_slice %137 {offsets = [0, 256], sizes = [8, 256], strides = [1, 1]} : vector<8x768xf32> to vector<8x256xf32>
    %148 = vector.extract_strided_slice %138 {offsets = [0, 256], sizes = [8, 256], strides = [1, 1]} : vector<8x768xf32> to vector<8x256xf32>
    %149 = arith.addf %147, %148 : vector<8x256xf32>
    %150 = arith.negf %149 : vector<8x256xf32>
    %151 = math.exp %150 : vector<8x256xf32>
    %cst_25 = arith.constant 1.000000e+00 : f32
    %152 = vector.broadcast %cst_25 : f32 to vector<8x256xf32>
    %153 = arith.addf %152, %151 : vector<8x256xf32>
    %154 = arith.divf %152, %153 : vector<8x256xf32>
    %155 = vector.extract_strided_slice %137 {offsets = [0, 512], sizes = [8, 256], strides = [1, 1]} : vector<8x768xf32> to vector<8x256xf32>
    %156 = vector.extract_strided_slice %138 {offsets = [0, 512], sizes = [8, 256], strides = [1, 1]} : vector<8x768xf32> to vector<8x256xf32>
    %157 = arith.addf %156, %9 : vector<8x256xf32>
    %158 = arith.mulf %146, %157 : vector<8x256xf32>
    %159 = arith.addf %155, %158 : vector<8x256xf32>
    %160 = math.tanh %159 : vector<8x256xf32>
    %161 = arith.subf %136, %160 : vector<8x256xf32>
    %162 = arith.mulf %154, %161 : vector<8x256xf32>
    %163 = arith.addf %160, %162 : vector<8x256xf32>
    %164 = vector.extract_strided_slice %5 {offsets = [48, 0], sizes = [8, 768], strides = [1, 1]} : vector<64x768xf32> to vector<8x768xf32>
    %cst_26 = arith.constant dense<0.000000e+00> : vector<8x768xf32>
    %165 = tpu.matmul %163, %6, %cst_26 {dimension_numbers = #tpu.dot_dimension_numbers<[1], [0], [0], [1], [0, 0, 1, 1], [], []>} : vector<8x256xf32>, vector<256x768xf32>, vector<8x768xf32> -> vector<8x768xf32>
    %166 = vector.extract_strided_slice %164 {offsets = [0, 0], sizes = [8, 256], strides = [1, 1]} : vector<8x768xf32> to vector<8x256xf32>
    %167 = vector.extract_strided_slice %165 {offsets = [0, 0], sizes = [8, 256], strides = [1, 1]} : vector<8x768xf32> to vector<8x256xf32>
    %168 = arith.addf %166, %167 : vector<8x256xf32>
    %169 = arith.negf %168 : vector<8x256xf32>
    %170 = math.exp %169 : vector<8x256xf32>
    %cst_27 = arith.constant 1.000000e+00 : f32
    %171 = vector.broadcast %cst_27 : f32 to vector<8x256xf32>
    %172 = arith.addf %171, %170 : vector<8x256xf32>
    %173 = arith.divf %171, %172 : vector<8x256xf32>
    %174 = vector.extract_strided_slice %164 {offsets = [0, 256], sizes = [8, 256], strides = [1, 1]} : vector<8x768xf32> to vector<8x256xf32>
    %175 = vector.extract_strided_slice %165 {offsets = [0, 256], sizes = [8, 256], strides = [1, 1]} : vector<8x768xf32> to vector<8x256xf32>
    %176 = arith.addf %174, %175 : vector<8x256xf32>
    %177 = arith.negf %176 : vector<8x256xf32>
    %178 = math.exp %177 : vector<8x256xf32>
    %cst_28 = arith.constant 1.000000e+00 : f32
    %179 = vector.broadcast %cst_28 : f32 to vector<8x256xf32>
    %180 = arith.addf %179, %178 : vector<8x256xf32>
    %181 = arith.divf %179, %180 : vector<8x256xf32>
    %182 = vector.extract_strided_slice %164 {offsets = [0, 512], sizes = [8, 256], strides = [1, 1]} : vector<8x768xf32> to vector<8x256xf32>
    %183 = vector.extract_strided_slice %165 {offsets = [0, 512], sizes = [8, 256], strides = [1, 1]} : vector<8x768xf32> to vector<8x256xf32>
    %184 = arith.addf %183, %9 : vector<8x256xf32>
    %185 = arith.mulf %173, %184 : vector<8x256xf32>
    %186 = arith.addf %182, %185 : vector<8x256xf32>
    %187 = math.tanh %186 : vector<8x256xf32>
    %188 = arith.subf %163, %187 : vector<8x256xf32>
    %189 = arith.mulf %181, %188 : vector<8x256xf32>
    %190 = arith.addf %187, %189 : vector<8x256xf32>
    %191 = vector.extract_strided_slice %5 {offsets = [56, 0], sizes = [8, 768], strides = [1, 1]} : vector<64x768xf32> to vector<8x768xf32>
    %cst_29 = arith.constant dense<0.000000e+00> : vector<8x768xf32>
    %192 = tpu.matmul %190, %6, %cst_29 {dimension_numbers = #tpu.dot_dimension_numbers<[1], [0], [0], [1], [0, 0, 1, 1], [], []>} : vector<8x256xf32>, vector<256x768xf32>, vector<8x768xf32> -> vector<8x768xf32>
    %193 = vector.extract_strided_slice %191 {offsets = [0, 0], sizes = [8, 256], strides = [1, 1]} : vector<8x768xf32> to vector<8x256xf32>
    %194 = vector.extract_strided_slice %192 {offsets = [0, 0], sizes = [8, 256], strides = [1, 1]} : vector<8x768xf32> to vector<8x256xf32>
    %195 = arith.addf %193, %194 : vector<8x256xf32>
    %196 = arith.negf %195 : vector<8x256xf32>
    %197 = math.exp %196 : vector<8x256xf32>
    %cst_30 = arith.constant 1.000000e+00 : f32
    %198 = vector.broadcast %cst_30 : f32 to vector<8x256xf32>
    %199 = arith.addf %198, %197 : vector<8x256xf32>
    %200 = arith.divf %198, %199 : vector<8x256xf32>
    %201 = vector.extract_strided_slice %191 {offsets = [0, 256], sizes = [8, 256], strides = [1, 1]} : vector<8x768xf32> to vector<8x256xf32>
    %202 = vector.extract_strided_slice %192 {offsets = [0, 256], sizes = [8, 256], strides = [1, 1]} : vector<8x768xf32> to vector<8x256xf32>
    %203 = arith.addf %201, %202 : vector<8x256xf32>
    %204 = arith.negf %203 : vector<8x256xf32>
    %205 = math.exp %204 : vector<8x256xf32>
    %cst_31 = arith.constant 1.000000e+00 : f32
    %206 = vector.broadcast %cst_31 : f32 to vector<8x256xf32>
    %207 = arith.addf %206, %205 : vector<8x256xf32>
    %208 = arith.divf %206, %207 : vector<8x256xf32>
    %209 = vector.extract_strided_slice %191 {offsets = [0, 512], sizes = [8, 256], strides = [1, 1]} : vector<8x768xf32> to vector<8x256xf32>
    %210 = vector.extract_strided_slice %192 {offsets = [0, 512], sizes = [8, 256], strides = [1, 1]} : vector<8x768xf32> to vector<8x256xf32>
    %211 = arith.addf %210, %9 : vector<8x256xf32>
    %212 = arith.mulf %200, %211 : vector<8x256xf32>
    %213 = arith.addf %209, %212 : vector<8x256xf32>
    %214 = math.tanh %213 : vector<8x256xf32>
    %215 = arith.subf %190, %214 : vector<8x256xf32>
    %216 = arith.mulf %208, %215 : vector<8x256xf32>
    %217 = arith.addf %214, %216 : vector<8x256xf32>
    %c0_32 = arith.constant 0 : index
    %c0_33 = arith.constant 0 : index
    %218 = vector.load %arg5[%c0_32, %c0_33] : memref<256x128xf32, #tpu.memory_space<vmem>>, vector<256x128xf32>
    %cst_34 = arith.constant dense<0.000000e+00> : vector<8x128xf32>
    %219 = tpu.matmul %217, %218, %cst_34 {dimension_numbers = #tpu.dot_dimension_numbers<[1], [0], [0], [1], [0, 0, 1, 1], [], []>} : vector<8x256xf32>, vector<256x128xf32>, vector<8x128xf32> -> vector<8x128xf32>
    %c0_35 = arith.constant 0 : index
    %c0_36 = arith.constant 0 : index
    %220 = vector.load %arg6[%c0_35, %c0_36] : memref<1x128xf32, #tpu.memory_space<vmem>>, vector<1x128xf32>
    %221 = vector.broadcast %220 : vector<1x128xf32> to vector<8x128xf32>
    %222 = arith.addf %219, %221 : vector<8x128xf32>
    %c0_37 = arith.constant 0 : index
    %c0_38 = arith.constant 0 : index
    %223 = vector.load %arg7[%c0_37, %c0_38] : memref<8x128xf32, #tpu.memory_space<vmem>>, vector<8x128xf32>
    tpu.vector_store %arg7[%c0_37, %c0_38], %222 {strides = array<i32>} : memref<8x128xf32, #tpu.memory_space<vmem>>, vector<8x128xf32>,
    return
  }
}

</mosaic_0001>

<bundles_post_ra>
// kernel: gru_fc_forward.1
= control target key start
LH: loop header
LB: loop body
LE: loop exit
PB: predicated region body
PF: predicated region fallthrough
CT: control target
= control target key end

     0   :  { %12 = vsyncpa [#allocation3], 0  ;;  %s6272_s0 = inlined_call_operand.vmem [shape: f32[64,28], index: 0, kind: input, shape index: {}]   ;;  %s6273_s1 = inlined_call_operand.vmem [shape: f32[28,768], index: 1, kind: input, shape index: {}]   ;;  %s6274_s2 = inlined_call_operand.hbm [shape: f32[256,768], index: 2, kind: input, shape index: {}]   ;;  %s6275_s3 = inlined_call_operand.vmem [shape: f32[1,768], index: 3, kind: input, shape index: {}]   ;;  %s6276_s4 = inlined_call_operand.vmem [shape: f32[1,256], index: 4, kind: input, shape index: {}]   ;;  %s6277_s5 = inlined_call_operand.hbm [shape: f32[256,128], index: 5, kind: input, shape index: {}]   ;;  %s6278_s6 = inlined_call_operand.vmem [shape: f32[1,128], index: 6, kind: input, shape index: {}]   ;;  %s6279_s7 = inlined_call_operand.vmem [shape: f32[8,128], index: 7, kind: output, shape index: {}]  }
   0x1   :  { %13 = vsyncpa [#allocation5], 0  ;;  %s3333_s24 = smov [#allocation2]  }
   0x2   :  { %s23_s25 = sshll.u32 %s3333_s24, 4  ;;  %s24_s25 = int_to_ptr.vmem [resolvable:$true] %s23_s25 }
   0x3   :  { %s3297_s26 = scalar_lea.vmem %s24_s25, 24576  ;;  %p3302_p1 = scmp.lt.s32.totalorder %s24_s25, %s24_s25 }
   0x4   :  { %p3298_p0 = scmp.ne.s32.totalorder %s24_s25, %s3297_s26  ;;  %p3303_p2 = scmp.lt.s32.totalorder %s3297_s26, %s3297_s26 }
   0x6   :  { %p3304_p3 = por %p3303_p2, %p3302_p1 }
   0x8   :  { %p3305_p4 = pnand %p3304_p3, %p3298_p0 }
   0xa   :  { %3308 = shalt.err (!%p3305_p4)
}
   0xb   :  { %s3334_s27 = smov 768   ;;  %s3335_s28 = smov 48  }
   0xc   :  { %29 = dma.hbm_to_vmem [thread:$0]  %s6274_s2, 24576, %s24_s25, [#allocation3], %s3334_s27, %s3334_s27, %s3335_s28  }
   0xd   :  { %s3336_s8 = smov [#allocation4]  }
   0xe   :  { %s39_s9 = sshll.u32 %s3336_s8, 4  ;;  %s40_s9 = int_to_ptr.vmem [resolvable:$true] %s39_s9 }
   0xf   :  { %s3317_s10 = scalar_lea.vmem %s40_s9, 4096  ;;  %p3322_p6 = scmp.lt.s32.totalorder %s40_s9, %s40_s9 }
  0x10   :  { %p3318_p5 = scmp.ne.s32.totalorder %s40_s9, %s3317_s10  ;;  %p3323_p7 = scmp.lt.s32.totalorder %s3317_s10, %s3317_s10 }
  0x12   :  { %p3324_p8 = por %p3323_p7, %p3322_p6 }
  0x14   :  { %p3325_p9 = pnand %p3324_p8, %p3318_p5 }
  0x16   :  { %3328 = shalt.err (!%p3325_p9)
}
  0x17   :  { %s3337_s11 = smov 128   ;;  %s3338_s12 = smov 8  }
  0x18   :  { %45 = dma.hbm_to_vmem [thread:$0]  %s6277_s5, 4096, %s40_s9, [#allocation5], %s3337_s11, %s3337_s11, %s3338_s12  }
  0x19   :  { %3329 = dma.done.wait [#allocation3], 24576  }
  0x1a   :  { %3330 = vsyncadd [#allocation3], 4294942720 }
  0x1b   :  { %3331 = dma.done.wait [#allocation5], 4096  }
  0x1c   :  { %3332 = vsyncadd [#allocation5], 4294963200  ;;  %v3339_v0 = vmov 0.0   ;;  %vm143_vm0 = vcmask 1043456   ;;  %v81_v1 = vld [vmem:[%s6273_s1 + $0x98] sm:$0xf] }
  0x1d   :  { %226 = vmatprep.mubr.f32.mxu0 %v3339_v0  ;;  %339 = vmatprep.mubr.f32.mxu1 %v3339_v0  ;;  %v80_v2 = vld [vmem:[%s6273_s1 + $0x90] sm:$0xf]  ;;  %v75_v3 = vld [vmem:[%s6273_s1 + $0x68] sm:$0xff]  ;;  %v74_v4 = vld [vmem:[%s6273_s1 + $0x60] sm:$0xff]  ;;  %vm118_vm1 = vcmask 228352  }
  0x1e   :  { %2640 = vmatprep.subr.msk.mxu0 %vm143_vm0, %v81_v1  ;;  %v69_v5 = vld [vmem:[%s6273_s1 + $0x38] sm:$0xff]  ;;  %v68_v6 = vld [vmem:[%s6273_s1 + $0x30] sm:$0xff]  ;;  %v63_v7 = vld [vmem:[%s6273_s1 + $0x8] sm:$0xff] }
  0x1f   :  { %2641 = vmatpush1.msk.msra.mxu0 %vm143_vm0, %v80_v2  ;;  %v83_v8 = vld [vmem:[%s6273_s1 + $0xa8] sm:$0xf]  ;;  %v82_v9 = vld [vmem:[%s6273_s1 + $0xa0] sm:$0xf]  ;;  %v77_v11 = vld [vmem:[%s6273_s1 + $0x78] sm:$0xff] }
  0x20   :  { %188 = vmatprep.subr.mxu0 %v75_v3  ;;  %v62_v10 = vld [vmem:[%s6273_s1] sm:$0xff]  ;;  %2650 = vmatprep.subr.msk.mxu1 %vm143_vm0, %v83_v8  ;;  %v85_v13 = vld [vmem:[%s6273_s1 + $0xb8] sm:$0xf]  ;;  %v76_v14 = vld [vmem:[%s6273_s1 + $0x70] sm:$0xff] }
  0x21   :  { %189 = vmatpush1.msra.mxu0 %v74_v4  ;;  %v3427_v12 = vld [vmem:[%s6272_s0] sm:$0xff]  ;;  %2651 = vmatpush1.msk.msra.mxu1 %vm143_vm0, %v82_v9  ;;  %v84_v15 = vld [vmem:[%s6273_s1 + $0xb0] sm:$0xf]  ;;  %v79_v16 = vld [vmem:[%s6273_s1 + $0x88] sm:$0xff] }
  0x22   :  { %190 = vmatprep.subr.mxu0 %v69_v5  ;;  %301 = vmatprep.subr.mxu1 %v77_v11  ;;  %v71_v17 = vld [vmem:[%s6273_s1 + $0x48] sm:$0xff]  ;;  %v78_v18 = vld [vmem:[%s6273_s1 + $0x80] sm:$0xff]  ;;  %v65_v21 = vld [vmem:[%s6273_s1 + $0x18] sm:$0xff] }
  0x23   :  { %191 = vmatpush1.msra.mxu0 %v68_v6  ;;  %302 = vmatpush1.msra.mxu1 %v76_v14  ;;  %v70_v19 = vld [vmem:[%s6273_s1 + $0x40] sm:$0xff]  ;;  %v3459_v20 = vld [vmem:[%s6272_s0 + $0x8] sm:$0xff]  ;;  %v64_v22 = vld [vmem:[%s6273_s1 + $0x10] sm:$0xff] }
  0x24   :  { %192 = vmatprep.subr.mxu0 %v63_v7  ;;  %303 = vmatprep.subr.mxu1 %v71_v17  ;;  %v73_v23 = vld [vmem:[%s6273_s1 + $0x58] sm:$0xff]  ;;  %v72_v24 = vld [vmem:[%s6273_s1 + $0x50] sm:$0xff]  ;;  %v67_v27 = vld [vmem:[%s6273_s1 + $0x28] sm:$0xff] }
  0x25   :  { %193 = vmatpush1.msra.mxu0 %v62_v10  ;;  %304 = vmatpush1.msra.mxu1 %v70_v19  ;;  %v3475_v25 = vld [vmem:[#allocation2 + $0x2d8] sm:$0xff]  ;;  %v56_v26 = vld [vmem:[%s6272_s0 + $0x10] sm:$0xff]  ;;  %v66_v28 = vld [vmem:[%s6273_s1 + $0x20] sm:$0xff] }
  0x26   :  { %2642 = vmatmul.mubr.msk.f32.vlgmr.msra.gmra.mxu0 %vm118_vm1, %v3427_v12  ;;  %2660 = vmatprep.subr.msk.mxu0 %vm143_vm0, %v85_v13  ;;  %v3490_v29 = vld [vmem:[#allocation2 + $0x2d0] sm:$0xff]  ;;  %v594_v30 = vld [vmem:[#allocation2 + $0x2e8] sm:$0xff]  ;;  %v57_v32 = vld [vmem:[%s6272_s0 + $0x18] sm:$0xff] }
  0x27   :  { %2661 = vmatpush1.msk.msra.mxu0 %vm143_vm0, %v84_v15  ;;  %232 = vmatprep.mubr.f32.mxu0 %v3339_v0  ;;  %v3493_v31 = vld [vmem:[#allocation2 + $0x2a8] sm:$0xff]  ;;  %v3499_v33 = vld [vmem:[#allocation2 + $0x2a0] sm:$0xff]  ;;  %v3502_v34 = vld [vmem:[#allocation2 + $0x278] sm:$0xff] }
  0x28   :  { %414 = vmatprep.subr.mxu0 %v79_v16  ;;  %305 = vmatprep.subr.mxu1 %v65_v21  ;;  %v58_v35 = vld [vmem:[%s6272_s0 + $0x20] sm:$0xff]  ;;  %v59_v36 = vld [vmem:[%s6272_s0 + $0x28] sm:$0xff]  ;;  %v60_v37 = vld [vmem:[%s6272_s0 + $0x30] sm:$0xff] }
  0x29   :  { %415 = vmatpush1.msra.mxu0 %v78_v18  ;;  %306 = vmatpush1.msra.mxu1 %v64_v22  ;;  %v61_v38 = vld [vmem:[%s6272_s0 + $0x38] sm:$0xff]  ;;  %v593_v39 = vld [vmem:[#allocation2 + $0x2e0] sm:$0xff]  ;;  %v587_v41 = vld [vmem:[#allocation2 + $0x2b0] sm:$0xff] }
  0x2a   :  { %2643 = vmatmul.mubr.msk.f32.gmra.mxu0 %vm118_vm1, %v3459_v20  ;;  %2652 = vmatmul.mubr.msk.f32.vlgmr.msra.gmra.mxu1 %vm118_vm1, %v3427_v12  ;;  %v588_v40 = vld [vmem:[#allocation2 + $0x2b8] sm:$0xff]  ;;  %v3561_v42 = vld [vmem:[#allocation2 + $0x270] sm:$0xff]  ;;  %v582_v43 = vld [vmem:[#allocation2 + $0x288] sm:$0xff] }
  0x2b   :  { %238 = vmatprep.mubr.f32.mxu0 %v3339_v0  ;;  %416 = vmatprep.subr.mxu0 %v73_v23  ;;  %v3564_v44 = vld [vmem:[#allocation2 + $0x248] sm:$0xff]  ;;  %v581_v45 = vld [vmem:[#allocation2 + $0x280] sm:$0xff]  ;;  %v576_v47 = vld [vmem:[#allocation2 + $0x258] sm:$0xff] }
  0x2c   :  { %417 = vmatpush1.msra.mxu0 %v72_v24  ;;  %739 = vmatprep.subr.mxu1 %v3475_v25  ;;  %v3567_v46 = vld [vmem:[#allocation2 + $0x240] sm:$0xff]  ;;  %v3570_v48 = vld [vmem:[#allocation2 + $0x218] sm:$0xff]  ;;  %v575_v49 = vld [vmem:[#allocation2 + $0x250] sm:$0xff] }
  0x2d   :  { %418 = vmatprep.subr.mxu0 %v67_v27  ;;  %740 = vmatpush1.msra.mxu1 %v3490_v29  ;;  %v3573_v50 = vld [vmem:[#allocation2 + $0x210] sm:$0xff]  ;;  %v570_v51 = vld [vmem:[#allocation2 + $0x228] sm:$0xff]  ;;  %v569_v53 = vld [vmem:[#allocation2 + $0x220] sm:$0xff] }
  0x2e   :  { %2644 = vmatmul.mubr.msk.f32.gmra.mxu0 %vm118_vm1, %v56_v26  ;;  %741 = vmatprep.subr.mxu1 %v3493_v31  ;;  %v3576_v52 = vld [vmem:[#allocation2 + $0x1e8] sm:$0xff]  ;;  %v3579_v54 = vld [vmem:[#allocation2 + $0x1e0] sm:$0xff]  ;;  %v564_v55 = vld [vmem:[#allocation2 + $0x1f8] sm:$0xff] }
  0x2f   :  { %244 = vmatprep.mubr.f32.mxu0 %v3339_v0  ;;  %419 = vmatpush1.msra.mxu0 %v66_v28  ;;  %v3582_v56 = vld [vmem:[#allocation2 + $0x1b8] sm:$0xff]  ;;  %v563_v57 = vld [vmem:[#allocation2 + $0x1f0] sm:$0xff]  ;;  %v558_v59 = vld [vmem:[#allocation2 + $0x1c8] sm:$0xff] }
  0x30   :  { %810 = vmatprep.subr.mxu0 %v594_v30  ;;  %345 = vmatprep.mubr.f32.mxu1 %v3339_v0  ;;  %v3585_v58 = vld [vmem:[#allocation2 + $0x1b0] sm:$0xff]  ;;  %v3588_v60 = vld [vmem:[#allocation2 + $0x188] sm:$0xff]  ;;  %v557_v61 = vld [vmem:[#allocation2 + $0x1c0] sm:$0xff] }
  0x31   :  { %742 = vmatpush1.msra.mxu1 %v3499_v33  ;;  %v3591_v62 = vld [vmem:[#allocation2 + $0x180] sm:$0xff]  ;;  %v552_v63 = vld [vmem:[#allocation2 + $0x198] sm:$0xff]  ;;  %v551_v1 = vld [vmem:[#allocation2 + $0x190] sm:$0xff] }
  0x32   :  { %2645 = vmatmul.mubr.msk.f32.gmra.mxu0 %vm118_vm1, %v57_v32  ;;  %743 = vmatprep.subr.mxu1 %v3502_v34  ;;  %v3597_v2 = vld [vmem:[#allocation2 + $0x150] sm:$0xff]  ;;  %v546_v3 = vld [vmem:[#allocation2 + $0x168] sm:$0xff]  ;;  %v545_v5 = vld [vmem:[#allocation2 + $0x160] sm:$0xff] }
  0x33   :  { %250 = vmatprep.mubr.f32.mxu0 %v3339_v0  ;;  %2653 = vmatmul.mubr.msk.f32.gmra.mxu1 %vm118_vm1, %v3459_v20  ;;  %v3600_v4 = vld [vmem:[#allocation2 + $0x128] sm:$0xff]  ;;  %v3603_v6 = vld [vmem:[#allocation2 + $0x120] sm:$0xff]  ;;  %v540_v7 = vld [vmem:[#allocation2 + $0x138] sm:$0xff] }
  0x34   :  { %351 = vmatprep.mubr.f32.mxu1 %v3339_v0  ;;  %744 = vmatpush1.msra.mxu1 %v3561_v42  ;;  %v3606_v8 = vld [vmem:[#allocation2 + $0xf8] sm:$0xff]  ;;  %v539_v9 = vld [vmem:[#allocation2 + $0x130] sm:$0xff]  ;;  %v534_v11 = vld [vmem:[#allocation2 + $0x108] sm:$0xff] }
  0x35   :  { %745 = vmatprep.subr.mxu1 %v3564_v44  ;;  %v3609_v10 = vld [vmem:[#allocation2 + $0xf0] sm:$0xff]  ;;  %v533_v13 = vld [vmem:[#allocation2 + $0x100] sm:$0xff]  ;;  %v528_v15 = vld [vmem:[#allocation2 + $0xd8] sm:$0xff] }
  0x36   :  { %2646 = vmatmul.mubr.msk.f32.gmra.mxu0 %vm118_vm1, %v58_v35  ;;  %746 = vmatpush1.msra.mxu1 %v3567_v46  ;;  %v3615_v14 = vld [vmem:[#allocation2 + $0xc0] sm:$0xff]  ;;  %v3618_v16 = vld [vmem:[#allocation2 + $0x98] sm:$0xff]  ;;  %v527_v17 = vld [vmem:[#allocation2 + $0xd0] sm:$0xff] }
  0x37   :  { %256 = vmatprep.mubr.f32.mxu0 %v3339_v0  ;;  %2654 = vmatmul.mubr.msk.f32.gmra.mxu1 %vm118_vm1, %v56_v26  ;;  %v3621_v18 = vld [vmem:[#allocation2 + $0x90] sm:$0xff]  ;;  %v522_v19 = vld [vmem:[#allocation2 + $0xa8] sm:$0xff]  ;;  %v521_v21 = vld [vmem:[#allocation2 + $0xa0] sm:$0xff] }
  0x38   :  { %357 = vmatprep.mubr.f32.mxu1 %v3339_v0  ;;  %747 = vmatprep.subr.mxu1 %v3570_v48  ;;  %v3627_v22 = vld [vmem:[#allocation2 + $0x60] sm:$0xff]  ;;  %v516_v23 = vld [vmem:[#allocation2 + $0x78] sm:$0xff]  ;;  %v3633_v27 = vld [vmem:[#allocation2 + $0x30] sm:$0xff] }
  0x39   :  { %748 = vmatpush1.msra.mxu1 %v3573_v50  ;;  %v3630_v24 = vld [vmem:[#allocation2 + $0x38] sm:$0xff]  ;;  %v3635_v28 = vld [vmem:[#allocation2 + $0x48] sm:$0xff] }
  0x3a   :  { %2647 = vmatmul.mubr.msk.f32.gmra.mxu0 %vm118_vm1, %v59_v36  ;;  %749 = vmatprep.subr.mxu1 %v3576_v52  ;;  %6799 = vst [vmem:[#allocation8_spill] sm:$0xff] %v3635_v28  ;;  %v3639_v30 = vld [vmem:[#allocation2 + $0x8] sm:$0xff] }
  0x3b   :  { %262 = vmatprep.mubr.f32.mxu0 %v3339_v0  ;;  %2655 = vmatmul.mubr.msk.f32.gmra.mxu1 %vm118_vm1, %v57_v32 }
  0x3c   :  { %363 = vmatprep.mubr.f32.mxu1 %v3339_v0  ;;  %750 = vmatpush1.msra.mxu1 %v3579_v54 }
  0x3d   :  { %751 = vmatprep.subr.mxu1 %v3582_v56 }
  0x3e   :  { %2648 = vmatmul.mubr.msk.f32.gmra.mxu0 %vm118_vm1, %v60_v37  ;;  %752 = vmatpush1.msra.mxu1 %v3585_v58 }
  0x3f   :  { %268 = vmatprep.mubr.f32.mxu0 %v3339_v0  ;;  %2656 = vmatmul.mubr.msk.f32.gmra.mxu1 %vm118_vm1, %v58_v35 }
  0x40   :  { %369 = vmatprep.mubr.f32.mxu1 %v3339_v0  ;;  %753 = vmatprep.subr.mxu1 %v3588_v60 }
  0x41   :  { %754 = vmatpush1.msra.mxu1 %v3591_v62 }
  0x42   :  { %2649 = vmatmul.mubr.msk.f32.gmra.mxu0 %vm118_vm1, %v61_v38 }
  0x43   :  { %452 = vmatprep.mubr.f32.mxu0 %v3339_v0  ;;  %2657 = vmatmul.mubr.msk.f32.gmra.mxu1 %vm118_vm1, %v59_v36 }
  0x44   :  { %375 = vmatprep.mubr.f32.mxu1 %v3339_v0 }
  0x46   :  { %2662 = vmatmul.mubr.msk.f32.vlgmr.msra.gmra.mxu0 %vm118_vm1, %v3427_v12  ;;  %v3612_v12 = vld [vmem:[#allocation2 + $0xc8] sm:$0xff] }
  0x47   :  { %811 = vmatpush1.msra.mxu0 %v593_v39  ;;  %458 = vmatprep.mubr.f32.mxu0 %v3339_v0  ;;  %v3657_v39 = vld [vmem:[#allocation2 + $0x5d0] sm:$0xff] }
  0x48   :  { %812 = vmatprep.subr.mxu0 %v588_v40  ;;  %2658 = vmatmul.mubr.msk.f32.gmra.mxu1 %vm118_vm1, %v60_v37  ;;  %v3659_v40 = vld [vmem:[#allocation2 + $0x5e8] sm:$0xff] }
  0x49   :  { %813 = vmatpush1.msra.mxu0 %v587_v41  ;;  %381 = vmatprep.mubr.f32.mxu1 %v3339_v0  ;;  %6803 = vst [vmem:[#allocation12_spill] sm:$0xff] %v3659_v40  ;;  %v3663_v41 = vld [vmem:[#allocation2 + $0x5a8] sm:$0xff] }
  0x4a   :  { %2663 = vmatmul.mubr.msk.f32.gmra.mxu0 %vm118_vm1, %v3459_v20  ;;  %814 = vmatprep.subr.mxu0 %v582_v43  ;;  %v3624_v20 = vld [vmem:[#allocation2 + $0x68] sm:$0xff]  ;;  %v3665_v43 = vld [vmem:[#allocation2 + $0x5e0] sm:$0xff] }
  0x4b   :  { %464 = vmatprep.mubr.f32.mxu0 %v3339_v0  ;;  %815 = vmatpush1.msra.mxu0 %v581_v45  ;;  %6804 = vst [vmem:[#allocation13_spill] sm:$0xff] %v3665_v43  ;;  %v3669_v45 = vld [vmem:[#allocation2 + $0x5a0] sm:$0xff] }
  0x4c   :  { %2659 = vmatmul.mubr.msk.f32.gmra.mxu1 %vm118_vm1, %v61_v38  ;;  %816 = vmatprep.subr.mxu0 %v576_v47  ;;  %v3671_v47 = vld [vmem:[#allocation2 + $0x5b8] sm:$0xff] }
  0x4d   :  { %817 = vmatpush1.msra.mxu0 %v575_v49  ;;  %6805 = vst [vmem:[#allocation14_spill] sm:$0xff] %v3671_v47  ;;  %v3675_v49 = vld [vmem:[#allocation2 + $0x578] sm:$0xff] }
  0x4e   :  { %2664 = vmatmul.mubr.msk.f32.gmra.mxu0 %vm118_vm1, %v56_v26  ;;  %818 = vmatprep.subr.mxu0 %v570_v51  ;;  %v515_v26 = vld [vmem:[#allocation2 + $0x70] sm:$0xff] }
  0x4f   :  { %470 = vmatprep.mubr.f32.mxu0 %v3339_v0  ;;  %819 = vmatpush1.msra.mxu0 %v569_v53  ;;  %v3677_v51 = vld [vmem:[#allocation2 + $0x5b0] sm:$0xff] }
  0x50   :  { %820 = vmatprep.subr.mxu0 %v564_v55  ;;  %6806 = vst [vmem:[#allocation15_spill] sm:$0xff] %v3677_v51  ;;  %v3681_v53 = vld [vmem:[#allocation2 + $0x570] sm:$0xff]  ;;  %v3683_v55 = vld [vmem:[#allocation2 + $0x588] sm:$0xff] }
  0x51   :  { %821 = vmatpush1.msra.mxu0 %v563_v57  ;;  %6807 = vst [vmem:[#allocation16_spill] sm:$0xff] %v3683_v55  ;;  %v3687_v57 = vld [vmem:[#allocation2 + $0x548] sm:$0xff] }
  0x52   :  { %2665 = vmatmul.mubr.msk.f32.gmra.mxu0 %vm118_vm1, %v57_v32  ;;  %822 = vmatprep.subr.mxu0 %v558_v59  ;;  %v3641_v32 = vld [vmem:[#allocation2 + $0x40] sm:$0xff] }
  0x53   :  { %476 = vmatprep.mubr.f32.mxu0 %v3339_v0  ;;  %823 = vmatpush1.msra.mxu0 %v557_v61  ;;  %6800 = vst [vmem:[#allocation9_spill] sm:$0xff] %v3641_v32  ;;  %v3689_v59 = vld [vmem:[#allocation2 + $0x580] sm:$0xff] }
  0x54   :  { %824 = vmatprep.subr.mxu0 %v552_v63  ;;  %6808 = vst [vmem:[#allocation17_spill] sm:$0xff] %v3689_v59  ;;  %v3693_v61 = vld [vmem:[#allocation2 + $0x540] sm:$0xff]  ;;  %v3695_v63 = vld [vmem:[#allocation2 + $0x558] sm:$0xff] }
  0x55   :  { %825 = vmatpush1.msra.mxu0 %v551_v1  ;;  %6809 = vst [vmem:[#allocation18_spill] sm:$0xff] %v3695_v63  ;;  %v3699_v1 = vld [vmem:[#allocation2 + $0x518] sm:$0xff] }
  0x56   :  { %2666 = vmatmul.mubr.msk.f32.gmra.mxu0 %vm118_vm1, %v58_v35  ;;  %826 = vmatprep.subr.mxu0 %v546_v3  ;;  %v3645_v35 = vld [vmem:[#allocation2] sm:$0xff]  ;;  %v3701_v3 = vld [vmem:[#allocation2 + $0x550] sm:$0xff] }
  0x57   :  { %482 = vmatprep.mubr.f32.mxu0 %v3339_v0  ;;  %827 = vmatpush1.msra.mxu0 %v545_v5  ;;  %6810 = vst [vmem:[#allocation19_spill] sm:$0xff] %v3701_v3  ;;  %v3705_v5 = vld [vmem:[#allocation2 + $0x510] sm:$0xff] }
  0x58   :  { %828 = vmatprep.subr.mxu0 %v540_v7  ;;  %6811 = vst [vmem:[#allocation20_spill] sm:$0xff] %v3705_v5  ;;  %v3707_v7 = vld [vmem:[#allocation2 + $0x528] sm:$0xff] }
  0x59   :  { %829 = vmatpush1.msra.mxu0 %v539_v9  ;;  %6812 = vst [vmem:[#allocation21_spill] sm:$0xff] %v3707_v7  ;;  %v3711_v9 = vld [vmem:[#allocation2 + $0x4e8] sm:$0xff] }
  0x5a   :  { %2667 = vmatmul.mubr.msk.f32.gmra.mxu0 %vm118_vm1, %v59_v36  ;;  %830 = vmatprep.subr.mxu0 %v534_v11  ;;  %v3647_v36 = vld [vmem:[#allocation2 + $0x18] sm:$0xff]  ;;  %6813 = vst [vmem:[#allocation22_spill] sm:$0xff] %v3711_v9  ;;  %v3713_v11 = vld [vmem:[#allocation2 + $0x520] sm:$0xff] }
  0x5b   :  { %488 = vmatprep.mubr.f32.mxu0 %v3339_v0  ;;  %831 = vmatpush1.msra.mxu0 %v533_v13  ;;  %6801 = vst [vmem:[#allocation10_spill] sm:$0xff] %v3647_v36  ;;  %6814 = vst [vmem:[#allocation23_spill] sm:$0xff] %v3713_v11  ;;  %v3717_v13 = vld [vmem:[#allocation2 + $0x4e0] sm:$0xff] }
  0x5c   :  { %832 = vmatprep.subr.mxu0 %v528_v15  ;;  %6815 = vst [vmem:[#allocation24_spill] sm:$0xff] %v3717_v13  ;;  %v3719_v15 = vld [vmem:[#allocation2 + $0x4f8] sm:$0xff] }
  0x5d   :  { %833 = vmatpush1.msra.mxu0 %v527_v17  ;;  %6816 = vst [vmem:[#allocation25_spill] sm:$0xff] %v3719_v15  ;;  %v3723_v17 = vld [vmem:[#allocation2 + $0x4b8] sm:$0xff] }
  0x5e   :  { %2668 = vmatmul.mubr.msk.f32.gmra.mxu0 %vm118_vm1, %v60_v37  ;;  %834 = vmatprep.subr.mxu0 %v522_v19  ;;  %v3651_v37 = vld [vmem:[#allocation2 + $0x5d8] sm:$0xff]  ;;  %6817 = vst [vmem:[#allocation26_spill] sm:$0xff] %v3723_v17  ;;  %v3725_v19 = vld [vmem:[#allocation2 + $0x4f0] sm:$0xff] }
  0x5f   :  { %494 = vmatprep.mubr.f32.mxu0 %v3339_v0  ;;  %v3594_v0 = vld [vmem:[#allocation2 + $0x158] sm:$0xff]  ;;  %835 = vmatpush1.msra.mxu0 %v521_v21  ;;  %6818 = vst [vmem:[#allocation27_spill] sm:$0xff] %v3725_v19  ;;  %v3729_v21 = vld [vmem:[#allocation2 + $0x4b0] sm:$0xff] }
  0x60   :  { %755 = vmatprep.subr.mxu1 %v3594_v0  ;;  %836 = vmatprep.subr.mxu0 %v516_v23  ;;  %6819 = vst [vmem:[#allocation28_spill] sm:$0xff] %v3729_v21  ;;  %v3731_v23 = vld [vmem:[#allocation2 + $0x4c8] sm:$0xff] }
  0x61   :  { %756 = vmatpush1.msra.mxu1 %v3597_v2  ;;  %837 = vmatpush1.msra.mxu0 %v515_v26  ;;  %6820 = vst [vmem:[#allocation29_spill] sm:$0xff] %v3731_v23  ;;  %v3735_v26 = vld [vmem:[#allocation2 + $0x488] sm:$0xff] }
  0x62   :  { %2669 = vmatmul.mubr.msk.f32.gmra.mxu0 %vm118_vm1, %v61_v38  ;;  %757 = vmatprep.subr.mxu1 %v3600_v4  ;;  %v3653_v38 = vld [vmem:[#allocation2 + $0x10] sm:$0xff]  ;;  %6821 = vst [vmem:[#allocation30_spill] sm:$0xff] %v3735_v26 }
  0x63   :  { %758 = vmatpush1.msra.mxu1 %v3603_v6  ;;  %838 = vmatprep.subr.mxu0 %v3635_v28  ;;  %6802 = vst [vmem:[#allocation11_spill] sm:$0xff] %v3653_v38  ;;  %v3799_v28 = vld [vmem:[#allocation2 + $0x3a8] sm:$0xff] }
  0x64   :  { %759 = vmatprep.subr.mxu1 %v3606_v8  ;;  %839 = vmatpush1.msra.mxu0 %v3641_v32  ;;  %v3793_v32 = vld [vmem:[#allocation2 + $0x3d0] sm:$0xff]  ;;  %6844 = vst [vmem:[#allocation53_spill] sm:$0xff] %v3799_v28 }
  0x65   :  { %760 = vmatpush1.msra.mxu1 %v3609_v10  ;;  %840 = vmatprep.subr.mxu0 %v3647_v36  ;;  %v3787_v36 = vld [vmem:[#allocation2 + $0x3d8] sm:$0xff]  ;;  %6842 = vst [vmem:[#allocation51_spill] sm:$0xff] %v3793_v32 }
  0x66   :  { %761 = vmatprep.subr.mxu1 %v3612_v12  ;;  %841 = vmatpush1.msra.mxu0 %v3653_v38  ;;  %v3785_v38 = vld [vmem:[#allocation2 + $0x3c0] sm:$0xff]  ;;  %6840 = vst [vmem:[#allocation49_spill] sm:$0xff] %v3787_v36 }
  0x67   :  { %762 = vmatpush1.msra.mxu1 %v3615_v14  ;;  %842 = vmatprep.subr.mxu0 %v3659_v40  ;;  %v3779_v40 = vld [vmem:[#allocation2 + $0x3c8] sm:$0xff]  ;;  %6839 = vst [vmem:[#allocation48_spill] sm:$0xff] %v3785_v38 }
  0x68   :  { %763 = vmatprep.subr.mxu1 %v3618_v16  ;;  %843 = vmatpush2.msra.mxu0 %v3665_v43  ;;  %v3775_v43 = vld [vmem:[#allocation2 + $0x408] sm:$0xff]  ;;  %6837 = vst [vmem:[#allocation46_spill] sm:$0xff] %v3779_v40 }
  0x69   :  { %764 = vmatpush1.msra.mxu1 %v3621_v18  ;;  %844 = vmatprep.subr.mxu0 %v3671_v47  ;;  %v3769_v47 = vld [vmem:[#allocation2 + $0x430] sm:$0xff]  ;;  %6836 = vst [vmem:[#allocation45_spill] sm:$0xff] %v3775_v43 }
  0x6a   :  { %765 = vmatprep.subr.mxu1 %v3624_v20  ;;  %845 = vmatpush2.msra.mxu0 %v3677_v51  ;;  %v3767_v51 = vld [vmem:[#allocation2 + $0x3f8] sm:$0xff]  ;;  %6834 = vst [vmem:[#allocation43_spill] sm:$0xff] %v3769_v47 }
  0x6b   :  { %766 = vmatpush1.msra.mxu1 %v3627_v22  ;;  %846 = vmatprep.subr.mxu0 %v3683_v55  ;;  %v3761_v55 = vld [vmem:[#allocation2 + $0x420] sm:$0xff]  ;;  %6833 = vst [vmem:[#allocation42_spill] sm:$0xff] %v3767_v51 }
  0x6c   :  { %767 = vmatprep.subr.mxu1 %v3630_v24  ;;  %847 = vmatpush2.msra.mxu0 %v3689_v59  ;;  %v3759_v59 = vld [vmem:[#allocation2 + $0x460] sm:$0xff]  ;;  %6831 = vst [vmem:[#allocation40_spill] sm:$0xff] %v3761_v55 }
  0x6d   :  { %768 = vmatpush1.msra.mxu1 %v3633_v27  ;;  %848 = vmatprep.subr.mxu0 %v3695_v63  ;;  %v3753_v63 = vld [vmem:[#allocation2 + $0x468] sm:$0xff]  ;;  %6830 = vst [vmem:[#allocation39_spill] sm:$0xff] %v3759_v59 }
  0x6e   :  { %769 = vmatprep.subr.mxu1 %v3639_v30  ;;  %849 = vmatpush2.msra.mxu0 %v3701_v3  ;;  %v3749_v3 = vld [vmem:[#allocation2 + $0x490] sm:$0xff]  ;;  %6828 = vst [vmem:[#allocation37_spill] sm:$0xff] %v3753_v63 }
  0x6f   :  { %770 = vmatpush1.msra.mxu1 %v3645_v35  ;;  %850 = vmatprep.subr.mxu0 %v3707_v7  ;;  %v3743_v7 = vld [vmem:[#allocation2 + $0x498] sm:$0xff]  ;;  %6826 = vst [vmem:[#allocation35_spill] sm:$0xff] %v3749_v3 }
  0x70   :  { %771 = vmatprep.subr.mxu1 %v3651_v37  ;;  %851 = vmatpush2.msra.mxu0 %v3713_v11  ;;  %v3737_v11 = vld [vmem:[#allocation2 + $0x4c0] sm:$0xff]  ;;  %6824 = vst [vmem:[#allocation33_spill] sm:$0xff] %v3743_v7 }
  0x71   :  { %772 = vmatpush2.msra.mxu1 %v3657_v39  ;;  %852 = vmatprep.subr.mxu0 %v3719_v15  ;;  %6822 = vst [vmem:[#allocation31_spill] sm:$0xff] %v3737_v11  ;;  %v3741_v15 = vld [vmem:[#allocation2 + $0x480] sm:$0xff] }
  0x72   :  { %773 = vmatprep.subr.mxu1 %v3663_v41  ;;  %853 = vmatpush2.msra.mxu0 %v3725_v19  ;;  %6823 = vst [vmem:[#allocation32_spill] sm:$0xff] %v3741_v15  ;;  %v3745_v19 = vld [vmem:[#allocation2 + $0x458] sm:$0xff] }
  0x73   :  { %774 = vmatpush2.msra.mxu1 %v3669_v45  ;;  %854 = vmatprep.subr.mxu0 %v3731_v23  ;;  %6825 = vst [vmem:[#allocation34_spill] sm:$0xff] %v3745_v19  ;;  %v3751_v23 = vld [vmem:[#allocation2 + $0x450] sm:$0xff] }
  0x74   :  { %775 = vmatprep.subr.mxu1 %v3675_v49  ;;  %855 = vmatpush2.msra.mxu0 %v3737_v11  ;;  %6827 = vst [vmem:[#allocation36_spill] sm:$0xff] %v3751_v23  ;;  %v3757_v11 = vld [vmem:[#allocation2 + $0x428] sm:$0xff] }
  0x75   :  { %776 = vmatpush2.msra.mxu1 %v3681_v53  ;;  %856 = vmatprep.subr.mxu0 %v3743_v7  ;;  %6829 = vst [vmem:[#allocation38_spill] sm:$0xff] %v3757_v11  ;;  %v3765_v7 = vld [vmem:[#allocation2 + $0x438] sm:$0xff] }
  0x76   :  { %777 = vmatprep.subr.mxu1 %v3687_v57  ;;  %857 = vmatpush2.msra.mxu0 %v3749_v3  ;;  %6832 = vst [vmem:[#allocation41_spill] sm:$0xff] %v3765_v7  ;;  %v3773_v3 = vld [vmem:[#allocation2 + $0x3f0] sm:$0xff] }
  0x77   :  { %778 = vmatpush2.msra.mxu1 %v3693_v61  ;;  %858 = vmatprep.subr.mxu0 %v3753_v63  ;;  %6835 = vst [vmem:[#allocation44_spill] sm:$0xff] %v3773_v3  ;;  %v3781_v63 = vld [vmem:[#allocation2 + $0x400] sm:$0xff] }
  0x78   :  { %779 = vmatprep.subr.mxu1 %v3699_v1  ;;  %859 = vmatpush2.msra.mxu0 %v3759_v59  ;;  %6838 = vst [vmem:[#allocation47_spill] sm:$0xff] %v3781_v63  ;;  %v3791_v59 = vld [vmem:[#allocation2 + $0x398] sm:$0xff] }
  0x79   :  { %780 = vmatpush2.msra.mxu1 %v3705_v5  ;;  %860 = vmatprep.subr.mxu0 %v3765_v7  ;;  %6841 = vst [vmem:[#allocation50_spill] sm:$0xff] %v3791_v59  ;;  %v3797_v7 = vld [vmem:[#allocation2 + $0x390] sm:$0xff] }
  0x7a   :  { %781 = vmatprep.subr.mxu1 %v3711_v9  ;;  %861 = vmatpush2.msra.mxu0 %v3769_v47  ;;  %6843 = vst [vmem:[#allocation52_spill] sm:$0xff] %v3797_v7  ;;  %v3803_v47 = vld [vmem:[#allocation2 + $0x368] sm:$0xff] }
  0x7b   :  { %782 = vmatpush2.msra.mxu1 %v3717_v13  ;;  %862 = vmatprep.subr.mxu0 %v3775_v43  ;;  %6845 = vst [vmem:[#allocation54_spill] sm:$0xff] %v3803_v47  ;;  %v3809_v43 = vld [vmem:[#allocation2 + $0x360] sm:$0xff] }
  0x7c   :  { %783 = vmatprep.subr.mxu1 %v3723_v17  ;;  %863 = vmatpush2.msra.mxu0 %v3781_v63  ;;  %6847 = vst [vmem:[#allocation56_spill] sm:$0xff] %v3809_v43  ;;  %v3815_v63 = vld [vmem:[#allocation2 + $0x338] sm:$0xff] }
  0x7d   :  { %784 = vmatpush2.msra.mxu1 %v3729_v21  ;;  %864 = vmatprep.subr.mxu0 %v3787_v36  ;;  %6849 = vst [vmem:[#allocation58_spill] sm:$0xff] %v3815_v63  ;;  %v3821_v36 = vld [vmem:[#allocation2 + $0x330] sm:$0xff] }
  0x7e   :  { %785 = vmatprep.subr.mxu1 %v3735_v26  ;;  %865 = vmatpush2.msra.mxu0 %v3793_v32  ;;  %6851 = vst [vmem:[#allocation60_spill] sm:$0xff] %v3821_v36  ;;  %v3827_v32 = vld [vmem:[#allocation2 + $0x308] sm:$0xff] }
  0x7f   :  { %786 = vmatpush2.msra.mxu1 %v3741_v15  ;;  %866 = vmatprep.subr.mxu0 %v3799_v28  ;;  %6853 = vst [vmem:[#allocation62_spill] sm:$0xff] %v3827_v32  ;;  %v3833_v28 = vld [vmem:[#allocation2 + $0x300] sm:$0xff] }
  0x80   :  { %787 = vmatprep.subr.mxu1 %v3745_v19  ;;  %6855 = vst [vmem:[#allocation64_spill] sm:$0xff] %v3833_v28 }
  0x81   :  { %788 = vmatpush2.msra.mxu1 %v3751_v23 }
  0x82   :  { %789 = vmatprep.subr.mxu1 %v3757_v11 }
  0x83   :  { %790 = vmatpush2.msra.mxu1 %v3761_v55 }
  0x84   :  { %791 = vmatprep.subr.mxu1 %v3767_v51 }
  0x85   :  { %792 = vmatpush2.msra.mxu1 %v3773_v3  ;;  %v3805_v3 = vld [vmem:[#allocation2 + $0x3a0] sm:$0xff] }
  0x86   :  { %793 = vmatprep.subr.mxu1 %v3779_v40  ;;  %6846 = vst [vmem:[#allocation55_spill] sm:$0xff] %v3805_v3  ;;  %v3811_v40 = vld [vmem:[#allocation2 + $0x378] sm:$0xff]  ;;  %867 = vmatpush2.msra.mxu0 %v3805_v3 }
  0x87   :  { %794 = vmatpush2.msra.mxu1 %v3785_v38  ;;  %6848 = vst [vmem:[#allocation57_spill] sm:$0xff] %v3811_v40  ;;  %v3817_v38 = vld [vmem:[#allocation2 + $0x370] sm:$0xff]  ;;  %868 = vmatprep.subr.mxu0 %v3811_v40  ;;  %v3845_v3 = vld [vmem:[#allocation2 + $0x2f8] sm:$0xff] }
  0x88   :  { %795 = vmatprep.subr.mxu1 %v3791_v59  ;;  %6850 = vst [vmem:[#allocation59_spill] sm:$0xff] %v3817_v38  ;;  %v3823_v59 = vld [vmem:[#allocation2 + $0x348] sm:$0xff]  ;;  %869 = vmatpush2.msra.mxu0 %v3817_v38  ;;  %v3843_v40 = vld [vmem:[#allocation2 + $0x310] sm:$0xff]  ;;  %6858 = vst [vmem:[#allocation67_spill] sm:$0xff] %v3845_v3  ;;  %v88_v38 = vlaneseq }
  0x89   :  { %796 = vmatpush2.msra.mxu1 %v3797_v7  ;;  %6852 = vst [vmem:[#allocation61_spill] sm:$0xff] %v3823_v59  ;;  %v3829_v7 = vld [vmem:[#allocation2 + $0x340] sm:$0xff]  ;;  %870 = vmatprep.subr.mxu0 %v3823_v59  ;;  %6857 = vst [vmem:[#allocation66_spill] sm:$0xff] %v3843_v40 }
  0x8a   :  { %797 = vmatprep.subr.mxu1 %v3803_v47  ;;  %6854 = vst [vmem:[#allocation63_spill] sm:$0xff] %v3829_v7  ;;  %v3835_v47 = vld [vmem:[#allocation2 + $0x318] sm:$0xff]  ;;  %871 = vmatpush2.msra.mxu0 %v3829_v7  ;;  %v3850_v59 = vshrl.u32 %v88_v38, 7  ;;  %v3856_v7 = vld [vmem:[%s6275_s3] sm:$0x3f] }
  0x8b   :  { %798 = vmatpush2.msra.mxu1 %v3809_v43  ;;  %6856 = vst [vmem:[#allocation65_spill] sm:$0xff] %v3835_v47  ;;  %872 = vmatprep.subr.mxu0 %v3835_v47 }
  0x8c   :  { %799 = vmatprep.subr.mxu1 %v3815_v63  ;;  %873 = vmatpush2.msra.mxu0 %v3843_v40  ;;  %v6333_v47 = vsub.s32 1, %v3850_v59  ;;  %v102_v55 = vsub.s32 3, %v3850_v59 }
  0x8d   :  { %800 = vmatpush2.msra.mxu1 %v3821_v36  ;;  %994 = vmatprep.subr.mxu0 %v3475_v25  ;;  %v98_v36 = vsub.s32 2, %v3850_v59 }
  0x8e   :  { %801 = vmatprep.subr.mxu1 %v3827_v32  ;;  %v6330_v32 = vsub.s32 0, %v3850_v59  ;;  %v3867_v25 = vrot.slane %v3856_v7, %v6333_v47 }
  0x8f   :  { %802 = vmatpush2.msra.mxu1 %v3833_v28  ;;  %v3877_v47 = vrot.slane %v3856_v7, %v98_v36 }
  0x90   :  { %881 = vmatprep.subr.mxu1 %v3845_v3  ;;  %v3862_v40 = vrot.slane %v3856_v7, %v6330_v32 }
  0xe6   :  { %v228_v38 = vpop.f32.mrf.mxu0 }
  0xe7   :  { %v229_v3 = vadd.f32 %v228_v38, %v3862_v40 }
  0xe8   :  { %v230_v28 = vpop.f32.mrf.mxu0 }
  0xe9   :  { %v2670_v63 = vmul.f32 -1.442695, %v229_v3  ;;  %v231_v43 = vadd.f32 %v230_v28, %v3867_v25  ;;  %v3883_v28 = vrot.slane %v3856_v7, %v102_v55 }
  0xea   :  { %v234_v51 = vpop.f32.mrf.mxu0  ;;  %v341_v19 = vpop.f32.mrf.mxu1 }
  0xeb   :  { %2745 = vpow2.f32 %v2670_v63  ;;  %v2671_v32 = vmul.f32 -1.442695, %v231_v43  ;;  %v3874_v11 = vadd.f32 %v234_v51, %v3862_v40  ;;  %6861 = vst [vmem:[#allocation70_spill] sm:$0xff] %v3883_v28  ;;  %v342_v51 = vadd.f32 %v341_v19, %v3877_v47 }
  0xec   :  { %v236_v23 = vpop.f32.mrf.mxu0  ;;  %v343_v43 = vpop.f32.mrf.mxu1 }
  0xed   :  { %6859 = vst [vmem:[#allocation68_spill] sm:$0xff] %v3874_v11  ;;  %2747 = vpow2.f32 %v2671_v32  ;;  %v3880_v38 = vadd.f32 %v236_v23, %v3867_v25  ;;  %v344_v32 = vadd.f32 %v343_v43, %v3883_v28  ;;  %v2672_v26 = vmul.f32 -1.442695, %v342_v51 }
  0xee   :  { %v240_v3 = vpop.f32.mrf.mxu0 }
  0xef   :  { %6860 = vst [vmem:[#allocation69_spill] sm:$0xff] %v3880_v38  ;;  %v3886_v15 = vadd.f32 %v240_v3, %v3862_v40  ;;  %v2673_v21 = vmul.f32 -1.442695, %v344_v32  ;;  %2749 = vpow2.f32 %v2672_v26 }
  0xf0   :  { %v242_v63 = vpop.f32.mrf.mxu0 }
  0xf1   :  { %6862 = vst [vmem:[#allocation71_spill] sm:$0xff] %v3886_v15  ;;  %v3890_v11 = vadd.f32 %v242_v63, %v3867_v25  ;;  %2751 = vpow2.f32 %v2673_v21 }
  0xf2   :  { %v246_v36 = vpop.f32.mrf.mxu0 }
  0xf3   :  { %6863 = vst [vmem:[#allocation72_spill] sm:$0xff] %v3890_v11  ;;  %v3894_v23 = vadd.f32 %v246_v36, %v3862_v40  ;;  %v3896_v55 = vpop.f32.mrf.mxu1 }
  0xf4   :  { %v248_v38 = vpop.f32.mrf.mxu0  ;;  %6865 = vst [vmem:[#allocation74_spill] sm:$0xff] %v3896_v55 }
  0xf5   :  { %6864 = vst [vmem:[#allocation73_spill] sm:$0xff] %v3894_v23  ;;  %v3899_v3 = vadd.f32 %v248_v38, %v3867_v25  ;;  %v3901_v17 = vpop.f32.mrf.mxu1 }
  0xf6   :  { %v252_v15 = vpop.f32.mrf.mxu0  ;;  %6867 = vst [vmem:[#allocation76_spill] sm:$0xff] %v3901_v17 }
  0xf7   :  { %6866 = vst [vmem:[#allocation75_spill] sm:$0xff] %v3899_v3  ;;  %v3904_v19 = vadd.f32 %v252_v15, %v3862_v40  ;;  %v353_v11 = vpop.f32.mrf.mxu1 }
  0xf8   :  { %v2746_v63 = vpop.eup %2745  ;;  %v254_v43 = vpop.f32.mrf.mxu0  ;;  %v3910_v51 = vadd.f32 %v353_v11, %v3877_v47 }
  0xf9   :  { %6868 = vst [vmem:[#allocation77_spill] sm:$0xff] %v3904_v19  ;;  %v711_v36 = vadd.f32 1.0, %v2746_v63  ;;  %v3907_v23 = vadd.f32 %v254_v43, %v3867_v25  ;;  %v355_v32 = vpop.f32.mrf.mxu1 }
  0xfa   :  { %6870 = vst [vmem:[#allocation79_spill] sm:$0xff] %v3910_v51  ;;  %v2748_v38 = vpop.eup %2747  ;;  %v258_v3 = vpop.f32.mrf.mxu0  ;;  %v3916_v26 = vadd.f32 %v355_v32, %v3883_v28 }
  0xfb   :  { %6869 = vst [vmem:[#allocation78_spill] sm:$0xff] %v3907_v23  ;;  %2753 = vrcp.f32 %v711_v36  ;;  %v712_v17 = vadd.f32 1.0, %v2748_v38  ;;  %v3913_v15 = vadd.f32 %v258_v3, %v3862_v40  ;;  %v359_v63 = vpop.f32.mrf.mxu1  ;;  %v106_v3 = vsub.s32 4, %v3850_v59 }
  0xfc   :  { %6872 = vst [vmem:[#allocation81_spill] sm:$0xff] %v3916_v26  ;;  %v260_v19 = vpop.f32.mrf.mxu0  ;;  %v3922_v11 = vadd.f32 %v359_v63, %v3877_v47  ;;  %v6882_v26 = vsub.s32 0, %v3850_v59 }
  0xfd   :  { %6871 = vst [vmem:[#allocation80_spill] sm:$0xff] %v3913_v15  ;;  %2755 = vrcp.f32 %v712_v17  ;;  %v3919_v43 = vadd.f32 %v260_v19, %v3867_v25  ;;  %v361_v23 = vpop.f32.mrf.mxu1 }
  0xfe   :  { %6874 = vst [vmem:[#allocation83_spill] sm:$0xff] %v3922_v11  ;;  %v264_v21 = vpop.f32.mrf.mxu0  ;;  %v3929_v38 = vadd.f32 %v361_v23, %v3883_v28  ;;  %v3944_v23 = vrot.slane %v3856_v7, %v106_v3 }
  0xff   :  { %6873 = vst [vmem:[#allocation82_spill] sm:$0xff] %v3919_v43  ;;  %v3925_v36 = vadd.f32 %v264_v21, %v3862_v40  ;;  %v365_v15 = vpop.f32.mrf.mxu1  ;;  %v693_v43 = vld [vmem:[%s6276_s4] sm:$0x3] }
 0x100   :  { %6876 = vst [vmem:[#allocation85_spill] sm:$0xff] %v3929_v38  ;;  %v266_v32 = vpop.f32.mrf.mxu0  ;;  %v3935_v19 = vadd.f32 %v365_v15, %v3877_v47  ;;  %v110_v38 = vsub.s32 5, %v3850_v59  ;;  %v3955_v51 = vrot.slane %v693_v43, %v6882_v26 }
 0x101   :  { %6875 = vst [vmem:[#allocation84_spill] sm:$0xff] %v3925_v36  ;;  %v3932_v17 = vadd.f32 %v266_v32, %v3867_v25  ;;  %v367_v21 = vpop.f32.mrf.mxu1 }
 0x102   :  { %6878 = vst [vmem:[#allocation87_spill] sm:$0xff] %v3935_v19  ;;  %v270_v63 = vpop.f32.mrf.mxu0  ;;  %v3948_v32 = vadd.f32 %v367_v21, %v3883_v28  ;;  %v2750_v19 = vpop.eup %2749  ;;  %v3962_v21 = vrot.slane %v3856_v7, %v110_v38 }
 0x103   :  { %6877 = vst [vmem:[#allocation86_spill] sm:$0xff] %v3932_v17  ;;  %v3941_v36 = vadd.f32 %v270_v63, %v3862_v40  ;;  %v371_v15 = vpop.f32.mrf.mxu1 }
 0x104   :  { %6880 = vst [vmem:[#allocation89_spill] sm:$0xff] %v3948_v32  ;;  %v272_v17 = vpop.f32.mrf.mxu0  ;;  %v3958_v40 = vadd.f32 %v371_v15, %v3877_v47  ;;  %6884 = vst [vmem:[#allocation92_spill] sm:$0xff] %v3962_v21  ;;  %v6885_v32 = vsub.s32 1, %v3850_v59 }
 0x105   :  { %6879 = vst [vmem:[#allocation88_spill] sm:$0xff] %v3941_v36  ;;  %v3951_v11 = vadd.f32 %v272_v17, %v3867_v25  ;;  %v373_v63 = vpop.f32.mrf.mxu1  ;;  %v2752_v36 = vpop.eup %2751  ;;  %v723_v17 = vadd.f32 1.0, %v2750_v19 }
 0x106   :  { %6883 = vst [vmem:[#allocation91_spill] sm:$0xff] %v3958_v40  ;;  %v454_v3 = vpop.f32.mrf.mxu0  ;;  %v3966_v13 = vrot.slane %v693_v43, %v6885_v32  ;;  %v3969_v25 = vadd.f32 %v373_v63, %v3883_v28  ;;  %v724_v5 = vadd.f32 1.0, %v2752_v36 }
 0x107   :  { %6881 = vst [vmem:[#allocation90_spill] sm:$0xff] %v3951_v11  ;;  %v455_v55 = vadd.f32 %v454_v3, %v3944_v23  ;;  %2757 = vrcp.f32 %v723_v17 }
 0x108   :  { %6886 = vst [vmem:[#allocation93_spill] sm:$0xff] %v3969_v25  ;;  %v2754_v26 = vpop.eup %2753  ;;  %v456_v11 = vpop.f32.mrf.mxu0 }
 0x109   :  { %v377_v15 = vpop.f32.mrf.mxu1  ;;  %v729_v40 = vmul.f32 %v2754_v26, %v3955_v51  ;;  %v457_v43 = vadd.f32 %v456_v11, %v3962_v21 }
 0x10a   :  { %v3973_v9 = vadd.f32 %v377_v15, %v3877_v47  ;;  %v2756_v3 = vpop.eup %2755  ;;  %v3975_v7 = vpop.f32.mrf.mxu0 }
 0x10b   :  { %v379_v38 = vpop.f32.mrf.mxu1  ;;  %v731_v59 = vadd.f32 %v729_v40, %v455_v55  ;;  %v730_v32 = vmul.f32 %v2756_v3, %v3966_v13 }
 0x10c   :  { %6887 = vst [vmem:[#allocation94_spill] sm:$0xff] %v3973_v9  ;;  %v3980_v63 = vadd.f32 %v379_v38, %v3883_v28  ;;  %v3982_v19 = vpop.f32.mrf.mxu0 }
 0x10d   :  { %v383_v26 = vpop.f32.mrf.mxu1  ;;  %2759 = vtanh.f32 %v731_v59  ;;  %v732_v15 = vadd.f32 %v730_v32, %v457_v43 }
 0x10e   :  { %6888 = vst [vmem:[#allocation95_spill] sm:$0xff] %v3980_v63  ;;  %v3985_v9 = vadd.f32 %v383_v26, %v3877_v47  ;;  %2761 = vrcp.f32 %v724_v5  ;;  %v466_v36 = vpop.f32.mrf.mxu0 }
 0x10f   :  { %2763 = vtanh.f32 %v732_v15  ;;  %v3988_v55 = vadd.f32 %v466_v36, %v3944_v23 }
 0x110   :  { %6889 = vst [vmem:[#allocation96_spill] sm:$0xff] %v3985_v9  ;;  %v468_v11 = vpop.f32.mrf.mxu0 }
 0x111   :  { %6890 = vst [vmem:[#allocation97_spill] sm:$0xff] %v3988_v55  ;;  %v3991_v40 = vadd.f32 %v468_v11, %v3962_v21 }
 0x112   :  { %v472_v3 = vpop.f32.mrf.mxu0 }
 0x113   :  { %6891 = vst [vmem:[#allocation98_spill] sm:$0xff] %v3991_v40  ;;  %v3994_v17 = vadd.f32 %v472_v3, %v3944_v23 }
 0x114   :  { %v474_v38 = vpop.f32.mrf.mxu0  ;;  %v2758_v26 = vpop.eup %2757 }
 0x115   :  { %6892 = vst [vmem:[#allocation99_spill] sm:$0xff] %v3994_v17  ;;  %v3997_v59 = vadd.f32 %v474_v38, %v3962_v21 }
 0x116   :  { %v478_v43 = vpop.f32.mrf.mxu0 }
 0x117   :  { %6893 = vst [vmem:[#allocation100_spill] sm:$0xff] %v3997_v59  ;;  %v4000_v5 = vadd.f32 %v478_v43, %v3944_v23 }
 0x118   :  { %v480_v32 = vpop.f32.mrf.mxu0 }
 0x119   :  { %6894 = vst [vmem:[#allocation101_spill] sm:$0xff] %v4000_v5  ;;  %v4003_v15 = vadd.f32 %v480_v32, %v3962_v21 }
 0x11a   :  { %v2760_v36 = vpop.eup %2759  ;;  %v484_v11 = vpop.f32.mrf.mxu0 }
 0x11b   :  { %6895 = vst [vmem:[#allocation102_spill] sm:$0xff] %v4003_v15  ;;  %v2762_v9 = vpop.eup %2761  ;;  %v4006_v63 = vadd.f32 %v484_v11, %v3944_v23  ;;  %v735_v25 = vmul.f32 %v2760_v36, %v2758_v26  ;;  %v4018_v15 = vld [vmem:[#allocation2 + $0x2f0] sm:$0xff]  ;;  %v4022_v26 = vld [vmem:[#allocation2 + $0x2c8] sm:$0xff] }
 0x11c   :  { %v2764_v3 = vpop.eup %2763  ;;  %v486_v17 = vpop.f32.mrf.mxu0 }
 0x11d   :  { %6896 = vst [vmem:[#allocation103_spill] sm:$0xff] %v4006_v63  ;;  %v736_v38 = vmul.f32 %v2764_v3, %v2762_v9  ;;  %v4009_v59 = vadd.f32 %v486_v17, %v3962_v21  ;;  %v4016_v32 = vsub.f32 %v2760_v36, %v735_v25  ;;  %v4029_v17 = vld [vmem:[#allocation2 + $0x2c0] sm:$0xff]  ;;  %v4033_v36 = vld [vmem:[#allocation2 + $0x298] sm:$0xff]  ;;  %v6920_v63 = vld [vmem:[#allocation30_spill] sm:$0xff] }
 0x11e   :  { %v490_v43 = vpop.f32.mrf.mxu0 }
 0x11f   :  { %6897 = vst [vmem:[#allocation104_spill] sm:$0xff] %v4009_v59  ;;  %v4011_v5 = vsub.f32 %v2764_v3, %v736_v38  ;;  %v4014_v40 = vadd.f32 %v490_v43, %v3944_v23  ;;  %v4043_v3 = vld [vmem:[#allocation2 + $0x268] sm:$0xff]  ;;  %v4047_v38 = vld [vmem:[#allocation2 + $0x260] sm:$0xff]  ;;  %v4051_v43 = vld [vmem:[#allocation2 + $0x238] sm:$0xff] }
 0x120   :  { %v492_v55 = vpop.f32.mrf.mxu0  ;;  %v6918_v59 = vld [vmem:[#allocation28_spill] sm:$0xff] }
 0x121   :  { %6898 = vst [vmem:[#allocation105_spill] sm:$0xff] %v4014_v40  ;;  %803 = vmatprep.mubr.f32.mxu1 %v4011_v5  ;;  %874 = vmatprep.mubr.f32.mxu0 %v4011_v5  ;;  %v4025_v9 = vadd.f32 %v492_v55, %v3962_v21  ;;  %v4039_v55 = vld [vmem:[#allocation2 + $0x290] sm:$0xff] }
 0x122   :  { %804 = vmatmul.mubr.f32.vlgmr.msra.gmra.mxu1 %v4016_v32  ;;  %875 = vmatmul.mubr.f32.vlgmr.msra.gmra.mxu0 %v4016_v32  ;;  %v496_v25 = vpop.f32.mrf.mxu0  ;;  %v6916_v40 = vld [vmem:[#allocation26_spill] sm:$0xff] }
 0x123   :  { %6899 = vst [vmem:[#allocation106_spill] sm:$0xff] %v4025_v9  ;;  %882 = vmatpush1.msra.mxu1 %v4018_v15  ;;  %945 = vmatprep.mubr.f32.mxu1 %v4011_v5  ;;  %v4036_v11 = vadd.f32 %v496_v25, %v3944_v23  ;;  %v6910_v25 = vld [vmem:[#allocation20_spill] sm:$0xff] }
 0x124   :  { %883 = vmatprep.subr.mxu1 %v4022_v26  ;;  %995 = vmatpush1.msra.mxu0 %v3490_v29  ;;  %v4055_v29 = vld [vmem:[#allocation2 + $0x230] sm:$0xff]  ;;  %v6914_v9 = vld [vmem:[#allocation24_spill] sm:$0xff] }
 0x125   :  { %6900 = vst [vmem:[#allocation107_spill] sm:$0xff] %v4036_v11  ;;  %884 = vmatpush1.msra.mxu1 %v4029_v17  ;;  %996 = vmatprep.subr.mxu0 %v3493_v31  ;;  %v4059_v31 = vld [vmem:[#allocation2 + $0x208] sm:$0xff]  ;;  %v6912_v11 = vld [vmem:[#allocation22_spill] sm:$0xff] }
 0x126   :  { %885 = vmatprep.subr.mxu1 %v4033_v36  ;;  %997 = vmatpush1.msra.mxu0 %v3499_v33  ;;  %v4063_v33 = vld [vmem:[#allocation2 + $0x200] sm:$0xff] }
 0x127   :  { %886 = vmatpush1.msra.mxu1 %v4039_v55  ;;  %998 = vmatprep.subr.mxu0 %v3502_v34  ;;  %v4067_v34 = vld [vmem:[#allocation2 + $0x1d8] sm:$0xff] }
 0x128   :  { %887 = vmatprep.subr.mxu1 %v4043_v3  ;;  %999 = vmatpush1.msra.mxu0 %v3561_v42  ;;  %v4071_v42 = vld [vmem:[#allocation2 + $0x1d0] sm:$0xff] }
 0x129   :  { %888 = vmatpush1.msra.mxu1 %v4047_v38  ;;  %1000 = vmatprep.subr.mxu0 %v3564_v44  ;;  %v4075_v44 = vld [vmem:[#allocation2 + $0x1a8] sm:$0xff] }
 0x12a   :  { %889 = vmatprep.subr.mxu1 %v4051_v43  ;;  %1001 = vmatpush1.msra.mxu0 %v3567_v46  ;;  %v4079_v46 = vld [vmem:[#allocation2 + $0x1a0] sm:$0xff] }
 0x12b   :  { %890 = vmatpush1.msra.mxu1 %v4055_v29  ;;  %1002 = vmatprep.subr.mxu0 %v3570_v48  ;;  %v4083_v48 = vld [vmem:[#allocation2 + $0x178] sm:$0xff] }
 0x12c   :  { %891 = vmatprep.subr.mxu1 %v4059_v31  ;;  %1003 = vmatpush1.msra.mxu0 %v3573_v50  ;;  %v4087_v50 = vld [vmem:[#allocation2 + $0x170] sm:$0xff] }
 0x12d   :  { %892 = vmatpush1.msra.mxu1 %v4063_v33  ;;  %1004 = vmatprep.subr.mxu0 %v3576_v52  ;;  %v4091_v52 = vld [vmem:[#allocation2 + $0x148] sm:$0xff] }
 0x12e   :  { %893 = vmatprep.subr.mxu1 %v4067_v34  ;;  %1005 = vmatpush1.msra.mxu0 %v3579_v54  ;;  %v4095_v54 = vld [vmem:[#allocation2 + $0x140] sm:$0xff] }
 0x12f   :  { %894 = vmatpush1.msra.mxu1 %v4071_v42  ;;  %1006 = vmatprep.subr.mxu0 %v3582_v56  ;;  %v4099_v56 = vld [vmem:[#allocation2 + $0x118] sm:$0xff] }
 0x130   :  { %895 = vmatprep.subr.mxu1 %v4075_v44  ;;  %1007 = vmatpush1.msra.mxu0 %v3585_v58  ;;  %v4103_v58 = vld [vmem:[#allocation2 + $0x110] sm:$0xff] }
 0x131   :  { %896 = vmatpush1.msra.mxu1 %v4079_v46  ;;  %1008 = vmatprep.subr.mxu0 %v3588_v60  ;;  %v4107_v60 = vld [vmem:[#allocation2 + $0xe8] sm:$0xff] }
 0x132   :  { %897 = vmatprep.subr.mxu1 %v4083_v48  ;;  %1009 = vmatpush1.msra.mxu0 %v3591_v62  ;;  %v4111_v62 = vld [vmem:[#allocation2 + $0xe0] sm:$0xff] }
 0x133   :  { %898 = vmatpush1.msra.mxu1 %v4087_v50  ;;  %1010 = vmatprep.subr.mxu0 %v3594_v0  ;;  %v4115_v0 = vld [vmem:[#allocation2 + $0xb8] sm:$0xff] }
 0x134   :  { %899 = vmatprep.subr.mxu1 %v4091_v52  ;;  %1011 = vmatpush1.msra.mxu0 %v3597_v2  ;;  %v4119_v2 = vld [vmem:[#allocation2 + $0xb0] sm:$0xff] }
 0x135   :  { %900 = vmatpush1.msra.mxu1 %v4095_v54  ;;  %1012 = vmatprep.subr.mxu0 %v3600_v4  ;;  %v4123_v4 = vld [vmem:[#allocation2 + $0x88] sm:$0xff] }
 0x136   :  { %901 = vmatprep.subr.mxu1 %v4099_v56  ;;  %1013 = vmatpush1.msra.mxu0 %v3603_v6  ;;  %v4127_v6 = vld [vmem:[#allocation2 + $0x80] sm:$0xff] }
 0x137   :  { %902 = vmatpush1.msra.mxu1 %v4103_v58  ;;  %1014 = vmatprep.subr.mxu0 %v3606_v8  ;;  %v4131_v8 = vld [vmem:[#allocation2 + $0x58] sm:$0xff] }
 0x138   :  { %903 = vmatprep.subr.mxu1 %v4107_v60  ;;  %1015 = vmatpush1.msra.mxu0 %v3609_v10  ;;  %v4135_v10 = vld [vmem:[#allocation2 + $0x50] sm:$0xff] }
 0x139   :  { %904 = vmatpush1.msra.mxu1 %v4111_v62  ;;  %1016 = vmatprep.subr.mxu0 %v3612_v12  ;;  %v4139_v12 = vld [vmem:[#allocation2 + $0x28] sm:$0xff] }
 0x13a   :  { %905 = vmatprep.subr.mxu1 %v4115_v0  ;;  %1017 = vmatpush1.msra.mxu0 %v3615_v14  ;;  %v4143_v14 = vld [vmem:[#allocation2 + $0x20] sm:$0xff] }
 0x13b   :  { %906 = vmatpush1.msra.mxu1 %v4119_v2  ;;  %1018 = vmatprep.subr.mxu0 %v3618_v16  ;;  %v4147_v16 = vld [vmem:[#allocation2 + $0x5f8] sm:$0xff] }
 0x13c   :  { %907 = vmatprep.subr.mxu1 %v4123_v4  ;;  %1019 = vmatpush1.msra.mxu0 %v3621_v18  ;;  %v4151_v18 = vld [vmem:[#allocation2 + $0x5f0] sm:$0xff] }
 0x13d   :  { %908 = vmatpush1.msra.mxu1 %v4127_v6  ;;  %1020 = vmatprep.subr.mxu0 %v3624_v20  ;;  %v4155_v20 = vld [vmem:[#allocation2 + $0x5c8] sm:$0xff] }
 0x13e   :  { %909 = vmatprep.subr.mxu1 %v4131_v8  ;;  %1021 = vmatpush1.msra.mxu0 %v3627_v22  ;;  %v4159_v22 = vld [vmem:[#allocation2 + $0x5c0] sm:$0xff] }
 0x13f   :  { %910 = vmatpush1.msra.mxu1 %v4135_v10  ;;  %1022 = vmatprep.subr.mxu0 %v3630_v24  ;;  %v4163_v24 = vld [vmem:[#allocation2 + $0x598] sm:$0xff] }
 0x140   :  { %911 = vmatprep.subr.mxu1 %v4139_v12  ;;  %1023 = vmatpush1.msra.mxu0 %v3633_v27  ;;  %v4167_v27 = vld [vmem:[#allocation2 + $0x590] sm:$0xff] }
 0x141   :  { %912 = vmatpush1.msra.mxu1 %v4143_v14  ;;  %1024 = vmatprep.subr.mxu0 %v3639_v30  ;;  %6901 = vst [vmem:[#allocation108_spill] sm:$0xff] %v4167_v27  ;;  %v4171_v30 = vld [vmem:[#allocation2 + $0x568] sm:$0xff] }
 0x142   :  { %913 = vmatprep.subr.mxu1 %v4147_v16  ;;  %1025 = vmatpush1.msra.mxu0 %v3645_v35  ;;  %6902 = vst [vmem:[#allocation109_spill] sm:$0xff] %v4171_v30  ;;  %v4175_v35 = vld [vmem:[#allocation2 + $0x560] sm:$0xff] }
 0x143   :  { %914 = vmatpush2.msra.mxu1 %v4151_v18  ;;  %1026 = vmatprep.subr.mxu0 %v3651_v37  ;;  %6903 = vst [vmem:[#allocation110_spill] sm:$0xff] %v4175_v35  ;;  %v4179_v37 = vld [vmem:[#allocation2 + $0x538] sm:$0xff] }
 0x144   :  { %915 = vmatprep.subr.mxu1 %v4155_v20  ;;  %1027 = vmatpush2.msra.mxu0 %v3657_v39  ;;  %6904 = vst [vmem:[#allocation111_spill] sm:$0xff] %v4179_v37  ;;  %v4183_v39 = vld [vmem:[#allocation2 + $0x530] sm:$0xff] }
 0x145   :  { %916 = vmatpush2.msra.mxu1 %v4159_v22  ;;  %1028 = vmatprep.subr.mxu0 %v3663_v41  ;;  %6905 = vst [vmem:[#allocation112_spill] sm:$0xff] %v4183_v39  ;;  %v4187_v41 = vld [vmem:[#allocation2 + $0x508] sm:$0xff] }
 0x146   :  { %917 = vmatprep.subr.mxu1 %v4163_v24  ;;  %1029 = vmatpush2.msra.mxu0 %v3669_v45  ;;  %6906 = vst [vmem:[#allocation113_spill] sm:$0xff] %v4187_v41  ;;  %v4191_v45 = vld [vmem:[#allocation2 + $0x500] sm:$0xff] }
 0x147   :  { %918 = vmatpush2.msra.mxu1 %v4167_v27  ;;  %1030 = vmatprep.subr.mxu0 %v3675_v49  ;;  %6907 = vst [vmem:[#allocation114_spill] sm:$0xff] %v4191_v45  ;;  %v4195_v49 = vld [vmem:[#allocation2 + $0x4d8] sm:$0xff] }
 0x148   :  { %919 = vmatprep.subr.mxu1 %v4171_v30  ;;  %1031 = vmatpush2.msra.mxu0 %v3681_v53  ;;  %6908 = vst [vmem:[#allocation115_spill] sm:$0xff] %v4195_v49  ;;  %v4199_v53 = vld [vmem:[#allocation2 + $0x4d0] sm:$0xff] }
 0x149   :  { %920 = vmatpush2.msra.mxu1 %v4175_v35  ;;  %1032 = vmatprep.subr.mxu0 %v3687_v57  ;;  %6909 = vst [vmem:[#allocation116_spill] sm:$0xff] %v4199_v53  ;;  %v4203_v57 = vld [vmem:[#allocation2 + $0x4a8] sm:$0xff] }
 0x14a   :  { %921 = vmatprep.subr.mxu1 %v4179_v37  ;;  %1033 = vmatpush2.msra.mxu0 %v3693_v61  ;;  %6911 = vst [vmem:[#allocation20_spill] sm:$0xff] %v4203_v57  ;;  %v4207_v61 = vld [vmem:[#allocation2 + $0x4a0] sm:$0xff] }
 0x14b   :  { %922 = vmatpush2.msra.mxu1 %v4183_v39  ;;  %1034 = vmatprep.subr.mxu0 %v3699_v1  ;;  %6913 = vst [vmem:[#allocation22_spill] sm:$0xff] %v4207_v61  ;;  %v4211_v1 = vld [vmem:[#allocation2 + $0x478] sm:$0xff] }
 0x14c   :  { %923 = vmatprep.subr.mxu1 %v4187_v41  ;;  %1035 = vmatpush2.msra.mxu0 %v6910_v25  ;;  %6915 = vst [vmem:[#allocation24_spill] sm:$0xff] %v4211_v1  ;;  %v4215_v25 = vld [vmem:[#allocation2 + $0x470] sm:$0xff] }
 0x14d   :  { %924 = vmatpush2.msra.mxu1 %v4191_v45  ;;  %1036 = vmatprep.subr.mxu0 %v6912_v11  ;;  %6917 = vst [vmem:[#allocation26_spill] sm:$0xff] %v4215_v25  ;;  %v4219_v11 = vld [vmem:[#allocation2 + $0x448] sm:$0xff] }
 0x14e   :  { %925 = vmatprep.subr.mxu1 %v4195_v49  ;;  %1037 = vmatpush2.msra.mxu0 %v6914_v9  ;;  %6919 = vst [vmem:[#allocation28_spill] sm:$0xff] %v4219_v11  ;;  %v4223_v9 = vld [vmem:[#allocation2 + $0x440] sm:$0xff]  ;;  %v6989_v49 = vld [vmem:[#allocation17_spill] sm:$0xff] }
 0x14f   :  { %926 = vmatpush2.msra.mxu1 %v4199_v53  ;;  %1038 = vmatprep.subr.mxu0 %v6916_v40  ;;  %6921 = vst [vmem:[#allocation30_spill] sm:$0xff] %v4223_v9  ;;  %v6922_v53 = vld [vmem:[#allocation32_spill] sm:$0xff]  ;;  %v4227_v40 = vld [vmem:[#allocation2 + $0x418] sm:$0xff]  ;;  %v7019_v45 = vld [vmem:[#allocation69_spill] sm:$0xff] }
 0x150   :  { %927 = vmatprep.subr.mxu1 %v4203_v57  ;;  %1039 = vmatpush2.msra.mxu0 %v6918_v59  ;;  %6923 = vst [vmem:[#allocation32_spill] sm:$0xff] %v4227_v40  ;;  %v6924_v57 = vld [vmem:[#allocation34_spill] sm:$0xff] }
 0x151   :  { %928 = vmatpush2.msra.mxu1 %v4207_v61  ;;  %1040 = vmatprep.subr.mxu0 %v6920_v63  ;;  %v4231_v59 = vld [vmem:[#allocation2 + $0x410] sm:$0xff]  ;;  %v6926_v61 = vld [vmem:[#allocation36_spill] sm:$0xff]  ;;  %v4235_v63 = vld [vmem:[#allocation2 + $0x3e8] sm:$0xff] }
 0x152   :  { %929 = vmatprep.subr.mxu1 %v4211_v1  ;;  %1041 = vmatpush2.msra.mxu0 %v6922_v53  ;;  %6925 = vst [vmem:[#allocation34_spill] sm:$0xff] %v4231_v59  ;;  %6927 = vst [vmem:[#allocation36_spill] sm:$0xff] %v4235_v63  ;;  %v6928_v1 = vld [vmem:[#allocation38_spill] sm:$0xff]  ;;  %v4239_v53 = vld [vmem:[#allocation2 + $0x3e0] sm:$0xff] }
 0x153   :  { %930 = vmatpush2.msra.mxu1 %v4215_v25  ;;  %1042 = vmatprep.subr.mxu0 %v6924_v57  ;;  %6929 = vst [vmem:[#allocation38_spill] sm:$0xff] %v4239_v53  ;;  %v6930_v25 = vld [vmem:[#allocation40_spill] sm:$0xff]  ;;  %v4243_v57 = vld [vmem:[#allocation2 + $0x3b8] sm:$0xff] }
 0x154   :  { %931 = vmatprep.subr.mxu1 %v4219_v11  ;;  %1043 = vmatpush2.msra.mxu0 %v6926_v61  ;;  %6931 = vst [vmem:[#allocation40_spill] sm:$0xff] %v4243_v57  ;;  %v6932_v11 = vld [vmem:[#allocation42_spill] sm:$0xff] }
 0x155   :  { %932 = vmatpush2.msra.mxu1 %v4223_v9  ;;  %1044 = vmatprep.subr.mxu0 %v6928_v1  ;;  %v4247_v61 = vld [vmem:[#allocation2 + $0x3b0] sm:$0xff]  ;;  %v6934_v9 = vld [vmem:[#allocation44_spill] sm:$0xff]  ;;  %v4251_v1 = vld [vmem:[#allocation2 + $0x388] sm:$0xff] }
 0x156   :  { %933 = vmatprep.subr.mxu1 %v4227_v40  ;;  %1045 = vmatpush2.msra.mxu0 %v6930_v25  ;;  %6933 = vst [vmem:[#allocation42_spill] sm:$0xff] %v4247_v61  ;;  %6935 = vst [vmem:[#allocation44_spill] sm:$0xff] %v4251_v1  ;;  %v6936_v40 = vld [vmem:[#allocation46_spill] sm:$0xff]  ;;  %v4255_v25 = vld [vmem:[#allocation2 + $0x380] sm:$0xff] }
 0x157   :  { %934 = vmatpush2.msra.mxu1 %v4231_v59  ;;  %1046 = vmatprep.subr.mxu0 %v6932_v11  ;;  %6937 = vst [vmem:[#allocation46_spill] sm:$0xff] %v4255_v25  ;;  %v6938_v59 = vld [vmem:[#allocation48_spill] sm:$0xff]  ;;  %v4259_v11 = vld [vmem:[#allocation2 + $0x358] sm:$0xff] }
 0x158   :  { %935 = vmatprep.subr.mxu1 %v4235_v63  ;;  %1047 = vmatpush2.msra.mxu0 %v6934_v9  ;;  %6939 = vst [vmem:[#allocation48_spill] sm:$0xff] %v4259_v11  ;;  %v6940_v63 = vld [vmem:[#allocation50_spill] sm:$0xff] }
 0x159   :  { %936 = vmatpush2.msra.mxu1 %v4239_v53  ;;  %1048 = vmatprep.subr.mxu0 %v6936_v40  ;;  %v4263_v9 = vld [vmem:[#allocation2 + $0x350] sm:$0xff]  ;;  %v6942_v53 = vld [vmem:[#allocation52_spill] sm:$0xff]  ;;  %v4267_v40 = vld [vmem:[#allocation2 + $0x328] sm:$0xff] }
 0x15a   :  { %937 = vmatprep.subr.mxu1 %v4243_v57  ;;  %1049 = vmatpush2.msra.mxu0 %v6938_v59  ;;  %6941 = vst [vmem:[#allocation50_spill] sm:$0xff] %v4263_v9  ;;  %6943 = vst [vmem:[#allocation52_spill] sm:$0xff] %v4267_v40  ;;  %v6944_v57 = vld [vmem:[#allocation54_spill] sm:$0xff]  ;;  %v4271_v59 = vld [vmem:[#allocation2 + $0x320] sm:$0xff] }
 0x15b   :  { %938 = vmatpush2.msra.mxu1 %v4247_v61  ;;  %1050 = vmatprep.subr.mxu0 %v6940_v63  ;;  %6945 = vst [vmem:[#allocation54_spill] sm:$0xff] %v4271_v59  ;;  %v6946_v61 = vld [vmem:[#allocation56_spill] sm:$0xff]  ;;  %v6947_v63 = vld [vmem:[#allocation58_spill] sm:$0xff] }
 0x15c   :  { %939 = vmatprep.subr.mxu1 %v4251_v1  ;;  %1051 = vmatpush2.msra.mxu0 %v6942_v53  ;;  %v6948_v1 = vld [vmem:[#allocation60_spill] sm:$0xff]  ;;  %v6949_v53 = vld [vmem:[#allocation62_spill] sm:$0xff] }
 0x15d   :  { %940 = vmatpush2.msra.mxu1 %v4255_v25  ;;  %1052 = vmatprep.subr.mxu0 %v6944_v57  ;;  %v4281_v57 = vld [vmem:[#allocation2 + $0x2e8] sm:$0xff]  ;;  %v6987_v25 = vld [vmem:[#allocation15_spill] sm:$0xff] }
 0x15e   :  { %941 = vmatprep.subr.mxu1 %v4259_v11  ;;  %1053 = vmatpush2.msra.mxu0 %v6946_v61  ;;  %6950 = vst [vmem:[#allocation56_spill] sm:$0xff] %v4281_v57  ;;  %v4284_v11 = vld [vmem:[#allocation2 + $0x2e0] sm:$0xff] }
 0x15f   :  { %942 = vmatpush2.msra.mxu1 %v4263_v9  ;;  %1054 = vmatprep.subr.mxu0 %v6947_v63  ;;  %6951 = vst [vmem:[#allocation58_spill] sm:$0xff] %v4284_v11  ;;  %v6952_v61 = vld [vmem:[#allocation64_spill] sm:$0xff]  ;;  %v4288_v63 = vld [vmem:[#allocation2 + $0x2b8] sm:$0xff]  ;;  %v6985_v9 = vld [vmem:[#allocation13_spill] sm:$0xff] }
 0x160   :  { %943 = vmatprep.subr.mxu1 %v4267_v40  ;;  %1055 = vmatpush2.msra.mxu0 %v6948_v1  ;;  %6953 = vst [vmem:[#allocation60_spill] sm:$0xff] %v4288_v63  ;;  %v6954_v1 = vld [vmem:[#allocation67_spill] sm:$0xff] }
 0x161   :  { %944 = vmatpush2.msra.mxu1 %v4271_v59  ;;  %1056 = vmatprep.subr.mxu0 %v6949_v53  ;;  %v4292_v59 = vld [vmem:[#allocation2 + $0x2b0] sm:$0xff]  ;;  %v4295_v53 = vld [vmem:[#allocation2 + $0x288] sm:$0xff]  ;;  %v6983_v40 = vld [vmem:[#allocation11_spill] sm:$0xff] }
 0x162   :  { %946 = vmatmul.mubr.f32.vlgmr.msra.gmra.mxu1 %v4016_v32  ;;  %1065 = vmatprep.subr.mxu1 %v4281_v57  ;;  %6955 = vst [vmem:[#allocation62_spill] sm:$0xff] %v4292_v59  ;;  %6956 = vst [vmem:[#allocation64_spill] sm:$0xff] %v4295_v53  ;;  %v4298_v57 = vld [vmem:[#allocation2 + $0x280] sm:$0xff] }
 0x163   :  { %1066 = vmatpush1.msra.mxu1 %v4284_v11  ;;  %1057 = vmatpush2.msra.mxu0 %v6952_v61  ;;  %6957 = vst [vmem:[#allocation67_spill] sm:$0xff] %v4298_v57  ;;  %v4301_v11 = vld [vmem:[#allocation2 + $0x258] sm:$0xff]  ;;  %v4304_v61 = vld [vmem:[#allocation2 + $0x250] sm:$0xff] }
 0x164   :  { %1067 = vmatprep.subr.mxu1 %v4288_v63  ;;  %1136 = vmatprep.subr.mxu0 %v6954_v1  ;;  %6958 = vst [vmem:[#allocation117_spill] sm:$0xff] %v4301_v11  ;;  %6959 = vst [vmem:[#allocation118_spill] sm:$0xff] %v4304_v61  ;;  %v4307_v1 = vld [vmem:[#allocation2 + $0x228] sm:$0xff] }
 0x165   :  { %1068 = vmatpush1.msra.mxu1 %v4292_v59  ;;  %6960 = vst [vmem:[#allocation119_spill] sm:$0xff] %v4307_v1  ;;  %v4310_v59 = vld [vmem:[#allocation2 + $0x220] sm:$0xff]  ;;  %v6981_v63 = vld [vmem:[#allocation9_spill] sm:$0xff] }
 0x166   :  { %1069 = vmatprep.subr.mxu1 %v4295_v53  ;;  %6961 = vst [vmem:[#allocation120_spill] sm:$0xff] %v4310_v59  ;;  %v4313_v53 = vld [vmem:[#allocation2 + $0x1f8] sm:$0xff] }
 0x167   :  { %1070 = vmatpush1.msra.mxu1 %v4298_v57  ;;  %6962 = vst [vmem:[#allocation121_spill] sm:$0xff] %v4313_v53  ;;  %v4316_v57 = vld [vmem:[#allocation2 + $0x1f0] sm:$0xff] }
 0x168   :  { %1071 = vmatprep.subr.mxu1 %v4301_v11  ;;  %6963 = vst [vmem:[#allocation122_spill] sm:$0xff] %v4316_v57  ;;  %v4319_v11 = vld [vmem:[#allocation2 + $0x1c8] sm:$0xff] }
 0x169   :  { %1072 = vmatpush1.msra.mxu1 %v4304_v61  ;;  %6964 = vst [vmem:[#allocation123_spill] sm:$0xff] %v4319_v11  ;;  %v4322_v61 = vld [vmem:[#allocation2 + $0x1c0] sm:$0xff] }
 0x16a   :  { %1073 = vmatprep.subr.mxu1 %v4307_v1  ;;  %6965 = vst [vmem:[#allocation124_spill] sm:$0xff] %v4322_v61  ;;  %v4325_v1 = vld [vmem:[#allocation2 + $0x198] sm:$0xff] }
 0x16b   :  { %1074 = vmatpush1.msra.mxu1 %v4310_v59  ;;  %6966 = vst [vmem:[#allocation125_spill] sm:$0xff] %v4325_v1  ;;  %v4328_v59 = vld [vmem:[#allocation2 + $0x190] sm:$0xff] }
 0x16c   :  { %1075 = vmatprep.subr.mxu1 %v4313_v53  ;;  %6967 = vst [vmem:[#allocation126_spill] sm:$0xff] %v4328_v59  ;;  %v4331_v53 = vld [vmem:[#allocation2 + $0x168] sm:$0xff] }
 0x16d   :  { %1076 = vmatpush1.msra.mxu1 %v4316_v57  ;;  %6968 = vst [vmem:[#allocation127_spill] sm:$0xff] %v4331_v53  ;;  %v4334_v57 = vld [vmem:[#allocation2 + $0x160] sm:$0xff] }
 0x16e   :  { %1077 = vmatprep.subr.mxu1 %v4319_v11  ;;  %6969 = vst [vmem:[#allocation128_spill] sm:$0xff] %v4334_v57  ;;  %v4337_v11 = vld [vmem:[#allocation2 + $0x138] sm:$0xff] }
 0x16f   :  { %1078 = vmatpush1.msra.mxu1 %v4322_v61  ;;  %6970 = vst [vmem:[#allocation129_spill] sm:$0xff] %v4337_v11  ;;  %v4340_v61 = vld [vmem:[#allocation2 + $0x130] sm:$0xff] }
 0x170   :  { %1079 = vmatprep.subr.mxu1 %v4325_v1  ;;  %6971 = vst [vmem:[#allocation130_spill] sm:$0xff] %v4340_v61  ;;  %v4343_v1 = vld [vmem:[#allocation2 + $0x108] sm:$0xff] }
 0x171   :  { %1080 = vmatpush1.msra.mxu1 %v4328_v59  ;;  %6972 = vst [vmem:[#allocation131_spill] sm:$0xff] %v4343_v1  ;;  %v4346_v59 = vld [vmem:[#allocation2 + $0x100] sm:$0xff] }
 0x172   :  { %1081 = vmatprep.subr.mxu1 %v4331_v53  ;;  %6973 = vst [vmem:[#allocation132_spill] sm:$0xff] %v4346_v59  ;;  %v4349_v53 = vld [vmem:[#allocation2 + $0xd8] sm:$0xff] }
 0x173   :  { %1082 = vmatpush1.msra.mxu1 %v4334_v57  ;;  %6974 = vst [vmem:[#allocation133_spill] sm:$0xff] %v4349_v53  ;;  %v4352_v57 = vld [vmem:[#allocation2 + $0xd0] sm:$0xff] }
 0x174   :  { %1083 = vmatprep.subr.mxu1 %v4337_v11  ;;  %6975 = vst [vmem:[#allocation134_spill] sm:$0xff] %v4352_v57  ;;  %v4355_v11 = vld [vmem:[#allocation2 + $0xa8] sm:$0xff] }
 0x175   :  { %1084 = vmatpush1.msra.mxu1 %v4340_v61  ;;  %6976 = vst [vmem:[#allocation135_spill] sm:$0xff] %v4355_v11  ;;  %v4358_v61 = vld [vmem:[#allocation2 + $0xa0] sm:$0xff] }
 0x176   :  { %1085 = vmatprep.subr.mxu1 %v4343_v1  ;;  %6977 = vst [vmem:[#allocation136_spill] sm:$0xff] %v4358_v61  ;;  %v4361_v1 = vld [vmem:[#allocation2 + $0x78] sm:$0xff] }
 0x177   :  { %1086 = vmatpush1.msra.mxu1 %v4346_v59  ;;  %6978 = vst [vmem:[#allocation137_spill] sm:$0xff] %v4361_v1  ;;  %v4364_v59 = vld [vmem:[#allocation2 + $0x70] sm:$0xff] }
 0x178   :  { %1087 = vmatprep.subr.mxu1 %v4349_v53  ;;  %6979 = vst [vmem:[#allocation138_spill] sm:$0xff] %v4364_v59  ;;  %v6980_v53 = vld [vmem:[#allocation8_spill] sm:$0xff] }
 0x179   :  { %1088 = vmatpush1.msra.mxu1 %v4352_v57  ;;  %v6982_v57 = vld [vmem:[#allocation10_spill] sm:$0xff] }
 0x17a   :  { %1089 = vmatprep.subr.mxu1 %v4355_v11  ;;  %v6984_v11 = vld [vmem:[#allocation12_spill] sm:$0xff] }
 0x17b   :  { %1090 = vmatpush1.msra.mxu1 %v4358_v61  ;;  %v6986_v61 = vld [vmem:[#allocation14_spill] sm:$0xff] }
 0x17c   :  { %1091 = vmatprep.subr.mxu1 %v4361_v1  ;;  %v6988_v1 = vld [vmem:[#allocation16_spill] sm:$0xff] }
 0x17d   :  { %1092 = vmatpush1.msra.mxu1 %v4364_v59  ;;  %v6990_v59 = vld [vmem:[#allocation18_spill] sm:$0xff] }
 0x17e   :  { %1093 = vmatprep.subr.mxu1 %v6980_v53  ;;  %v6991_v53 = vld [vmem:[#allocation19_spill] sm:$0xff] }
 0x17f   :  { %1094 = vmatpush1.msra.mxu1 %v6981_v63  ;;  %v6992_v63 = vld [vmem:[#allocation21_spill] sm:$0xff] }
 0x180   :  { %1095 = vmatprep.subr.mxu1 %v6982_v57  ;;  %v6993_v57 = vld [vmem:[#allocation23_spill] sm:$0xff] }
 0x181   :  { %1096 = vmatpush1.msra.mxu1 %v6983_v40  ;;  %v6994_v40 = vld [vmem:[#allocation25_spill] sm:$0xff] }
 0x182   :  { %1097 = vmatprep.subr.mxu1 %v6984_v11  ;;  %v6995_v11 = vld [vmem:[#allocation27_spill] sm:$0xff] }
 0x183   :  { %1098 = vmatpush2.msra.mxu1 %v6985_v9  ;;  %v6996_v9 = vld [vmem:[#allocation29_spill] sm:$0xff] }
 0x184   :  { %1099 = vmatprep.subr.mxu1 %v6986_v61  ;;  %v6997_v61 = vld [vmem:[#allocation31_spill] sm:$0xff] }
 0x185   :  { %1100 = vmatpush2.msra.mxu1 %v6987_v25  ;;  %v6998_v25 = vld [vmem:[#allocation33_spill] sm:$0xff] }
 0x186   :  { %1101 = vmatprep.subr.mxu1 %v6988_v1  ;;  %v6999_v1 = vld [vmem:[#allocation35_spill] sm:$0xff] }
 0x187   :  { %1102 = vmatpush2.msra.mxu1 %v6989_v49  ;;  %v7000_v49 = vld [vmem:[#allocation37_spill] sm:$0xff] }
 0x188   :  { %1103 = vmatprep.subr.mxu1 %v6990_v59  ;;  %v7001_v59 = vld [vmem:[#allocation39_spill] sm:$0xff] }
 0x189   :  { %1104 = vmatpush2.msra.mxu1 %v6991_v53  ;;  %v7002_v53 = vld [vmem:[#allocation41_spill] sm:$0xff] }
 0x18a   :  { %1105 = vmatprep.subr.mxu1 %v6992_v63  ;;  %v7003_v63 = vld [vmem:[#allocation43_spill] sm:$0xff] }
 0x18b   :  { %1106 = vmatpush2.msra.mxu1 %v6993_v57  ;;  %v7004_v57 = vld [vmem:[#allocation45_spill] sm:$0xff] }
 0x18c   :  { %1107 = vmatprep.subr.mxu1 %v6994_v40  ;;  %v7005_v40 = vld [vmem:[#allocation47_spill] sm:$0xff] }
 0x18d   :  { %1108 = vmatpush2.msra.mxu1 %v6995_v11  ;;  %v7006_v11 = vld [vmem:[#allocation49_spill] sm:$0xff] }
 0x18e   :  { %1109 = vmatprep.subr.mxu1 %v6996_v9  ;;  %v7007_v9 = vld [vmem:[#allocation51_spill] sm:$0xff] }
 0x18f   :  { %1110 = vmatpush2.msra.mxu1 %v6997_v61  ;;  %v7008_v61 = vld [vmem:[#allocation53_spill] sm:$0xff] }
 0x190   :  { %1111 = vmatprep.subr.mxu1 %v6998_v25  ;;  %v7009_v25 = vld [vmem:[#allocation55_spill] sm:$0xff] }
 0x191   :  { %1112 = vmatpush2.msra.mxu1 %v6999_v1  ;;  %v7010_v1 = vld [vmem:[#allocation57_spill] sm:$0xff] }
 0x192   :  { %1113 = vmatprep.subr.mxu1 %v7000_v49  ;;  %v7011_v49 = vld [vmem:[#allocation59_spill] sm:$0xff] }
 0x193   :  { %1114 = vmatpush2.msra.mxu1 %v7001_v59  ;;  %v7012_v59 = vld [vmem:[#allocation61_spill] sm:$0xff] }
 0x194   :  { %1115 = vmatprep.subr.mxu1 %v7002_v53  ;;  %v7013_v53 = vld [vmem:[#allocation63_spill] sm:$0xff] }
 0x195   :  { %1116 = vmatpush2.msra.mxu1 %v7003_v63  ;;  %v7014_v63 = vld [vmem:[#allocation65_spill] sm:$0xff] }
 0x196   :  { %1117 = vmatprep.subr.mxu1 %v7004_v57  ;;  %v7015_v57 = vld [vmem:[#allocation66_spill] sm:$0xff] }
 0x197   :  { %1118 = vmatpush2.msra.mxu1 %v7005_v40  ;;  %v4403_v40 = vld [vmem:[#allocation2 + $0x2d8] sm:$0xff] }
 0x198   :  { %1119 = vmatprep.subr.mxu1 %v7006_v11  ;;  %7016 = vst [vmem:[#allocation8_spill] sm:$0xff] %v4403_v40  ;;  %v4406_v11 = vpop.f32.mrf.mxu1 }
 0x199   :  { %1120 = vmatpush2.msra.mxu1 %v7007_v9  ;;  %7017 = vst [vmem:[#allocation9_spill] sm:$0xff] %v4406_v11 }
 0x19a   :  { %1121 = vmatprep.subr.mxu1 %v7008_v61 }
 0x19b   :  { %1122 = vmatpush2.msra.mxu1 %v7009_v25  ;;  %v7018_v25 = vld [vmem:[#allocation68_spill] sm:$0xff] }
 0x19c   :  { %1123 = vmatprep.subr.mxu1 %v7010_v1 }
 0x19d   :  { %1124 = vmatpush2.msra.mxu1 %v7011_v49 }
 0x19e   :  { %1125 = vmatprep.subr.mxu1 %v7012_v59 }
 0x19f   :  { %1126 = vmatpush2.msra.mxu1 %v7013_v53  ;;  %v4410_v53 = vpop.f32.mrf.mxu0 }
 0x1a0   :  { %1127 = vmatprep.subr.mxu1 %v7014_v63  ;;  %7020 = vst [vmem:[#allocation10_spill] sm:$0xff] %v4410_v53 }
 0x1a1   :  { %1128 = vmatpush2.msra.mxu1 %v7015_v57  ;;  %v7021_v57 = vld [vmem:[#allocation74_spill] sm:$0xff] }
 0x1a2   :  { %1249 = vmatprep.subr.mxu1 %v4403_v40  ;;  %v348_v39 = vadd.f32 %v7021_v57, %v3877_v47  ;;  %v7022_v40 = vld [vmem:[#allocation76_spill] sm:$0xff] }
 0x1a3   :  { %v350_v11 = vadd.f32 %v7022_v40, %v3883_v28  ;;  %v463_v40 = vadd.f32 %v3982_v19, %v3962_v21  ;;  %v4651_v21 = vld [vmem:[#allocation2 + $0x3c0] sm:$0xff]  ;;  %v4655_v28 = vld [vmem:[#allocation2 + $0x398] sm:$0xff] }
 0x1a4   :  { %7073 = vst [vmem:[#allocation63_spill] sm:$0xff] %v4651_v21  ;;  %7075 = vst [vmem:[#allocation65_spill] sm:$0xff] %v4655_v28 }
 0x1e2   :  { %v805_v9 = vpop.f32.mrf.mxu1  ;;  %v876_v63 = vpop.f32.mrf.mxu0 }
 0x1e3   :  { %v952_v1 = vadd.f32 %v805_v9, %v7018_v25  ;;  %v966_v35 = vadd.f32 %v876_v63, %v348_v39  ;;  %v461_v39 = vadd.f32 %v3975_v7, %v3944_v23 }
 0x1e4   :  { %v807_v61 = vpop.f32.mrf.mxu1  ;;  %v878_v37 = vpop.f32.mrf.mxu0 }
 0x1e5   :  { %v953_v49 = vadd.f32 %v807_v61, %v7019_v45  ;;  %v2674_v41 = vmul.f32 -1.442695, %v952_v1  ;;  %v967_v27 = vadd.f32 %v878_v37, %v350_v11  ;;  %v2676_v25 = vmul.f32 -1.442695, %v966_v35 }
 0x1e7   :  { %v2675_v59 = vmul.f32 -1.442695, %v953_v49  ;;  %2765 = vpow2.f32 %v2674_v41  ;;  %v2677_v61 = vmul.f32 -1.442695, %v967_v27 }
 0x1e9   :  { %2767 = vpow2.f32 %v2675_v59 }
 0x1ea   :  { %2769 = vpow2.f32 %v2676_v25 }
 0x1f4   :  { %v2766_v30 = vpop.eup %2765 }
 0x1f5   :  { %v960_v45 = vadd.f32 1.0, %v2766_v30 }
 0x1f6   :  { %v2768_v9 = vpop.eup %2767 }
 0x1f7   :  { %v961_v1 = vadd.f32 1.0, %v2768_v9  ;;  %2771 = vrcp.f32 %v960_v45  ;;  %v2770_v49 = vpop.eup %2769 }
 0x1f8   :  { %2773 = vpow2.f32 %v2677_v61  ;;  %v974_v27 = vadd.f32 1.0, %v2770_v49 }
 0x1f9   :  { %2775 = vrcp.f32 %v961_v1 }
 0x204   :  { %v2772_v59 = vpop.eup %2771 }
 0x205   :  { %v2774_v53 = vpop.eup %2773 }
 0x206   :  { %v2776_v30 = vpop.eup %2775  ;;  %v975_v9 = vadd.f32 1.0, %v2774_v53  ;;  %v4443_v53 = vld [vmem:[#allocation2 + $0x2a0] sm:$0xff] }
 0x222   :  { %v947_v41 = vpop.f32.mrf.mxu1 }
 0x223   :  { %v980_v47 = vadd.f32 %v947_v41, %v3955_v51 }
 0x224   :  { %v949_v57 = vpop.f32.mrf.mxu1 }
 0x225   :  { %v982_v37 = vmul.f32 %v2772_v59, %v980_v47  ;;  %v981_v35 = vadd.f32 %v949_v57, %v3966_v13  ;;  %v4575_v57 = vld [vmem:[#allocation2 + $0x578] sm:$0xff] }
 0x226   :  { %7035 = vst [vmem:[#allocation25_spill] sm:$0xff] %v4575_v57 }
 0x227   :  { %v984_v11 = vadd.f32 %v982_v37, %v461_v39  ;;  %v983_v63 = vmul.f32 %v2776_v30, %v981_v35  ;;  %v4579_v39 = vld [vmem:[#allocation2 + $0x570] sm:$0xff]  ;;  %v4583_v37 = vld [vmem:[#allocation2 + $0x548] sm:$0xff]  ;;  %v4587_v35 = vld [vmem:[#allocation2 + $0x540] sm:$0xff] }
 0x228   :  { %7037 = vst [vmem:[#allocation27_spill] sm:$0xff] %v4579_v39  ;;  %7039 = vst [vmem:[#allocation29_spill] sm:$0xff] %v4583_v37  ;;  %v7042_v30 = vld [vmem:[#allocation112_spill] sm:$0xff] }
 0x229   :  { %2777 = vtanh.f32 %v984_v11  ;;  %v985_v25 = vadd.f32 %v983_v63, %v463_v40  ;;  %7041 = vst [vmem:[#allocation31_spill] sm:$0xff] %v4587_v35  ;;  %v7044_v40 = vld [vmem:[#allocation113_spill] sm:$0xff]  ;;  %v4595_v11 = vld [vmem:[#allocation2 + $0x510] sm:$0xff] }
 0x22a   :  { %2779 = vrcp.f32 %v974_v27  ;;  %v4591_v27 = vld [vmem:[#allocation2 + $0x518] sm:$0xff]  ;;  %7045 = vst [vmem:[#allocation35_spill] sm:$0xff] %v4595_v11  ;;  %v7046_v63 = vld [vmem:[#allocation114_spill] sm:$0xff] }
 0x22b   :  { %2781 = vtanh.f32 %v985_v25  ;;  %7043 = vst [vmem:[#allocation33_spill] sm:$0xff] %v4591_v27  ;;  %v7048_v25 = vld [vmem:[#allocation115_spill] sm:$0xff] }
 0x22c   :  { %2783 = vrcp.f32 %v975_v9  ;;  %v4599_v9 = vld [vmem:[#allocation2 + $0x4e8] sm:$0xff] }
 0x22d   :  { %7047 = vst [vmem:[#allocation37_spill] sm:$0xff] %v4599_v9 }
 0x236   :  { %v2778_v45 = vpop.eup %2777 }
 0x237   :  { %v2780_v61 = vpop.eup %2779  ;;  %v988_v23 = vsub.f32 %v4016_v32, %v2778_v45  ;;  %v4439_v32 = vld [vmem:[#allocation2 + $0x2a8] sm:$0xff] }
 0x238   :  { %v2782_v7 = vpop.eup %2781 }
 0x239   :  { %v989_v1 = vsub.f32 %v4011_v5, %v2782_v7  ;;  %v990_v41 = vmul.f32 %v2780_v61, %v988_v23  ;;  %v2784_v49 = vpop.eup %2783  ;;  %v4435_v5 = vld [vmem:[#allocation2 + $0x2d0] sm:$0xff]  ;;  %v7050_v61 = vld [vmem:[#allocation116_spill] sm:$0xff]  ;;  %v4607_v23 = vld [vmem:[#allocation2 + $0x4b8] sm:$0xff] }
 0x23a   :  { %7051 = vst [vmem:[#allocation41_spill] sm:$0xff] %v4607_v23 }
 0x23b   :  { %v991_v47 = vmul.f32 %v2784_v49, %v989_v1  ;;  %v4424_v59 = vadd.f32 %v2778_v45, %v990_v41  ;;  %v4603_v45 = vld [vmem:[#allocation2 + $0x4e0] sm:$0xff]  ;;  %v4611_v1 = vld [vmem:[#allocation2 + $0x4b0] sm:$0xff]  ;;  %v4615_v49 = vld [vmem:[#allocation2 + $0x488] sm:$0xff] }
 0x23c   :  { %7049 = vst [vmem:[#allocation39_spill] sm:$0xff] %v4603_v45  ;;  %7053 = vst [vmem:[#allocation43_spill] sm:$0xff] %v4611_v1  ;;  %v7054_v41 = vld [vmem:[#allocation22_spill] sm:$0xff] }
 0x23d   :  { %v4426_v19 = vadd.f32 %v2782_v7, %v991_v47  ;;  %v7052_v7 = vld [vmem:[#allocation20_spill] sm:$0xff]  ;;  %7055 = vst [vmem:[#allocation45_spill] sm:$0xff] %v4615_v49 }
 0x23e   :  { %v7056_v47 = vld [vmem:[#allocation24_spill] sm:$0xff] }
 0x23f   :  { %1058 = vmatprep.mubr.f32.mxu0 %v4426_v19  ;;  %1129 = vmatprep.mubr.f32.mxu1 %v4426_v19 }
 0x240   :  { %1059 = vmatmul.mubr.f32.vlgmr.msra.gmra.mxu0 %v4424_v59  ;;  %1130 = vmatmul.mubr.f32.vlgmr.msra.gmra.mxu1 %v4424_v59 }
 0x241   :  { %1137 = vmatpush1.msra.mxu0 %v4018_v15  ;;  %1200 = vmatprep.mubr.f32.mxu0 %v4426_v19  ;;  %v4447_v15 = vld [vmem:[#allocation2 + $0x278] sm:$0xff] }
 0x242   :  { %1138 = vmatprep.subr.mxu0 %v4022_v26  ;;  %1250 = vmatpush1.msra.mxu1 %v4435_v5  ;;  %v4451_v26 = vld [vmem:[#allocation2 + $0x270] sm:$0xff] }
 0x243   :  { %1139 = vmatpush1.msra.mxu0 %v4029_v17  ;;  %1251 = vmatprep.subr.mxu1 %v4439_v32  ;;  %v4455_v17 = vld [vmem:[#allocation2 + $0x248] sm:$0xff] }
 0x244   :  { %1140 = vmatprep.subr.mxu0 %v4033_v36  ;;  %1252 = vmatpush1.msra.mxu1 %v4443_v53  ;;  %v4459_v36 = vld [vmem:[#allocation2 + $0x240] sm:$0xff] }
 0x245   :  { %1141 = vmatpush1.msra.mxu0 %v4039_v55  ;;  %1253 = vmatprep.subr.mxu1 %v4447_v15  ;;  %v4463_v55 = vld [vmem:[#allocation2 + $0x218] sm:$0xff] }
 0x246   :  { %1142 = vmatprep.subr.mxu0 %v4043_v3  ;;  %1254 = vmatpush1.msra.mxu1 %v4451_v26  ;;  %v4467_v3 = vld [vmem:[#allocation2 + $0x210] sm:$0xff] }
 0x247   :  { %1143 = vmatpush1.msra.mxu0 %v4047_v38  ;;  %1255 = vmatprep.subr.mxu1 %v4455_v17  ;;  %v4471_v38 = vld [vmem:[#allocation2 + $0x1e8] sm:$0xff] }
 0x248   :  { %1144 = vmatprep.subr.mxu0 %v4051_v43  ;;  %1256 = vmatpush1.msra.mxu1 %v4459_v36  ;;  %v4475_v43 = vld [vmem:[#allocation2 + $0x1e0] sm:$0xff] }
 0x249   :  { %1145 = vmatpush1.msra.mxu0 %v4055_v29  ;;  %1257 = vmatprep.subr.mxu1 %v4463_v55  ;;  %v4479_v29 = vld [vmem:[#allocation2 + $0x1b8] sm:$0xff] }
 0x24a   :  { %1146 = vmatprep.subr.mxu0 %v4059_v31  ;;  %1258 = vmatpush1.msra.mxu1 %v4467_v3  ;;  %v4483_v31 = vld [vmem:[#allocation2 + $0x1b0] sm:$0xff] }
 0x24b   :  { %1147 = vmatpush1.msra.mxu0 %v4063_v33  ;;  %1259 = vmatprep.subr.mxu1 %v4471_v38  ;;  %v4487_v33 = vld [vmem:[#allocation2 + $0x188] sm:$0xff] }
 0x24c   :  { %1148 = vmatprep.subr.mxu0 %v4067_v34  ;;  %1260 = vmatpush1.msra.mxu1 %v4475_v43  ;;  %v4491_v34 = vld [vmem:[#allocation2 + $0x180] sm:$0xff] }
 0x24d   :  { %1149 = vmatpush1.msra.mxu0 %v4071_v42  ;;  %1261 = vmatprep.subr.mxu1 %v4479_v29  ;;  %v4495_v42 = vld [vmem:[#allocation2 + $0x158] sm:$0xff] }
 0x24e   :  { %1150 = vmatprep.subr.mxu0 %v4075_v44  ;;  %1262 = vmatpush1.msra.mxu1 %v4483_v31  ;;  %v4499_v44 = vld [vmem:[#allocation2 + $0x150] sm:$0xff] }
 0x24f   :  { %1151 = vmatpush1.msra.mxu0 %v4079_v46  ;;  %1263 = vmatprep.subr.mxu1 %v4487_v33  ;;  %v4503_v46 = vld [vmem:[#allocation2 + $0x128] sm:$0xff] }
 0x250   :  { %1152 = vmatprep.subr.mxu0 %v4083_v48  ;;  %1264 = vmatpush1.msra.mxu1 %v4491_v34  ;;  %v4507_v48 = vld [vmem:[#allocation2 + $0x120] sm:$0xff] }
 0x251   :  { %1153 = vmatpush1.msra.mxu0 %v4087_v50  ;;  %1265 = vmatprep.subr.mxu1 %v4495_v42  ;;  %v4511_v50 = vld [vmem:[#allocation2 + $0xf8] sm:$0xff] }
 0x252   :  { %1154 = vmatprep.subr.mxu0 %v4091_v52  ;;  %1266 = vmatpush1.msra.mxu1 %v4499_v44  ;;  %v4515_v52 = vld [vmem:[#allocation2 + $0xf0] sm:$0xff] }
 0x253   :  { %1155 = vmatpush1.msra.mxu0 %v4095_v54  ;;  %1267 = vmatprep.subr.mxu1 %v4503_v46  ;;  %v4519_v54 = vld [vmem:[#allocation2 + $0xc8] sm:$0xff] }
 0x254   :  { %1156 = vmatprep.subr.mxu0 %v4099_v56  ;;  %1268 = vmatpush1.msra.mxu1 %v4507_v48  ;;  %v4523_v56 = vld [vmem:[#allocation2 + $0xc0] sm:$0xff] }
 0x255   :  { %1157 = vmatpush1.msra.mxu0 %v4103_v58  ;;  %1269 = vmatprep.subr.mxu1 %v4511_v50  ;;  %v4527_v58 = vld [vmem:[#allocation2 + $0x98] sm:$0xff] }
 0x256   :  { %1158 = vmatprep.subr.mxu0 %v4107_v60  ;;  %1270 = vmatpush1.msra.mxu1 %v4515_v52  ;;  %v4531_v60 = vld [vmem:[#allocation2 + $0x90] sm:$0xff] }
 0x257   :  { %1159 = vmatpush1.msra.mxu0 %v4111_v62  ;;  %1271 = vmatprep.subr.mxu1 %v4519_v54  ;;  %7023 = vst [vmem:[#allocation11_spill] sm:$0xff] %v4531_v60  ;;  %v4535_v62 = vld [vmem:[#allocation2 + $0x68] sm:$0xff] }
 0x258   :  { %1160 = vmatprep.subr.mxu0 %v4115_v0  ;;  %1272 = vmatpush1.msra.mxu1 %v4523_v56  ;;  %7024 = vst [vmem:[#allocation12_spill] sm:$0xff] %v4535_v62  ;;  %v4539_v0 = vld [vmem:[#allocation2 + $0x60] sm:$0xff] }
 0x259   :  { %1161 = vmatpush1.msra.mxu0 %v4119_v2  ;;  %1273 = vmatprep.subr.mxu1 %v4527_v58  ;;  %7025 = vst [vmem:[#allocation13_spill] sm:$0xff] %v4539_v0  ;;  %v4543_v2 = vld [vmem:[#allocation2 + $0x38] sm:$0xff] }
 0x25a   :  { %1162 = vmatprep.subr.mxu0 %v4123_v4  ;;  %1274 = vmatpush1.msra.mxu1 %v4531_v60  ;;  %7026 = vst [vmem:[#allocation14_spill] sm:$0xff] %v4543_v2  ;;  %v4547_v4 = vld [vmem:[#allocation2 + $0x30] sm:$0xff] }
 0x25b   :  { %1163 = vmatpush1.msra.mxu0 %v4127_v6  ;;  %1275 = vmatprep.subr.mxu1 %v4535_v62  ;;  %7027 = vst [vmem:[#allocation15_spill] sm:$0xff] %v4547_v4  ;;  %v4551_v6 = vld [vmem:[#allocation2 + $0x8] sm:$0xff] }
 0x25c   :  { %1164 = vmatprep.subr.mxu0 %v4131_v8  ;;  %1276 = vmatpush1.msra.mxu1 %v4539_v0  ;;  %7028 = vst [vmem:[#allocation16_spill] sm:$0xff] %v4551_v6  ;;  %v4555_v8 = vld [vmem:[#allocation2] sm:$0xff] }
 0x25d   :  { %1165 = vmatpush1.msra.mxu0 %v4135_v10  ;;  %1277 = vmatprep.subr.mxu1 %v4543_v2  ;;  %7029 = vst [vmem:[#allocation17_spill] sm:$0xff] %v4555_v8  ;;  %v4559_v10 = vld [vmem:[#allocation2 + $0x5d8] sm:$0xff] }
 0x25e   :  { %1166 = vmatprep.subr.mxu0 %v4139_v12  ;;  %1278 = vmatpush1.msra.mxu1 %v4547_v4  ;;  %7030 = vst [vmem:[#allocation18_spill] sm:$0xff] %v4559_v10  ;;  %v4563_v12 = vld [vmem:[#allocation2 + $0x5d0] sm:$0xff] }
 0x25f   :  { %1167 = vmatpush1.msra.mxu0 %v4143_v14  ;;  %1279 = vmatprep.subr.mxu1 %v4551_v6  ;;  %7031 = vst [vmem:[#allocation19_spill] sm:$0xff] %v4563_v12  ;;  %v4567_v14 = vld [vmem:[#allocation2 + $0x5a8] sm:$0xff] }
 0x260   :  { %1168 = vmatprep.subr.mxu0 %v4147_v16  ;;  %1280 = vmatpush1.msra.mxu1 %v4555_v8  ;;  %7032 = vst [vmem:[#allocation21_spill] sm:$0xff] %v4567_v14  ;;  %v4571_v16 = vld [vmem:[#allocation2 + $0x5a0] sm:$0xff] }
 0x261   :  { %1169 = vmatpush2.msra.mxu0 %v4151_v18  ;;  %1281 = vmatprep.subr.mxu1 %v4559_v10  ;;  %7033 = vst [vmem:[#allocation23_spill] sm:$0xff] %v4571_v16  ;;  %v7034_v18 = vld [vmem:[#allocation108_spill] sm:$0xff] }
 0x262   :  { %1170 = vmatprep.subr.mxu0 %v4155_v20  ;;  %1282 = vmatpush2.msra.mxu1 %v4563_v12  ;;  %v7036_v20 = vld [vmem:[#allocation109_spill] sm:$0xff] }
 0x263   :  { %1171 = vmatpush2.msra.mxu0 %v4159_v22  ;;  %1283 = vmatprep.subr.mxu1 %v4567_v14  ;;  %v7038_v22 = vld [vmem:[#allocation110_spill] sm:$0xff] }
 0x264   :  { %1172 = vmatprep.subr.mxu0 %v4163_v24  ;;  %1284 = vmatpush2.msra.mxu1 %v4571_v16  ;;  %v7040_v24 = vld [vmem:[#allocation111_spill] sm:$0xff] }
 0x265   :  { %1173 = vmatpush2.msra.mxu0 %v7034_v18  ;;  %1285 = vmatprep.subr.mxu1 %v4575_v57  ;;  %v4619_v18 = vld [vmem:[#allocation2 + $0x480] sm:$0xff] }
 0x266   :  { %1174 = vmatprep.subr.mxu0 %v7036_v20  ;;  %1286 = vmatpush2.msra.mxu1 %v4579_v39  ;;  %7057 = vst [vmem:[#allocation47_spill] sm:$0xff] %v4619_v18  ;;  %v7058_v20 = vld [vmem:[#allocation26_spill] sm:$0xff] }
 0x267   :  { %1175 = vmatpush2.msra.mxu0 %v7038_v22  ;;  %1287 = vmatprep.subr.mxu1 %v4583_v37  ;;  %v4623_v22 = vld [vmem:[#allocation2 + $0x458] sm:$0xff] }
 0x268   :  { %1176 = vmatprep.subr.mxu0 %v7040_v24  ;;  %1288 = vmatpush2.msra.mxu1 %v4587_v35  ;;  %7059 = vst [vmem:[#allocation49_spill] sm:$0xff] %v4623_v22  ;;  %v7060_v24 = vld [vmem:[#allocation28_spill] sm:$0xff] }
 0x269   :  { %1177 = vmatpush2.msra.mxu0 %v7042_v30  ;;  %1289 = vmatprep.subr.mxu1 %v4591_v27  ;;  %v4627_v30 = vld [vmem:[#allocation2 + $0x450] sm:$0xff] }
 0x26a   :  { %1178 = vmatprep.subr.mxu0 %v7044_v40  ;;  %1290 = vmatpush2.msra.mxu1 %v4595_v11  ;;  %7061 = vst [vmem:[#allocation51_spill] sm:$0xff] %v4627_v30  ;;  %v7062_v40 = vld [vmem:[#allocation30_spill] sm:$0xff] }
 0x26b   :  { %1179 = vmatpush2.msra.mxu0 %v7046_v63  ;;  %1291 = vmatprep.subr.mxu1 %v4599_v9  ;;  %v4631_v63 = vld [vmem:[#allocation2 + $0x428] sm:$0xff] }
 0x26c   :  { %1180 = vmatprep.subr.mxu0 %v7048_v25  ;;  %1292 = vmatpush2.msra.mxu1 %v4603_v45  ;;  %7063 = vst [vmem:[#allocation53_spill] sm:$0xff] %v4631_v63  ;;  %v7064_v25 = vld [vmem:[#allocation32_spill] sm:$0xff] }
 0x26d   :  { %1181 = vmatpush2.msra.mxu0 %v7050_v61  ;;  %1293 = vmatprep.subr.mxu1 %v4607_v23  ;;  %v4635_v61 = vld [vmem:[#allocation2 + $0x420] sm:$0xff] }
 0x26e   :  { %1182 = vmatprep.subr.mxu0 %v7052_v7  ;;  %1294 = vmatpush2.msra.mxu1 %v4611_v1  ;;  %7065 = vst [vmem:[#allocation55_spill] sm:$0xff] %v4635_v61  ;;  %v7066_v7 = vld [vmem:[#allocation34_spill] sm:$0xff]  ;;  %v7158_v1 = vld [vmem:[#allocation81_spill] sm:$0xff] }
 0x26f   :  { %1183 = vmatpush2.msra.mxu0 %v7054_v41  ;;  %1295 = vmatprep.subr.mxu1 %v4615_v49  ;;  %v4639_v41 = vld [vmem:[#allocation2 + $0x3f8] sm:$0xff] }
 0x270   :  { %1184 = vmatprep.subr.mxu0 %v7056_v47  ;;  %1296 = vmatpush2.msra.mxu1 %v4619_v18  ;;  %7067 = vst [vmem:[#allocation57_spill] sm:$0xff] %v4639_v41  ;;  %v7068_v47 = vld [vmem:[#allocation36_spill] sm:$0xff]  ;;  %v7157_v18 = vld [vmem:[#allocation79_spill] sm:$0xff] }
 0x271   :  { %1185 = vmatpush2.msra.mxu0 %v7058_v20  ;;  %1297 = vmatprep.subr.mxu1 %v4623_v22  ;;  %v4643_v20 = vld [vmem:[#allocation2 + $0x3f0] sm:$0xff] }
 0x272   :  { %1186 = vmatprep.subr.mxu0 %v7060_v24  ;;  %1298 = vmatpush2.msra.mxu1 %v4627_v30  ;;  %7069 = vst [vmem:[#allocation59_spill] sm:$0xff] %v4643_v20  ;;  %v7070_v24 = vld [vmem:[#allocation38_spill] sm:$0xff] }
 0x273   :  { %1187 = vmatpush2.msra.mxu0 %v7062_v40  ;;  %1299 = vmatprep.subr.mxu1 %v4631_v63  ;;  %v4647_v40 = vld [vmem:[#allocation2 + $0x3c8] sm:$0xff]  ;;  %v7102_v63 = vld [vmem:[#allocation123_spill] sm:$0xff] }
 0x274   :  { %1188 = vmatprep.subr.mxu0 %v7064_v25  ;;  %1300 = vmatpush2.msra.mxu1 %v4635_v61  ;;  %7071 = vst [vmem:[#allocation61_spill] sm:$0xff] %v4647_v40  ;;  %v7072_v25 = vld [vmem:[#allocation40_spill] sm:$0xff] }
 0x275   :  { %1189 = vmatpush2.msra.mxu0 %v7066_v7  ;;  %1301 = vmatprep.subr.mxu1 %v4639_v41  ;;  %v7074_v7 = vld [vmem:[#allocation42_spill] sm:$0xff]  ;;  %v7096_v41 = vld [vmem:[#allocation117_spill] sm:$0xff]  ;;  %v7099_v61 = vld [vmem:[#allocation120_spill] sm:$0xff] }
 0x276   :  { %1190 = vmatprep.subr.mxu0 %v7068_v47  ;;  %1302 = vmatpush2.msra.mxu1 %v4643_v20  ;;  %v7076_v47 = vld [vmem:[#allocation44_spill] sm:$0xff]  ;;  %v4659_v20 = vld [vmem:[#allocation2 + $0x390] sm:$0xff] }
 0x277   :  { %1191 = vmatpush2.msra.mxu0 %v7070_v24  ;;  %1303 = vmatprep.subr.mxu1 %v4647_v40  ;;  %7077 = vst [vmem:[#allocation66_spill] sm:$0xff] %v4659_v20  ;;  %v7078_v24 = vld [vmem:[#allocation46_spill] sm:$0xff]  ;;  %v4663_v40 = vld [vmem:[#allocation2 + $0x368] sm:$0xff] }
 0x278   :  { %1192 = vmatprep.subr.mxu0 %v7072_v25  ;;  %1304 = vmatpush2.msra.mxu1 %v4651_v21  ;;  %7079 = vst [vmem:[#allocation68_spill] sm:$0xff] %v4663_v40  ;;  %v7080_v25 = vld [vmem:[#allocation48_spill] sm:$0xff] }
 0x279   :  { %1193 = vmatpush2.msra.mxu0 %v7074_v7  ;;  %1305 = vmatprep.subr.mxu1 %v4655_v28  ;;  %v4667_v21 = vld [vmem:[#allocation2 + $0x360] sm:$0xff]  ;;  %v7082_v7 = vld [vmem:[#allocation50_spill] sm:$0xff]  ;;  %v4671_v28 = vld [vmem:[#allocation2 + $0x338] sm:$0xff] }
 0x27a   :  { %1194 = vmatprep.subr.mxu0 %v7076_v47  ;;  %1306 = vmatpush2.msra.mxu1 %v4659_v20  ;;  %7081 = vst [vmem:[#allocation69_spill] sm:$0xff] %v4667_v21  ;;  %7083 = vst [vmem:[#allocation74_spill] sm:$0xff] %v4671_v28  ;;  %v7084_v47 = vld [vmem:[#allocation52_spill] sm:$0xff]  ;;  %v4675_v20 = vld [vmem:[#allocation2 + $0x330] sm:$0xff] }
 0x27b   :  { %1195 = vmatpush2.msra.mxu0 %v7078_v24  ;;  %1307 = vmatprep.subr.mxu1 %v4663_v40  ;;  %7085 = vst [vmem:[#allocation76_spill] sm:$0xff] %v4675_v20  ;;  %v7086_v24 = vld [vmem:[#allocation54_spill] sm:$0xff]  ;;  %v4679_v40 = vld [vmem:[#allocation2 + $0x308] sm:$0xff] }
 0x27c   :  { %1196 = vmatprep.subr.mxu0 %v7080_v25  ;;  %1308 = vmatpush2.msra.mxu1 %v4667_v21  ;;  %7087 = vst [vmem:[#allocation108_spill] sm:$0xff] %v4679_v40  ;;  %v7088_v21 = vld [vmem:[#allocation56_spill] sm:$0xff] }
 0x27d   :  { %1197 = vmatpush2.msra.mxu0 %v7082_v7  ;;  %1309 = vmatprep.subr.mxu1 %v4671_v28  ;;  %v7089_v7 = vld [vmem:[#allocation58_spill] sm:$0xff]  ;;  %v4685_v25 = vld [vmem:[#allocation2 + $0x300] sm:$0xff]  ;;  %v4689_v28 = vld [vmem:[#allocation2 + $0x2f8] sm:$0xff] }
 0x27e   :  { %1198 = vmatprep.subr.mxu0 %v7084_v47  ;;  %1310 = vmatpush2.msra.mxu1 %v4675_v20  ;;  %7090 = vst [vmem:[#allocation109_spill] sm:$0xff] %v4685_v25  ;;  %v7091_v47 = vld [vmem:[#allocation60_spill] sm:$0xff]  ;;  %7092 = vst [vmem:[#allocation110_spill] sm:$0xff] %v4689_v28 }
 0x27f   :  { %1199 = vmatpush2.msra.mxu0 %v7086_v24  ;;  %1311 = vmatprep.subr.mxu1 %v4679_v40  ;;  %v7093_v24 = vld [vmem:[#allocation62_spill] sm:$0xff]  ;;  %v7094_v20 = vld [vmem:[#allocation64_spill] sm:$0xff]  ;;  %v7095_v40 = vld [vmem:[#allocation67_spill] sm:$0xff] }
 0x280   :  { %1201 = vmatmul.mubr.f32.vlgmr.msra.gmra.mxu0 %v4424_v59  ;;  %1320 = vmatprep.subr.mxu0 %v7088_v21  ;;  %v7097_v21 = vld [vmem:[#allocation118_spill] sm:$0xff] }
 0x281   :  { %1321 = vmatpush1.msra.mxu0 %v7089_v7  ;;  %1312 = vmatpush2.msra.mxu1 %v4685_v25  ;;  %v7098_v7 = vld [vmem:[#allocation119_spill] sm:$0xff]  ;;  %v7100_v25 = vld [vmem:[#allocation121_spill] sm:$0xff] }
 0x282   :  { %1322 = vmatprep.subr.mxu0 %v7091_v47  ;;  %1391 = vmatprep.subr.mxu1 %v4689_v28  ;;  %v7101_v47 = vld [vmem:[#allocation122_spill] sm:$0xff]  ;;  %v7103_v28 = vld [vmem:[#allocation124_spill] sm:$0xff] }
 0x283   :  { %1323 = vmatpush1.msra.mxu0 %v7093_v24  ;;  %v7104_v24 = vld [vmem:[#allocation125_spill] sm:$0xff] }
 0x284   :  { %1324 = vmatprep.subr.mxu0 %v7094_v20  ;;  %v7105_v20 = vld [vmem:[#allocation126_spill] sm:$0xff] }
 0x285   :  { %1325 = vmatpush1.msra.mxu0 %v7095_v40  ;;  %v7106_v40 = vld [vmem:[#allocation127_spill] sm:$0xff] }
 0x286   :  { %1326 = vmatprep.subr.mxu0 %v7096_v41  ;;  %v7107_v41 = vld [vmem:[#allocation128_spill] sm:$0xff] }
 0x287   :  { %1327 = vmatpush1.msra.mxu0 %v7097_v21  ;;  %v7108_v21 = vld [vmem:[#allocation129_spill] sm:$0xff] }
 0x288   :  { %1328 = vmatprep.subr.mxu0 %v7098_v7  ;;  %v7109_v7 = vld [vmem:[#allocation130_spill] sm:$0xff] }
 0x289   :  { %1329 = vmatpush1.msra.mxu0 %v7099_v61  ;;  %v7110_v61 = vld [vmem:[#allocation131_spill] sm:$0xff] }
 0x28a   :  { %1330 = vmatprep.subr.mxu0 %v7100_v25  ;;  %v7111_v25 = vld [vmem:[#allocation132_spill] sm:$0xff] }
 0x28b   :  { %1331 = vmatpush1.msra.mxu0 %v7101_v47  ;;  %v7112_v47 = vld [vmem:[#allocation133_spill] sm:$0xff] }
 0x28c   :  { %1332 = vmatprep.subr.mxu0 %v7102_v63  ;;  %v7113_v63 = vld [vmem:[#allocation134_spill] sm:$0xff] }
 0x28d   :  { %1333 = vmatpush1.msra.mxu0 %v7103_v28  ;;  %v7114_v28 = vld [vmem:[#allocation135_spill] sm:$0xff] }
 0x28e   :  { %1334 = vmatprep.subr.mxu0 %v7104_v24  ;;  %v7115_v24 = vld [vmem:[#allocation136_spill] sm:$0xff] }
 0x28f   :  { %1335 = vmatpush1.msra.mxu0 %v7105_v20  ;;  %v7116_v20 = vld [vmem:[#allocation137_spill] sm:$0xff] }
 0x290   :  { %1336 = vmatprep.subr.mxu0 %v7106_v40  ;;  %v7117_v40 = vld [vmem:[#allocation138_spill] sm:$0xff] }
 0x291   :  { %1337 = vmatpush1.msra.mxu0 %v7107_v41  ;;  %v4717_v41 = vld [vmem:[#allocation2 + $0x48] sm:$0xff] }
 0x292   :  { %1338 = vmatprep.subr.mxu0 %v7108_v21  ;;  %7118 = vst [vmem:[#allocation111_spill] sm:$0xff] %v4717_v41 }
 0x293   :  { %1339 = vmatpush1.msra.mxu0 %v7109_v7  ;;  %v4720_v7 = vld [vmem:[#allocation2 + $0x40] sm:$0xff] }
 0x294   :  { %1340 = vmatprep.subr.mxu0 %v7110_v61  ;;  %7119 = vst [vmem:[#allocation112_spill] sm:$0xff] %v4720_v7  ;;  %v7156_v61 = vld [vmem:[#allocation72_spill] sm:$0xff] }
 0x295   :  { %1341 = vmatpush1.msra.mxu0 %v7111_v25  ;;  %v4723_v25 = vld [vmem:[#allocation2 + $0x18] sm:$0xff] }
 0x296   :  { %1342 = vmatprep.subr.mxu0 %v7112_v47  ;;  %7120 = vst [vmem:[#allocation113_spill] sm:$0xff] %v4723_v25 }
 0x297   :  { %1343 = vmatpush1.msra.mxu0 %v7113_v63  ;;  %v4726_v63 = vld [vmem:[#allocation2 + $0x10] sm:$0xff] }
 0x298   :  { %1344 = vmatprep.subr.mxu0 %v7114_v28  ;;  %7121 = vst [vmem:[#allocation114_spill] sm:$0xff] %v4726_v63  ;;  %v7155_v28 = vld [vmem:[#allocation71_spill] sm:$0xff] }
 0x299   :  { %1345 = vmatpush1.msra.mxu0 %v7115_v24  ;;  %v4729_v24 = vld [vmem:[#allocation2 + $0x5e8] sm:$0xff] }
 0x29a   :  { %1346 = vmatprep.subr.mxu0 %v7116_v20  ;;  %7122 = vst [vmem:[#allocation115_spill] sm:$0xff] %v4729_v24 }
 0x29b   :  { %1347 = vmatpush1.msra.mxu0 %v7117_v40  ;;  %v4732_v40 = vld [vmem:[#allocation2 + $0x5e0] sm:$0xff] }
 0x29c   :  { %1348 = vmatprep.subr.mxu0 %v4717_v41  ;;  %7123 = vst [vmem:[#allocation116_spill] sm:$0xff] %v4732_v40  ;;  %v4735_v41 = vld [vmem:[#allocation2 + $0x5b8] sm:$0xff] }
 0x29d   :  { %1349 = vmatpush1.msra.mxu0 %v4720_v7  ;;  %7124 = vst [vmem:[#allocation20_spill] sm:$0xff] %v4735_v41  ;;  %v4738_v7 = vld [vmem:[#allocation2 + $0x5b0] sm:$0xff] }
 0x29e   :  { %1350 = vmatprep.subr.mxu0 %v4723_v25  ;;  %7125 = vst [vmem:[#allocation22_spill] sm:$0xff] %v4738_v7  ;;  %v4741_v25 = vld [vmem:[#allocation2 + $0x588] sm:$0xff] }
 0x29f   :  { %1351 = vmatpush1.msra.mxu0 %v4726_v63  ;;  %7126 = vst [vmem:[#allocation24_spill] sm:$0xff] %v4741_v25  ;;  %v4744_v63 = vld [vmem:[#allocation2 + $0x580] sm:$0xff] }
 0x2a0   :  { %1352 = vmatprep.subr.mxu0 %v4729_v24  ;;  %7127 = vst [vmem:[#allocation26_spill] sm:$0xff] %v4744_v63  ;;  %v4747_v24 = vld [vmem:[#allocation2 + $0x558] sm:$0xff] }
 0x2a1   :  { %1353 = vmatpush2.msra.mxu0 %v4732_v40  ;;  %7128 = vst [vmem:[#allocation28_spill] sm:$0xff] %v4747_v24  ;;  %v4750_v40 = vld [vmem:[#allocation2 + $0x550] sm:$0xff] }
 0x2a2   :  { %1354 = vmatprep.subr.mxu0 %v4735_v41  ;;  %7129 = vst [vmem:[#allocation30_spill] sm:$0xff] %v4750_v40  ;;  %v4753_v41 = vld [vmem:[#allocation2 + $0x528] sm:$0xff] }
 0x2a3   :  { %1355 = vmatpush2.msra.mxu0 %v4738_v7  ;;  %7130 = vst [vmem:[#allocation32_spill] sm:$0xff] %v4753_v41  ;;  %v4756_v7 = vld [vmem:[#allocation2 + $0x520] sm:$0xff] }
 0x2a4   :  { %1356 = vmatprep.subr.mxu0 %v4741_v25  ;;  %7131 = vst [vmem:[#allocation34_spill] sm:$0xff] %v4756_v7  ;;  %v4759_v25 = vld [vmem:[#allocation2 + $0x4f8] sm:$0xff] }
 0x2a5   :  { %1357 = vmatpush2.msra.mxu0 %v4744_v63  ;;  %7132 = vst [vmem:[#allocation36_spill] sm:$0xff] %v4759_v25  ;;  %v4762_v63 = vld [vmem:[#allocation2 + $0x4f0] sm:$0xff] }
 0x2a6   :  { %1358 = vmatprep.subr.mxu0 %v4747_v24  ;;  %7133 = vst [vmem:[#allocation38_spill] sm:$0xff] %v4762_v63  ;;  %v4765_v24 = vld [vmem:[#allocation2 + $0x4c8] sm:$0xff] }
 0x2a7   :  { %1359 = vmatpush2.msra.mxu0 %v4750_v40  ;;  %7134 = vst [vmem:[#allocation40_spill] sm:$0xff] %v4765_v24  ;;  %v4768_v40 = vld [vmem:[#allocation2 + $0x4c0] sm:$0xff] }
 0x2a8   :  { %1360 = vmatprep.subr.mxu0 %v4753_v41  ;;  %7135 = vst [vmem:[#allocation42_spill] sm:$0xff] %v4768_v40  ;;  %v4771_v41 = vld [vmem:[#allocation2 + $0x498] sm:$0xff] }
 0x2a9   :  { %1361 = vmatpush2.msra.mxu0 %v4756_v7  ;;  %7136 = vst [vmem:[#allocation44_spill] sm:$0xff] %v4771_v41  ;;  %v4774_v7 = vld [vmem:[#allocation2 + $0x490] sm:$0xff] }
 0x2aa   :  { %1362 = vmatprep.subr.mxu0 %v4759_v25  ;;  %7137 = vst [vmem:[#allocation46_spill] sm:$0xff] %v4774_v7  ;;  %v4777_v25 = vld [vmem:[#allocation2 + $0x468] sm:$0xff] }
 0x2ab   :  { %1363 = vmatpush2.msra.mxu0 %v4762_v63  ;;  %7138 = vst [vmem:[#allocation139_spill] sm:$0xff] %v4777_v25  ;;  %v4780_v63 = vld [vmem:[#allocation2 + $0x460] sm:$0xff] }
 0x2ac   :  { %1364 = vmatprep.subr.mxu0 %v4765_v24  ;;  %7139 = vst [vmem:[#allocation140_spill] sm:$0xff] %v4780_v63  ;;  %v4783_v24 = vld [vmem:[#allocation2 + $0x438] sm:$0xff] }
 0x2ad   :  { %1365 = vmatpush2.msra.mxu0 %v4768_v40  ;;  %7140 = vst [vmem:[#allocation141_spill] sm:$0xff] %v4783_v24  ;;  %v4786_v40 = vld [vmem:[#allocation2 + $0x430] sm:$0xff] }
 0x2ae   :  { %1366 = vmatprep.subr.mxu0 %v4771_v41  ;;  %7141 = vst [vmem:[#allocation142_spill] sm:$0xff] %v4786_v40  ;;  %v4789_v41 = vld [vmem:[#allocation2 + $0x408] sm:$0xff] }
 0x2af   :  { %1367 = vmatpush2.msra.mxu0 %v4774_v7  ;;  %7142 = vst [vmem:[#allocation143_spill] sm:$0xff] %v4789_v41  ;;  %v4792_v7 = vld [vmem:[#allocation2 + $0x400] sm:$0xff] }
 0x2b0   :  { %1368 = vmatprep.subr.mxu0 %v4777_v25  ;;  %7143 = vst [vmem:[#allocation144_spill] sm:$0xff] %v4792_v7  ;;  %v4795_v25 = vld [vmem:[#allocation2 + $0x3d8] sm:$0xff] }
 0x2b1   :  { %1369 = vmatpush2.msra.mxu0 %v4780_v63  ;;  %7144 = vst [vmem:[#allocation145_spill] sm:$0xff] %v4795_v25  ;;  %v4798_v63 = vld [vmem:[#allocation2 + $0x3d0] sm:$0xff] }
 0x2b2   :  { %1370 = vmatprep.subr.mxu0 %v4783_v24  ;;  %7145 = vst [vmem:[#allocation146_spill] sm:$0xff] %v4798_v63  ;;  %v4801_v24 = vld [vmem:[#allocation2 + $0x3a8] sm:$0xff] }
 0x2b3   :  { %1371 = vmatpush2.msra.mxu0 %v4786_v40  ;;  %7146 = vst [vmem:[#allocation147_spill] sm:$0xff] %v4801_v24  ;;  %v4804_v40 = vld [vmem:[#allocation2 + $0x3a0] sm:$0xff] }
 0x2b4   :  { %1372 = vmatprep.subr.mxu0 %v4789_v41  ;;  %7147 = vst [vmem:[#allocation148_spill] sm:$0xff] %v4804_v40  ;;  %v4807_v41 = vld [vmem:[#allocation2 + $0x378] sm:$0xff] }
 0x2b5   :  { %1373 = vmatpush2.msra.mxu0 %v4792_v7  ;;  %7148 = vst [vmem:[#allocation149_spill] sm:$0xff] %v4807_v41  ;;  %v4810_v7 = vld [vmem:[#allocation2 + $0x370] sm:$0xff] }
 0x2b6   :  { %1374 = vmatprep.subr.mxu0 %v4795_v25  ;;  %7149 = vst [vmem:[#allocation150_spill] sm:$0xff] %v4810_v7  ;;  %v4813_v25 = vld [vmem:[#allocation2 + $0x348] sm:$0xff] }
 0x2b7   :  { %1375 = vmatpush2.msra.mxu0 %v4798_v63  ;;  %7150 = vst [vmem:[#allocation151_spill] sm:$0xff] %v4813_v25  ;;  %v4816_v63 = vld [vmem:[#allocation2 + $0x340] sm:$0xff] }
 0x2b8   :  { %1376 = vmatprep.subr.mxu0 %v4801_v24  ;;  %7151 = vst [vmem:[#allocation152_spill] sm:$0xff] %v4816_v63  ;;  %v4819_v24 = vld [vmem:[#allocation2 + $0x318] sm:$0xff] }
 0x2b9   :  { %1377 = vmatpush2.msra.mxu0 %v4804_v40  ;;  %7152 = vst [vmem:[#allocation153_spill] sm:$0xff] %v4819_v24  ;;  %v4822_v40 = vld [vmem:[#allocation2 + $0x310] sm:$0xff] }
 0x2ba   :  { %1378 = vmatprep.subr.mxu0 %v4807_v41  ;;  %7153 = vst [vmem:[#allocation154_spill] sm:$0xff] %v4822_v40  ;;  %v7154_v41 = vld [vmem:[#allocation8_spill] sm:$0xff] }
 0x2bb   :  { %1379 = vmatpush2.msra.mxu0 %v4810_v7 }
 0x2bc   :  { %1380 = vmatprep.subr.mxu0 %v4813_v25 }
 0x2bd   :  { %1381 = vmatpush2.msra.mxu0 %v4816_v63 }
 0x2be   :  { %1382 = vmatprep.subr.mxu0 %v4819_v24 }
 0x2bf   :  { %1383 = vmatpush2.msra.mxu0 %v4822_v40 }
 0x2c0   :  { %1504 = vmatprep.subr.mxu0 %v7154_v41 }
 0x300   :  { %v1060_v20 = vpop.f32.mrf.mxu0  ;;  %v1131_v63 = vpop.f32.mrf.mxu1 }
 0x301   :  { %v1207_v47 = vadd.f32 %v1060_v20, %v7155_v28  ;;  %v1221_v24 = vadd.f32 %v1131_v63, %v7157_v18 }
 0x302   :  { %v1062_v7 = vpop.f32.mrf.mxu0  ;;  %v1133_v22 = vpop.f32.mrf.mxu1 }
 0x303   :  { %v1208_v25 = vadd.f32 %v1062_v7, %v7156_v61  ;;  %v2678_v21 = vmul.f32 -1.442695, %v1207_v47  ;;  %v1222_v23 = vadd.f32 %v1133_v22, %v7158_v1  ;;  %v2680_v45 = vmul.f32 -1.442695, %v1221_v24  ;;  %v7159_v7 = vld [vmem:[#allocation97_spill] sm:$0xff] }
 0x305   :  { %v2679_v30 = vmul.f32 -1.442695, %v1208_v25  ;;  %2785 = vpow2.f32 %v2678_v21  ;;  %v2681_v9 = vmul.f32 -1.442695, %v1222_v23 }
 0x307   :  { %2787 = vpow2.f32 %v2679_v30 }
 0x308   :  { %2789 = vpow2.f32 %v2680_v45  ;;  %v7160_v45 = vld [vmem:[#allocation98_spill] sm:$0xff] }
 0x312   :  { %v2786_v49 = vpop.eup %2785 }
 0x313   :  { %v1215_v41 = vadd.f32 1.0, %v2786_v49 }
 0x314   :  { %v2788_v40 = vpop.eup %2787 }
 0x315   :  { %v1216_v11 = vadd.f32 1.0, %v2788_v40  ;;  %2791 = vrcp.f32 %v1215_v41  ;;  %v2790_v61 = vpop.eup %2789 }
 0x316   :  { %2793 = vpow2.f32 %v2681_v9  ;;  %v1229_v22 = vadd.f32 1.0, %v2790_v61 }
 0x317   :  { %2795 = vrcp.f32 %v1216_v11 }
 0x322   :  { %v2792_v30 = vpop.eup %2791 }
 0x323   :  { %v2794_v25 = vpop.eup %2793 }
 0x324   :  { %v2796_v1 = vpop.eup %2795  ;;  %v1230_v40 = vadd.f32 1.0, %v2794_v25  ;;  %v4844_v25 = vld [vmem:[#allocation2 + $0x2f0] sm:$0xff] }
 0x340   :  { %v1202_v28 = vpop.f32.mrf.mxu0 }
 0x341   :  { %v1235_v21 = vadd.f32 %v1202_v28, %v3955_v51 }
 0x342   :  { %v1204_v20 = vpop.f32.mrf.mxu0 }
 0x343   :  { %v1237_v18 = vmul.f32 %v2792_v30, %v1235_v21  ;;  %v1236_v63 = vadd.f32 %v1204_v20, %v3966_v13 }
 0x345   :  { %v1239_v49 = vadd.f32 %v1237_v18, %v7159_v7  ;;  %v1238_v23 = vmul.f32 %v2796_v1, %v1236_v63  ;;  %v4856_v63 = vld [vmem:[#allocation2 + $0x298] sm:$0xff]  ;;  %v4860_v1 = vld [vmem:[#allocation2 + $0x290] sm:$0xff]  ;;  %v4868_v7 = vld [vmem:[#allocation2 + $0x260] sm:$0xff] }
 0x347   :  { %2797 = vtanh.f32 %v1239_v49  ;;  %v1240_v9 = vadd.f32 %v1238_v23, %v7160_v45  ;;  %v4872_v49 = vld [vmem:[#allocation2 + $0x238] sm:$0xff]  ;;  %v4876_v23 = vld [vmem:[#allocation2 + $0x230] sm:$0xff]  ;;  %v4884_v45 = vld [vmem:[#allocation2 + $0x200] sm:$0xff] }
 0x348   :  { %2799 = vrcp.f32 %v1229_v22  ;;  %v4864_v22 = vld [vmem:[#allocation2 + $0x268] sm:$0xff] }
 0x349   :  { %2801 = vtanh.f32 %v1240_v9  ;;  %v4888_v9 = vld [vmem:[#allocation2 + $0x1d8] sm:$0xff] }
 0x34a   :  { %2803 = vrcp.f32 %v1230_v40  ;;  %v4880_v40 = vld [vmem:[#allocation2 + $0x208] sm:$0xff] }
 0x354   :  { %v2798_v11 = vpop.eup %2797 }
 0x355   :  { %v2800_v41 = vpop.eup %2799  ;;  %v1243_v47 = vsub.f32 %v4424_v59, %v2798_v11  ;;  %v4848_v59 = vld [vmem:[#allocation2 + $0x2c8] sm:$0xff] }
 0x356   :  { %v2802_v24 = vpop.eup %2801 }
 0x357   :  { %v1244_v28 = vsub.f32 %v4426_v19, %v2802_v24  ;;  %v1245_v21 = vmul.f32 %v2800_v41, %v1243_v47  ;;  %v2804_v30 = vpop.eup %2803  ;;  %v4852_v19 = vld [vmem:[#allocation2 + $0x2c0] sm:$0xff]  ;;  %v4896_v41 = vld [vmem:[#allocation2 + $0x1a8] sm:$0xff] }
 0x358   :  { %v4900_v47 = vld [vmem:[#allocation2 + $0x1a0] sm:$0xff] }
 0x359   :  { %v1246_v61 = vmul.f32 %v2804_v30, %v1244_v28  ;;  %v4836_v20 = vadd.f32 %v2798_v11, %v1245_v21  ;;  %v4892_v11 = vld [vmem:[#allocation2 + $0x1d0] sm:$0xff]  ;;  %v4912_v21 = vld [vmem:[#allocation2 + $0x148] sm:$0xff]  ;;  %v4916_v30 = vld [vmem:[#allocation2 + $0x140] sm:$0xff] }
 0x35a   :  { %v4908_v28 = vld [vmem:[#allocation2 + $0x170] sm:$0xff]  ;;  %7162 = vst [vmem:[#allocation72_spill] sm:$0xff] %v4912_v21  ;;  %7163 = vst [vmem:[#allocation79_spill] sm:$0xff] %v4916_v30 }
 0x35b   :  { %v4838_v18 = vadd.f32 %v2802_v24, %v1246_v61  ;;  %v4904_v24 = vld [vmem:[#allocation2 + $0x178] sm:$0xff]  ;;  %7161 = vst [vmem:[#allocation71_spill] sm:$0xff] %v4908_v28 }
 0x35c   :  { %v4920_v61 = vld [vmem:[#allocation2 + $0x118] sm:$0xff] }
 0x35d   :  { %1313 = vmatprep.mubr.f32.mxu1 %v4838_v18  ;;  %1384 = vmatprep.mubr.f32.mxu0 %v4838_v18  ;;  %7164 = vst [vmem:[#allocation81_spill] sm:$0xff] %v4920_v61 }
 0x35e   :  { %1314 = vmatmul.mubr.f32.vlgmr.msra.gmra.mxu1 %v4836_v20  ;;  %1385 = vmatmul.mubr.f32.vlgmr.msra.gmra.mxu0 %v4836_v20 }
 0x35f   :  { %1392 = vmatpush1.msra.mxu1 %v4844_v25  ;;  %1455 = vmatprep.mubr.f32.mxu1 %v4838_v18 }
 0x360   :  { %1393 = vmatprep.subr.mxu1 %v4848_v59  ;;  %1505 = vmatpush1.msra.mxu0 %v4435_v5 }
 0x361   :  { %1394 = vmatpush1.msra.mxu1 %v4852_v19  ;;  %1506 = vmatprep.subr.mxu0 %v4439_v32 }
 0x362   :  { %1395 = vmatprep.subr.mxu1 %v4856_v63  ;;  %1507 = vmatpush1.msra.mxu0 %v4443_v53 }
 0x363   :  { %1396 = vmatpush1.msra.mxu1 %v4860_v1  ;;  %1508 = vmatprep.subr.mxu0 %v4447_v15 }
 0x364   :  { %1397 = vmatprep.subr.mxu1 %v4864_v22  ;;  %1509 = vmatpush1.msra.mxu0 %v4451_v26 }
 0x365   :  { %1398 = vmatpush1.msra.mxu1 %v4868_v7  ;;  %1510 = vmatprep.subr.mxu0 %v4455_v17 }
 0x366   :  { %1399 = vmatprep.subr.mxu1 %v4872_v49  ;;  %1511 = vmatpush1.msra.mxu0 %v4459_v36 }
 0x367   :  { %1400 = vmatpush1.msra.mxu1 %v4876_v23  ;;  %1512 = vmatprep.subr.mxu0 %v4463_v55 }
 0x368   :  { %1401 = vmatprep.subr.mxu1 %v4880_v40  ;;  %1513 = vmatpush1.msra.mxu0 %v4467_v3 }
 0x369   :  { %1402 = vmatpush1.msra.mxu1 %v4884_v45  ;;  %1514 = vmatprep.subr.mxu0 %v4471_v38 }
 0x36a   :  { %1403 = vmatprep.subr.mxu1 %v4888_v9  ;;  %1515 = vmatpush1.msra.mxu0 %v4475_v43 }
 0x36b   :  { %1404 = vmatpush1.msra.mxu1 %v4892_v11  ;;  %1516 = vmatprep.subr.mxu0 %v4479_v29 }
 0x36c   :  { %1405 = vmatprep.subr.mxu1 %v4896_v41  ;;  %1517 = vmatpush1.msra.mxu0 %v4483_v31 }
 0x36d   :  { %1406 = vmatpush1.msra.mxu1 %v4900_v47  ;;  %1518 = vmatprep.subr.mxu0 %v4487_v33 }
 0x36e   :  { %1407 = vmatprep.subr.mxu1 %v4904_v24  ;;  %1519 = vmatpush1.msra.mxu0 %v4491_v34 }
 0x36f   :  { %1408 = vmatpush1.msra.mxu1 %v4908_v28  ;;  %1520 = vmatprep.subr.mxu0 %v4495_v42  ;;  %v4924_v28 = vld [vmem:[#allocation2 + $0x110] sm:$0xff] }
 0x370   :  { %1409 = vmatprep.subr.mxu1 %v4912_v21  ;;  %1521 = vmatpush1.msra.mxu0 %v4499_v44  ;;  %7165 = vst [vmem:[#allocation97_spill] sm:$0xff] %v4924_v28  ;;  %v4928_v21 = vld [vmem:[#allocation2 + $0xe8] sm:$0xff] }
 0x371   :  { %1410 = vmatpush1.msra.mxu1 %v4916_v30  ;;  %1522 = vmatprep.subr.mxu0 %v4503_v46  ;;  %7166 = vst [vmem:[#allocation98_spill] sm:$0xff] %v4928_v21  ;;  %v4932_v30 = vld [vmem:[#allocation2 + $0xe0] sm:$0xff] }
 0x372   :  { %1411 = vmatprep.subr.mxu1 %v4920_v61  ;;  %1523 = vmatpush1.msra.mxu0 %v4507_v48  ;;  %7167 = vst [vmem:[#allocation155_spill] sm:$0xff] %v4932_v30  ;;  %v4936_v61 = vld [vmem:[#allocation2 + $0xb8] sm:$0xff] }
 0x373   :  { %1412 = vmatpush1.msra.mxu1 %v4924_v28  ;;  %1524 = vmatprep.subr.mxu0 %v4511_v50  ;;  %7168 = vst [vmem:[#allocation156_spill] sm:$0xff] %v4936_v61  ;;  %v4940_v28 = vld [vmem:[#allocation2 + $0xb0] sm:$0xff] }
 0x374   :  { %1413 = vmatprep.subr.mxu1 %v4928_v21  ;;  %1525 = vmatpush1.msra.mxu0 %v4515_v52  ;;  %7169 = vst [vmem:[#allocation157_spill] sm:$0xff] %v4940_v28  ;;  %v4944_v21 = vld [vmem:[#allocation2 + $0x88] sm:$0xff] }
 0x375   :  { %1414 = vmatpush1.msra.mxu1 %v4932_v30  ;;  %1526 = vmatprep.subr.mxu0 %v4519_v54  ;;  %7170 = vst [vmem:[#allocation158_spill] sm:$0xff] %v4944_v21  ;;  %v4948_v30 = vld [vmem:[#allocation2 + $0x80] sm:$0xff] }
 0x376   :  { %1415 = vmatprep.subr.mxu1 %v4936_v61  ;;  %1527 = vmatpush1.msra.mxu0 %v4523_v56  ;;  %7171 = vst [vmem:[#allocation159_spill] sm:$0xff] %v4948_v30  ;;  %v4952_v61 = vld [vmem:[#allocation2 + $0x58] sm:$0xff] }
 0x377   :  { %1416 = vmatpush1.msra.mxu1 %v4940_v28  ;;  %1528 = vmatprep.subr.mxu0 %v4527_v58  ;;  %7172 = vst [vmem:[#allocation160_spill] sm:$0xff] %v4952_v61  ;;  %v4956_v28 = vld [vmem:[#allocation2 + $0x50] sm:$0xff] }
 0x378   :  { %1417 = vmatprep.subr.mxu1 %v4944_v21  ;;  %1529 = vmatpush1.msra.mxu0 %v4531_v60  ;;  %7173 = vst [vmem:[#allocation161_spill] sm:$0xff] %v4956_v28  ;;  %v4960_v21 = vld [vmem:[#allocation2 + $0x28] sm:$0xff] }
 0x379   :  { %1418 = vmatpush1.msra.mxu1 %v4948_v30  ;;  %1530 = vmatprep.subr.mxu0 %v4535_v62  ;;  %7174 = vst [vmem:[#allocation162_spill] sm:$0xff] %v4960_v21  ;;  %v4964_v30 = vld [vmem:[#allocation2 + $0x20] sm:$0xff] }
 0x37a   :  { %1419 = vmatprep.subr.mxu1 %v4952_v61  ;;  %1531 = vmatpush1.msra.mxu0 %v4539_v0  ;;  %7175 = vst [vmem:[#allocation163_spill] sm:$0xff] %v4964_v30  ;;  %v4968_v61 = vld [vmem:[#allocation2 + $0x5f8] sm:$0xff] }
 0x37b   :  { %1420 = vmatpush1.msra.mxu1 %v4956_v28  ;;  %1532 = vmatprep.subr.mxu0 %v4543_v2  ;;  %7176 = vst [vmem:[#allocation164_spill] sm:$0xff] %v4968_v61  ;;  %v4972_v28 = vld [vmem:[#allocation2 + $0x5f0] sm:$0xff] }
 0x37c   :  { %1421 = vmatprep.subr.mxu1 %v4960_v21  ;;  %1533 = vmatpush1.msra.mxu0 %v4547_v4  ;;  %7177 = vst [vmem:[#allocation165_spill] sm:$0xff] %v4972_v28  ;;  %v4976_v21 = vld [vmem:[#allocation2 + $0x5c8] sm:$0xff] }
 0x37d   :  { %1422 = vmatpush1.msra.mxu1 %v4964_v30  ;;  %1534 = vmatprep.subr.mxu0 %v4551_v6  ;;  %7178 = vst [vmem:[#allocation166_spill] sm:$0xff] %v4976_v21  ;;  %v4980_v30 = vld [vmem:[#allocation2 + $0x5c0] sm:$0xff]  ;;  %v7299_v6 = vld [vmem:[#allocation83_spill] sm:$0xff] }
 0x37e   :  { %1423 = vmatprep.subr.mxu1 %v4968_v61  ;;  %1535 = vmatpush1.msra.mxu0 %v4555_v8  ;;  %7179 = vst [vmem:[#allocation167_spill] sm:$0xff] %v4980_v30  ;;  %v4984_v61 = vld [vmem:[#allocation2 + $0x598] sm:$0xff] }
 0x37f   :  { %1424 = vmatpush2.msra.mxu1 %v4972_v28  ;;  %1536 = vmatprep.subr.mxu0 %v4559_v10  ;;  %7180 = vst [vmem:[#allocation168_spill] sm:$0xff] %v4984_v61  ;;  %v4988_v28 = vld [vmem:[#allocation2 + $0x590] sm:$0xff]  ;;  %v7298_v10 = vld [vmem:[#allocation75_spill] sm:$0xff] }
 0x380   :  { %1425 = vmatprep.subr.mxu1 %v4976_v21  ;;  %1537 = vmatpush2.msra.mxu0 %v4563_v12  ;;  %7181 = vst [vmem:[#allocation169_spill] sm:$0xff] %v4988_v28  ;;  %v4992_v21 = vld [vmem:[#allocation2 + $0x568] sm:$0xff] }
 0x381   :  { %1426 = vmatpush2.msra.mxu1 %v4980_v30  ;;  %1538 = vmatprep.subr.mxu0 %v4567_v14  ;;  %7182 = vst [vmem:[#allocation170_spill] sm:$0xff] %v4992_v21  ;;  %v4996_v30 = vld [vmem:[#allocation2 + $0x560] sm:$0xff]  ;;  %v7240_v14 = vld [vmem:[#allocation119_spill] sm:$0xff]  ;;  %v7297_v12 = vld [vmem:[#allocation73_spill] sm:$0xff] }
 0x382   :  { %1427 = vmatprep.subr.mxu1 %v4984_v61  ;;  %1539 = vmatpush2.msra.mxu0 %v4571_v16  ;;  %7183 = vst [vmem:[#allocation171_spill] sm:$0xff] %v4996_v30  ;;  %v5000_v61 = vld [vmem:[#allocation2 + $0x538] sm:$0xff]  ;;  %v7227_v16 = vld [vmem:[#allocation76_spill] sm:$0xff] }
 0x383   :  { %1428 = vmatpush2.msra.mxu1 %v4988_v28  ;;  %1540 = vmatprep.subr.mxu0 %v4575_v57  ;;  %7184 = vst [vmem:[#allocation172_spill] sm:$0xff] %v5000_v61  ;;  %v5004_v28 = vld [vmem:[#allocation2 + $0x530] sm:$0xff] }
 0x384   :  { %1429 = vmatprep.subr.mxu1 %v4992_v21  ;;  %1541 = vmatpush2.msra.mxu0 %v4579_v39  ;;  %7185 = vst [vmem:[#allocation173_spill] sm:$0xff] %v5004_v28  ;;  %v5008_v21 = vld [vmem:[#allocation2 + $0x508] sm:$0xff]  ;;  %v7187_v39 = vld [vmem:[#allocation35_spill] sm:$0xff]  ;;  %v7224_v57 = vld [vmem:[#allocation50_spill] sm:$0xff] }
 0x385   :  { %1430 = vmatpush2.msra.mxu1 %v4996_v30  ;;  %1542 = vmatprep.subr.mxu0 %v4583_v37  ;;  %7186 = vst [vmem:[#allocation174_spill] sm:$0xff] %v5008_v21  ;;  %v5012_v30 = vld [vmem:[#allocation2 + $0x500] sm:$0xff]  ;;  %v7189_v37 = vld [vmem:[#allocation37_spill] sm:$0xff] }
 0x386   :  { %1431 = vmatprep.subr.mxu1 %v5000_v61  ;;  %1543 = vmatpush2.msra.mxu0 %v4587_v35  ;;  %7188 = vst [vmem:[#allocation175_spill] sm:$0xff] %v5012_v30  ;;  %v5016_v61 = vld [vmem:[#allocation2 + $0x4d8] sm:$0xff] }
 0x387   :  { %1432 = vmatpush2.msra.mxu1 %v5004_v28  ;;  %1544 = vmatprep.subr.mxu0 %v4591_v27  ;;  %7190 = vst [vmem:[#allocation176_spill] sm:$0xff] %v5016_v61  ;;  %v7191_v35 = vld [vmem:[#allocation39_spill] sm:$0xff]  ;;  %v5020_v28 = vld [vmem:[#allocation2 + $0x4d0] sm:$0xff]  ;;  %v7193_v27 = vld [vmem:[#allocation41_spill] sm:$0xff] }
 0x388   :  { %1433 = vmatprep.subr.mxu1 %v5008_v21  ;;  %1545 = vmatpush2.msra.mxu0 %v7187_v39  ;;  %7192 = vst [vmem:[#allocation177_spill] sm:$0xff] %v5020_v28  ;;  %v5024_v21 = vld [vmem:[#allocation2 + $0x4a8] sm:$0xff]  ;;  %v7195_v39 = vld [vmem:[#allocation43_spill] sm:$0xff] }
 0x389   :  { %1434 = vmatpush2.msra.mxu1 %v5012_v30  ;;  %1546 = vmatprep.subr.mxu0 %v7189_v37  ;;  %7194 = vst [vmem:[#allocation178_spill] sm:$0xff] %v5024_v21  ;;  %v5028_v30 = vld [vmem:[#allocation2 + $0x4a0] sm:$0xff]  ;;  %v7197_v37 = vld [vmem:[#allocation45_spill] sm:$0xff] }
 0x38a   :  { %1435 = vmatprep.subr.mxu1 %v5016_v61  ;;  %1547 = vmatpush2.msra.mxu0 %v7191_v35  ;;  %7196 = vst [vmem:[#allocation179_spill] sm:$0xff] %v5028_v30  ;;  %v5032_v61 = vld [vmem:[#allocation2 + $0x478] sm:$0xff] }
 0x38b   :  { %1436 = vmatpush2.msra.mxu1 %v5020_v28  ;;  %1548 = vmatprep.subr.mxu0 %v7193_v27  ;;  %7198 = vst [vmem:[#allocation180_spill] sm:$0xff] %v5032_v61  ;;  %v7199_v35 = vld [vmem:[#allocation47_spill] sm:$0xff]  ;;  %v5036_v28 = vld [vmem:[#allocation2 + $0x470] sm:$0xff]  ;;  %v7201_v27 = vld [vmem:[#allocation49_spill] sm:$0xff] }
 0x38c   :  { %1437 = vmatprep.subr.mxu1 %v5024_v21  ;;  %1549 = vmatpush2.msra.mxu0 %v7195_v39  ;;  %7200 = vst [vmem:[#allocation181_spill] sm:$0xff] %v5036_v28  ;;  %v5040_v21 = vld [vmem:[#allocation2 + $0x448] sm:$0xff]  ;;  %v7203_v39 = vld [vmem:[#allocation51_spill] sm:$0xff] }
 0x38d   :  { %1438 = vmatpush2.msra.mxu1 %v5028_v30  ;;  %1550 = vmatprep.subr.mxu0 %v7197_v37  ;;  %7202 = vst [vmem:[#allocation182_spill] sm:$0xff] %v5040_v21  ;;  %v5044_v30 = vld [vmem:[#allocation2 + $0x440] sm:$0xff]  ;;  %v7205_v37 = vld [vmem:[#allocation53_spill] sm:$0xff] }
 0x38e   :  { %1439 = vmatprep.subr.mxu1 %v5032_v61  ;;  %1551 = vmatpush2.msra.mxu0 %v7199_v35  ;;  %7204 = vst [vmem:[#allocation183_spill] sm:$0xff] %v5044_v30  ;;  %v5048_v61 = vld [vmem:[#allocation2 + $0x418] sm:$0xff] }
 0x38f   :  { %1440 = vmatpush2.msra.mxu1 %v5036_v28  ;;  %1552 = vmatprep.subr.mxu0 %v7201_v27  ;;  %7206 = vst [vmem:[#allocation184_spill] sm:$0xff] %v5048_v61  ;;  %v7207_v35 = vld [vmem:[#allocation55_spill] sm:$0xff]  ;;  %v5052_v28 = vld [vmem:[#allocation2 + $0x410] sm:$0xff]  ;;  %v7209_v27 = vld [vmem:[#allocation57_spill] sm:$0xff] }
 0x390   :  { %1441 = vmatprep.subr.mxu1 %v5040_v21  ;;  %1553 = vmatpush2.msra.mxu0 %v7203_v39  ;;  %7208 = vst [vmem:[#allocation185_spill] sm:$0xff] %v5052_v28  ;;  %v5056_v21 = vld [vmem:[#allocation2 + $0x3e8] sm:$0xff]  ;;  %v7211_v39 = vld [vmem:[#allocation59_spill] sm:$0xff] }
 0x391   :  { %1442 = vmatpush2.msra.mxu1 %v5044_v30  ;;  %1554 = vmatprep.subr.mxu0 %v7205_v37  ;;  %7210 = vst [vmem:[#allocation186_spill] sm:$0xff] %v5056_v21  ;;  %v5060_v30 = vld [vmem:[#allocation2 + $0x3e0] sm:$0xff]  ;;  %v7213_v37 = vld [vmem:[#allocation61_spill] sm:$0xff] }
 0x392   :  { %1443 = vmatprep.subr.mxu1 %v5048_v61  ;;  %1555 = vmatpush2.msra.mxu0 %v7207_v35  ;;  %7212 = vst [vmem:[#allocation187_spill] sm:$0xff] %v5060_v30  ;;  %v5064_v61 = vld [vmem:[#allocation2 + $0x3b8] sm:$0xff] }
 0x393   :  { %1444 = vmatpush2.msra.mxu1 %v5052_v28  ;;  %1556 = vmatprep.subr.mxu0 %v7209_v27  ;;  %7214 = vst [vmem:[#allocation188_spill] sm:$0xff] %v5064_v61  ;;  %v7215_v35 = vld [vmem:[#allocation63_spill] sm:$0xff]  ;;  %v5068_v28 = vld [vmem:[#allocation2 + $0x3b0] sm:$0xff]  ;;  %v7217_v27 = vld [vmem:[#allocation65_spill] sm:$0xff] }
 0x394   :  { %1445 = vmatprep.subr.mxu1 %v5056_v21  ;;  %1557 = vmatpush2.msra.mxu0 %v7211_v39  ;;  %7216 = vst [vmem:[#allocation189_spill] sm:$0xff] %v5068_v28  ;;  %v5072_v21 = vld [vmem:[#allocation2 + $0x388] sm:$0xff]  ;;  %v7219_v39 = vld [vmem:[#allocation66_spill] sm:$0xff] }
 0x395   :  { %1446 = vmatpush2.msra.mxu1 %v5060_v30  ;;  %1558 = vmatprep.subr.mxu0 %v7213_v37  ;;  %7218 = vst [vmem:[#allocation190_spill] sm:$0xff] %v5072_v21  ;;  %v5076_v30 = vld [vmem:[#allocation2 + $0x380] sm:$0xff] }
 0x396   :  { %1447 = vmatprep.subr.mxu1 %v5064_v61  ;;  %1559 = vmatpush2.msra.mxu0 %v7215_v35  ;;  %7220 = vst [vmem:[#allocation191_spill] sm:$0xff] %v5076_v30  ;;  %v7221_v37 = vld [vmem:[#allocation68_spill] sm:$0xff]  ;;  %v7223_v35 = vld [vmem:[#allocation69_spill] sm:$0xff] }
 0x397   :  { %1448 = vmatpush2.msra.mxu1 %v5068_v28  ;;  %1560 = vmatprep.subr.mxu0 %v7217_v27  ;;  %v7222_v61 = vld [vmem:[#allocation48_spill] sm:$0xff]  ;;  %v7225_v28 = vld [vmem:[#allocation74_spill] sm:$0xff] }
 0x398   :  { %1449 = vmatprep.subr.mxu1 %v5072_v21  ;;  %1561 = vmatpush2.msra.mxu0 %v7219_v39  ;;  %v7226_v27 = vld [vmem:[#allocation52_spill] sm:$0xff]  ;;  %v7228_v21 = vld [vmem:[#allocation54_spill] sm:$0xff] }
 0x399   :  { %1450 = vmatpush2.msra.mxu1 %v5076_v30  ;;  %1562 = vmatprep.subr.mxu0 %v7221_v37  ;;  %v7229_v39 = vld [vmem:[#allocation108_spill] sm:$0xff]  ;;  %v7231_v37 = vld [vmem:[#allocation58_spill] sm:$0xff] }
 0x39a   :  { %1451 = vmatprep.subr.mxu1 %v7222_v61  ;;  %1563 = vmatpush2.msra.mxu0 %v7223_v35  ;;  %v7230_v30 = vld [vmem:[#allocation56_spill] sm:$0xff]  ;;  %v7232_v61 = vld [vmem:[#allocation109_spill] sm:$0xff] }
 0x39b   :  { %1452 = vmatpush2.msra.mxu1 %v7224_v57  ;;  %1564 = vmatprep.subr.mxu0 %v7225_v28  ;;  %v7233_v35 = vld [vmem:[#allocation60_spill] sm:$0xff]  ;;  %v7234_v57 = vld [vmem:[#allocation110_spill] sm:$0xff] }
 0x39c   :  { %1453 = vmatprep.subr.mxu1 %v7226_v27  ;;  %1565 = vmatpush2.msra.mxu0 %v7227_v16  ;;  %v7235_v28 = vld [vmem:[#allocation62_spill] sm:$0xff]  ;;  %v7236_v27 = vld [vmem:[#allocation64_spill] sm:$0xff]  ;;  %v7237_v16 = vld [vmem:[#allocation67_spill] sm:$0xff] }
 0x39d   :  { %1454 = vmatpush2.msra.mxu1 %v7228_v21  ;;  %1566 = vmatprep.subr.mxu0 %v7229_v39  ;;  %v7238_v21 = vld [vmem:[#allocation117_spill] sm:$0xff]  ;;  %v7239_v39 = vld [vmem:[#allocation118_spill] sm:$0xff] }
 0x39e   :  { %1456 = vmatmul.mubr.f32.vlgmr.msra.gmra.mxu1 %v4836_v20  ;;  %1575 = vmatprep.subr.mxu1 %v7230_v30  ;;  %v7241_v30 = vld [vmem:[#allocation120_spill] sm:$0xff] }
 0x39f   :  { %1576 = vmatpush1.msra.mxu1 %v7231_v37  ;;  %1567 = vmatpush2.msra.mxu0 %v7232_v61  ;;  %v7242_v37 = vld [vmem:[#allocation121_spill] sm:$0xff]  ;;  %v7243_v61 = vld [vmem:[#allocation122_spill] sm:$0xff] }
 0x3a0   :  { %1577 = vmatprep.subr.mxu1 %v7233_v35  ;;  %1646 = vmatprep.subr.mxu0 %v7234_v57  ;;  %v7244_v35 = vld [vmem:[#allocation123_spill] sm:$0xff]  ;;  %v7245_v57 = vld [vmem:[#allocation124_spill] sm:$0xff] }
 0x3a1   :  { %1578 = vmatpush1.msra.mxu1 %v7235_v28  ;;  %v7246_v28 = vld [vmem:[#allocation125_spill] sm:$0xff] }
 0x3a2   :  { %1579 = vmatprep.subr.mxu1 %v7236_v27  ;;  %v7247_v27 = vld [vmem:[#allocation126_spill] sm:$0xff] }
 0x3a3   :  { %1580 = vmatpush1.msra.mxu1 %v7237_v16  ;;  %v7248_v16 = vld [vmem:[#allocation127_spill] sm:$0xff] }
 0x3a4   :  { %1581 = vmatprep.subr.mxu1 %v7238_v21  ;;  %v7249_v21 = vld [vmem:[#allocation128_spill] sm:$0xff] }
 0x3a5   :  { %1582 = vmatpush1.msra.mxu1 %v7239_v39  ;;  %v7250_v39 = vld [vmem:[#allocation129_spill] sm:$0xff] }
 0x3a6   :  { %1583 = vmatprep.subr.mxu1 %v7240_v14  ;;  %v7251_v14 = vld [vmem:[#allocation130_spill] sm:$0xff] }
 0x3a7   :  { %1584 = vmatpush1.msra.mxu1 %v7241_v30  ;;  %v7252_v30 = vld [vmem:[#allocation131_spill] sm:$0xff] }
 0x3a8   :  { %1585 = vmatprep.subr.mxu1 %v7242_v37  ;;  %v7253_v37 = vld [vmem:[#allocation132_spill] sm:$0xff] }
 0x3a9   :  { %1586 = vmatpush1.msra.mxu1 %v7243_v61  ;;  %v7254_v61 = vld [vmem:[#allocation133_spill] sm:$0xff] }
 0x3aa   :  { %1587 = vmatprep.subr.mxu1 %v7244_v35  ;;  %v7255_v35 = vld [vmem:[#allocation134_spill] sm:$0xff] }
 0x3ab   :  { %1588 = vmatpush1.msra.mxu1 %v7245_v57  ;;  %v7256_v57 = vld [vmem:[#allocation135_spill] sm:$0xff] }
 0x3ac   :  { %1589 = vmatprep.subr.mxu1 %v7246_v28  ;;  %v7257_v28 = vld [vmem:[#allocation136_spill] sm:$0xff] }
 0x3ad   :  { %1590 = vmatpush1.msra.mxu1 %v7247_v27  ;;  %v7258_v27 = vld [vmem:[#allocation137_spill] sm:$0xff] }
 0x3ae   :  { %1591 = vmatprep.subr.mxu1 %v7248_v16  ;;  %v7259_v16 = vld [vmem:[#allocation138_spill] sm:$0xff] }
 0x3af   :  { %1592 = vmatpush1.msra.mxu1 %v7249_v21  ;;  %v7260_v21 = vld [vmem:[#allocation111_spill] sm:$0xff] }
 0x3b0   :  { %1593 = vmatprep.subr.mxu1 %v7250_v39  ;;  %v7261_v39 = vld [vmem:[#allocation112_spill] sm:$0xff] }
 0x3b1   :  { %1594 = vmatpush1.msra.mxu1 %v7251_v14  ;;  %v7262_v14 = vld [vmem:[#allocation113_spill] sm:$0xff] }
 0x3b2   :  { %1595 = vmatprep.subr.mxu1 %v7252_v30  ;;  %v7263_v30 = vld [vmem:[#allocation114_spill] sm:$0xff] }
 0x3b3   :  { %1596 = vmatpush1.msra.mxu1 %v7253_v37  ;;  %v7264_v37 = vld [vmem:[#allocation115_spill] sm:$0xff] }
 0x3b4   :  { %1597 = vmatprep.subr.mxu1 %v7254_v61  ;;  %v7265_v61 = vld [vmem:[#allocation116_spill] sm:$0xff] }
 0x3b5   :  { %1598 = vmatpush1.msra.mxu1 %v7255_v35  ;;  %v7266_v35 = vld [vmem:[#allocation20_spill] sm:$0xff] }
 0x3b6   :  { %1599 = vmatprep.subr.mxu1 %v7256_v57  ;;  %v7267_v57 = vld [vmem:[#allocation22_spill] sm:$0xff] }
 0x3b7   :  { %1600 = vmatpush1.msra.mxu1 %v7257_v28  ;;  %v7268_v28 = vld [vmem:[#allocation24_spill] sm:$0xff] }
 0x3b8   :  { %1601 = vmatprep.subr.mxu1 %v7258_v27  ;;  %v7269_v27 = vld [vmem:[#allocation26_spill] sm:$0xff] }
 0x3b9   :  { %1602 = vmatpush1.msra.mxu1 %v7259_v16  ;;  %v7270_v16 = vld [vmem:[#allocation28_spill] sm:$0xff] }
 0x3ba   :  { %1603 = vmatprep.subr.mxu1 %v7260_v21  ;;  %v7271_v21 = vld [vmem:[#allocation30_spill] sm:$0xff] }
 0x3bb   :  { %1604 = vmatpush1.msra.mxu1 %v7261_v39  ;;  %v7272_v39 = vld [vmem:[#allocation32_spill] sm:$0xff] }
 0x3bc   :  { %1605 = vmatprep.subr.mxu1 %v7262_v14  ;;  %v7273_v14 = vld [vmem:[#allocation34_spill] sm:$0xff] }
 0x3bd   :  { %1606 = vmatpush1.msra.mxu1 %v7263_v30  ;;  %v7274_v30 = vld [vmem:[#allocation36_spill] sm:$0xff] }
 0x3be   :  { %1607 = vmatprep.subr.mxu1 %v7264_v37  ;;  %v7275_v37 = vld [vmem:[#allocation38_spill] sm:$0xff] }
 0x3bf   :  { %1608 = vmatpush2.msra.mxu1 %v7265_v61  ;;  %v7276_v61 = vld [vmem:[#allocation40_spill] sm:$0xff] }
 0x3c0   :  { %1609 = vmatprep.subr.mxu1 %v7266_v35  ;;  %v7277_v35 = vld [vmem:[#allocation42_spill] sm:$0xff] }
 0x3c1   :  { %1610 = vmatpush2.msra.mxu1 %v7267_v57  ;;  %v7278_v57 = vld [vmem:[#allocation44_spill] sm:$0xff] }
 0x3c2   :  { %1611 = vmatprep.subr.mxu1 %v7268_v28  ;;  %v7279_v28 = vld [vmem:[#allocation46_spill] sm:$0xff] }
 0x3c3   :  { %1612 = vmatpush2.msra.mxu1 %v7269_v27  ;;  %v7280_v27 = vld [vmem:[#allocation139_spill] sm:$0xff] }
 0x3c4   :  { %1613 = vmatprep.subr.mxu1 %v7270_v16  ;;  %v7281_v16 = vld [vmem:[#allocation140_spill] sm:$0xff] }
 0x3c5   :  { %1614 = vmatpush2.msra.mxu1 %v7271_v21  ;;  %v7282_v21 = vld [vmem:[#allocation141_spill] sm:$0xff] }
 0x3c6   :  { %1615 = vmatprep.subr.mxu1 %v7272_v39  ;;  %v7283_v39 = vld [vmem:[#allocation142_spill] sm:$0xff] }
 0x3c7   :  { %1616 = vmatpush2.msra.mxu1 %v7273_v14  ;;  %v7284_v14 = vld [vmem:[#allocation143_spill] sm:$0xff] }
 0x3c8   :  { %1617 = vmatprep.subr.mxu1 %v7274_v30  ;;  %v7285_v30 = vld [vmem:[#allocation144_spill] sm:$0xff] }
 0x3c9   :  { %1618 = vmatpush2.msra.mxu1 %v7275_v37  ;;  %v7286_v37 = vld [vmem:[#allocation145_spill] sm:$0xff] }
 0x3ca   :  { %1619 = vmatprep.subr.mxu1 %v7276_v61  ;;  %v7287_v61 = vld [vmem:[#allocation146_spill] sm:$0xff] }
 0x3cb   :  { %1620 = vmatpush2.msra.mxu1 %v7277_v35  ;;  %v7288_v35 = vld [vmem:[#allocation147_spill] sm:$0xff] }
 0x3cc   :  { %1621 = vmatprep.subr.mxu1 %v7278_v57  ;;  %v7289_v57 = vld [vmem:[#allocation148_spill] sm:$0xff] }
 0x3cd   :  { %1622 = vmatpush2.msra.mxu1 %v7279_v28  ;;  %v7290_v28 = vld [vmem:[#allocation149_spill] sm:$0xff] }
 0x3ce   :  { %1623 = vmatprep.subr.mxu1 %v7280_v27  ;;  %v7291_v27 = vld [vmem:[#allocation150_spill] sm:$0xff] }
 0x3cf   :  { %1624 = vmatpush2.msra.mxu1 %v7281_v16  ;;  %v7292_v16 = vld [vmem:[#allocation151_spill] sm:$0xff] }
 0x3d0   :  { %1625 = vmatprep.subr.mxu1 %v7282_v21  ;;  %v7293_v21 = vld [vmem:[#allocation152_spill] sm:$0xff] }
 0x3d1   :  { %1626 = vmatpush2.msra.mxu1 %v7283_v39  ;;  %v7294_v39 = vld [vmem:[#allocation153_spill] sm:$0xff] }
 0x3d2   :  { %1627 = vmatprep.subr.mxu1 %v7284_v14  ;;  %v7295_v14 = vld [vmem:[#allocation154_spill] sm:$0xff] }
 0x3d3   :  { %1628 = vmatpush2.msra.mxu1 %v7285_v30  ;;  %v7296_v30 = vld [vmem:[#allocation8_spill] sm:$0xff] }
 0x3d4   :  { %1629 = vmatprep.subr.mxu1 %v7286_v37 }
 0x3d5   :  { %1630 = vmatpush2.msra.mxu1 %v7287_v61 }
 0x3d6   :  { %1631 = vmatprep.subr.mxu1 %v7288_v35 }
 0x3d7   :  { %1632 = vmatpush2.msra.mxu1 %v7289_v57 }
 0x3d8   :  { %1633 = vmatprep.subr.mxu1 %v7290_v28 }
 0x3d9   :  { %1634 = vmatpush2.msra.mxu1 %v7291_v27 }
 0x3da   :  { %1635 = vmatprep.subr.mxu1 %v7292_v16 }
 0x3db   :  { %1636 = vmatpush2.msra.mxu1 %v7293_v21 }
 0x3dc   :  { %1637 = vmatprep.subr.mxu1 %v7294_v39  ;;  %v7300_v39 = vld [vmem:[#allocation85_spill] sm:$0xff] }
 0x3dd   :  { %1638 = vmatpush2.msra.mxu1 %v7295_v14 }
 0x3de   :  { %1759 = vmatprep.subr.mxu1 %v7296_v30 }
 0x41e   :  { %v1315_v37 = vpop.f32.mrf.mxu1  ;;  %v1386_v27 = vpop.f32.mrf.mxu0 }
 0x41f   :  { %v1462_v35 = vadd.f32 %v1315_v37, %v7297_v12  ;;  %v1476_v21 = vadd.f32 %v1386_v27, %v7299_v6 }
 0x420   :  { %v1317_v61 = vpop.f32.mrf.mxu1  ;;  %v1388_v16 = vpop.f32.mrf.mxu0 }
 0x421   :  { %v1463_v57 = vadd.f32 %v1317_v61, %v7298_v10  ;;  %v2682_v8 = vmul.f32 -1.442695, %v1462_v35  ;;  %v1477_v2 = vadd.f32 %v1388_v16, %v7300_v39  ;;  %v2684_v0 = vmul.f32 -1.442695, %v1476_v21  ;;  %v7301_v21 = vld [vmem:[#allocation99_spill] sm:$0xff] }
 0x423   :  { %v2683_v28 = vmul.f32 -1.442695, %v1463_v57  ;;  %2805 = vpow2.f32 %v2682_v8  ;;  %v2685_v62 = vmul.f32 -1.442695, %v1477_v2 }
 0x425   :  { %2807 = vpow2.f32 %v2683_v28 }
 0x426   :  { %2809 = vpow2.f32 %v2684_v0  ;;  %v7302_v0 = vld [vmem:[#allocation100_spill] sm:$0xff] }
 0x430   :  { %v2806_v4 = vpop.eup %2805 }
 0x431   :  { %v1470_v30 = vadd.f32 1.0, %v2806_v4 }
 0x432   :  { %v2808_v14 = vpop.eup %2807 }
 0x433   :  { %v1471_v60 = vadd.f32 1.0, %v2808_v14  ;;  %2811 = vrcp.f32 %v1470_v30  ;;  %v2810_v12 = vpop.eup %2809 }
 0x434   :  { %2813 = vpow2.f32 %v2685_v62  ;;  %v1484_v28 = vadd.f32 1.0, %v2810_v12 }
 0x435   :  { %2815 = vrcp.f32 %v1471_v60 }
 0x440   :  { %v2812_v37 = vpop.eup %2811 }
 0x441   :  { %v2814_v35 = vpop.eup %2813 }
 0x442   :  { %v2816_v39 = vpop.eup %2815  ;;  %v1485_v14 = vadd.f32 1.0, %v2814_v35  ;;  %v7329_v35 = vld [vmem:[#allocation19_spill] sm:$0xff] }
 0x45e   :  { %v1457_v10 = vpop.f32.mrf.mxu1 }
 0x45f   :  { %v1490_v8 = vadd.f32 %v1457_v10, %v3955_v51 }
 0x460   :  { %v1459_v61 = vpop.f32.mrf.mxu1 }
 0x461   :  { %v1492_v6 = vmul.f32 %v2812_v37, %v1490_v8  ;;  %v1491_v57 = vadd.f32 %v1459_v61, %v3966_v13 }
 0x463   :  { %v1494_v4 = vadd.f32 %v1492_v6, %v7301_v21  ;;  %v1493_v2 = vmul.f32 %v2816_v39, %v1491_v57  ;;  %v7330_v57 = vld [vmem:[#allocation167_spill] sm:$0xff]  ;;  %v7331_v39 = vld [vmem:[#allocation21_spill] sm:$0xff] }
 0x464   :  { %v7333_v21 = vld [vmem:[#allocation23_spill] sm:$0xff] }
 0x465   :  { %2817 = vtanh.f32 %v1494_v4  ;;  %v1495_v62 = vadd.f32 %v1493_v2, %v7302_v0  ;;  %v7334_v4 = vld [vmem:[#allocation169_spill] sm:$0xff]  ;;  %v7337_v0 = vld [vmem:[#allocation27_spill] sm:$0xff] }
 0x466   :  { %2819 = vrcp.f32 %v1484_v28  ;;  %v7332_v28 = vld [vmem:[#allocation168_spill] sm:$0xff]  ;;  %v7335_v2 = vld [vmem:[#allocation25_spill] sm:$0xff] }
 0x467   :  { %2821 = vtanh.f32 %v1495_v62  ;;  %v7338_v62 = vld [vmem:[#allocation171_spill] sm:$0xff] }
 0x468   :  { %2823 = vrcp.f32 %v1485_v14  ;;  %v7336_v14 = vld [vmem:[#allocation170_spill] sm:$0xff] }
 0x472   :  { %v2818_v60 = vpop.eup %2817 }
 0x473   :  { %v2820_v27 = vpop.eup %2819  ;;  %v1498_v16 = vsub.f32 %v4836_v20, %v2818_v60  ;;  %v7327_v20 = vld [vmem:[#allocation18_spill] sm:$0xff] }
 0x474   :  { %v2822_v30 = vpop.eup %2821 }
 0x475   :  { %v1499_v10 = vsub.f32 %v4838_v18, %v2822_v30  ;;  %v1500_v8 = vmul.f32 %v2820_v27, %v1498_v16  ;;  %v2824_v37 = vpop.eup %2823  ;;  %v7328_v18 = vld [vmem:[#allocation166_spill] sm:$0xff]  ;;  %v7340_v27 = vld [vmem:[#allocation172_spill] sm:$0xff]  ;;  %v7341_v16 = vld [vmem:[#allocation31_spill] sm:$0xff] }
 0x477   :  { %v1501_v12 = vmul.f32 %v2824_v37, %v1499_v10  ;;  %v5166_v61 = vadd.f32 %v2818_v60, %v1500_v8  ;;  %v7339_v60 = vld [vmem:[#allocation29_spill] sm:$0xff]  ;;  %v7344_v8 = vld [vmem:[#allocation174_spill] sm:$0xff]  ;;  %v7345_v37 = vld [vmem:[#allocation35_spill] sm:$0xff] }
 0x478   :  { %v7343_v10 = vld [vmem:[#allocation33_spill] sm:$0xff] }
 0x479   :  { %v5168_v6 = vadd.f32 %v2822_v30, %v1501_v12  ;;  %v7342_v30 = vld [vmem:[#allocation173_spill] sm:$0xff]  ;;  %v7346_v12 = vld [vmem:[#allocation175_spill] sm:$0xff] }
 0x47b   :  { %1568 = vmatprep.mubr.f32.mxu0 %v5168_v6  ;;  %1639 = vmatprep.mubr.f32.mxu1 %v5168_v6 }
 0x47c   :  { %1569 = vmatmul.mubr.f32.vlgmr.msra.gmra.mxu0 %v5166_v61  ;;  %1640 = vmatmul.mubr.f32.vlgmr.msra.gmra.mxu1 %v5166_v61 }
 0x47d   :  { %1647 = vmatpush1.msra.mxu0 %v4844_v25  ;;  %1710 = vmatprep.mubr.f32.mxu0 %v5168_v6 }
 0x47e   :  { %1648 = vmatprep.subr.mxu0 %v4848_v59  ;;  %1760 = vmatpush1.msra.mxu1 %v4435_v5  ;;  %v7303_v5 = vld [vmem:[#allocation71_spill] sm:$0xff] }
 0x47f   :  { %1649 = vmatpush1.msra.mxu0 %v4852_v19  ;;  %1761 = vmatprep.subr.mxu1 %v4439_v32  ;;  %v7304_v32 = vld [vmem:[#allocation72_spill] sm:$0xff] }
 0x480   :  { %1650 = vmatprep.subr.mxu0 %v4856_v63  ;;  %1762 = vmatpush1.msra.mxu1 %v4443_v53  ;;  %v7305_v53 = vld [vmem:[#allocation79_spill] sm:$0xff] }
 0x481   :  { %1651 = vmatpush1.msra.mxu0 %v4860_v1  ;;  %1763 = vmatprep.subr.mxu1 %v4447_v15  ;;  %v7306_v15 = vld [vmem:[#allocation81_spill] sm:$0xff] }
 0x482   :  { %1652 = vmatprep.subr.mxu0 %v4864_v22  ;;  %1764 = vmatpush1.msra.mxu1 %v4451_v26  ;;  %v7307_v26 = vld [vmem:[#allocation97_spill] sm:$0xff] }
 0x483   :  { %1653 = vmatpush1.msra.mxu0 %v4868_v7  ;;  %1765 = vmatprep.subr.mxu1 %v4455_v17  ;;  %v7308_v17 = vld [vmem:[#allocation98_spill] sm:$0xff] }
 0x484   :  { %1654 = vmatprep.subr.mxu0 %v4872_v49  ;;  %1766 = vmatpush1.msra.mxu1 %v4459_v36  ;;  %v7309_v36 = vld [vmem:[#allocation155_spill] sm:$0xff] }
 0x485   :  { %1655 = vmatpush1.msra.mxu0 %v4876_v23  ;;  %1767 = vmatprep.subr.mxu1 %v4463_v55  ;;  %v7310_v55 = vld [vmem:[#allocation156_spill] sm:$0xff] }
 0x486   :  { %1656 = vmatprep.subr.mxu0 %v4880_v40  ;;  %1768 = vmatpush1.msra.mxu1 %v4467_v3  ;;  %v7311_v3 = vld [vmem:[#allocation157_spill] sm:$0xff] }
 0x487   :  { %1657 = vmatpush1.msra.mxu0 %v4884_v45  ;;  %1769 = vmatprep.subr.mxu1 %v4471_v38  ;;  %v7312_v38 = vld [vmem:[#allocation158_spill] sm:$0xff] }
 0x488   :  { %1658 = vmatprep.subr.mxu0 %v4888_v9  ;;  %1770 = vmatpush1.msra.mxu1 %v4475_v43  ;;  %v7313_v43 = vld [vmem:[#allocation11_spill] sm:$0xff] }
 0x489   :  { %1659 = vmatpush1.msra.mxu0 %v4892_v11  ;;  %1771 = vmatprep.subr.mxu1 %v4479_v29  ;;  %v7314_v29 = vld [vmem:[#allocation159_spill] sm:$0xff] }
 0x48a   :  { %1660 = vmatprep.subr.mxu0 %v4896_v41  ;;  %1772 = vmatpush1.msra.mxu1 %v4483_v31  ;;  %v7315_v31 = vld [vmem:[#allocation12_spill] sm:$0xff] }
 0x48b   :  { %1661 = vmatpush1.msra.mxu0 %v4900_v47  ;;  %1773 = vmatprep.subr.mxu1 %v4487_v33  ;;  %v7316_v33 = vld [vmem:[#allocation160_spill] sm:$0xff] }
 0x48c   :  { %1662 = vmatprep.subr.mxu0 %v4904_v24  ;;  %1774 = vmatpush1.msra.mxu1 %v4491_v34  ;;  %v7317_v34 = vld [vmem:[#allocation13_spill] sm:$0xff] }
 0x48d   :  { %1663 = vmatpush1.msra.mxu0 %v7303_v5  ;;  %1775 = vmatprep.subr.mxu1 %v4495_v42  ;;  %v7318_v42 = vld [vmem:[#allocation161_spill] sm:$0xff] }
 0x48e   :  { %1664 = vmatprep.subr.mxu0 %v7304_v32  ;;  %1776 = vmatpush1.msra.mxu1 %v4499_v44  ;;  %v7319_v44 = vld [vmem:[#allocation14_spill] sm:$0xff] }
 0x48f   :  { %1665 = vmatpush1.msra.mxu0 %v7305_v53  ;;  %1777 = vmatprep.subr.mxu1 %v4503_v46  ;;  %v7320_v46 = vld [vmem:[#allocation162_spill] sm:$0xff] }
 0x490   :  { %1666 = vmatprep.subr.mxu0 %v7306_v15  ;;  %1778 = vmatpush1.msra.mxu1 %v4507_v48  ;;  %v7321_v48 = vld [vmem:[#allocation15_spill] sm:$0xff] }
 0x491   :  { %1667 = vmatpush1.msra.mxu0 %v7307_v26  ;;  %1779 = vmatprep.subr.mxu1 %v4511_v50  ;;  %v7322_v50 = vld [vmem:[#allocation163_spill] sm:$0xff] }
 0x492   :  { %1668 = vmatprep.subr.mxu0 %v7308_v17  ;;  %1780 = vmatpush1.msra.mxu1 %v4515_v52  ;;  %v7323_v52 = vld [vmem:[#allocation16_spill] sm:$0xff] }
 0x493   :  { %1669 = vmatpush1.msra.mxu0 %v7309_v36  ;;  %1781 = vmatprep.subr.mxu1 %v4519_v54  ;;  %v7324_v54 = vld [vmem:[#allocation164_spill] sm:$0xff] }
 0x494   :  { %1670 = vmatprep.subr.mxu0 %v7310_v55  ;;  %1782 = vmatpush1.msra.mxu1 %v4523_v56  ;;  %v7325_v56 = vld [vmem:[#allocation17_spill] sm:$0xff] }
 0x495   :  { %1671 = vmatpush1.msra.mxu0 %v7311_v3  ;;  %1783 = vmatprep.subr.mxu1 %v4527_v58  ;;  %v7326_v58 = vld [vmem:[#allocation165_spill] sm:$0xff] }
 0x496   :  { %1672 = vmatprep.subr.mxu0 %v7312_v38  ;;  %1784 = vmatpush1.msra.mxu1 %v7313_v43  ;;  %v7347_v43 = vld [vmem:[#allocation37_spill] sm:$0xff] }
 0x497   :  { %1673 = vmatpush1.msra.mxu0 %v7314_v29  ;;  %1785 = vmatprep.subr.mxu1 %v7315_v31  ;;  %v7348_v31 = vld [vmem:[#allocation176_spill] sm:$0xff] }
 0x498   :  { %1674 = vmatprep.subr.mxu0 %v7316_v33  ;;  %1786 = vmatpush1.msra.mxu1 %v7317_v34  ;;  %v7349_v34 = vld [vmem:[#allocation39_spill] sm:$0xff] }
 0x499   :  { %1675 = vmatpush1.msra.mxu0 %v7318_v42  ;;  %1787 = vmatprep.subr.mxu1 %v7319_v44  ;;  %v7350_v44 = vld [vmem:[#allocation177_spill] sm:$0xff] }
 0x49a   :  { %1676 = vmatprep.subr.mxu0 %v7320_v46  ;;  %1788 = vmatpush1.msra.mxu1 %v7321_v48  ;;  %v7351_v48 = vld [vmem:[#allocation41_spill] sm:$0xff] }
 0x49b   :  { %1677 = vmatpush1.msra.mxu0 %v7322_v50  ;;  %1789 = vmatprep.subr.mxu1 %v7323_v52  ;;  %v7352_v52 = vld [vmem:[#allocation178_spill] sm:$0xff] }
 0x49c   :  { %1678 = vmatprep.subr.mxu0 %v7324_v54  ;;  %1790 = vmatpush1.msra.mxu1 %v7325_v56  ;;  %v7353_v56 = vld [vmem:[#allocation43_spill] sm:$0xff] }
 0x49d   :  { %1679 = vmatpush2.msra.mxu0 %v7326_v58  ;;  %1791 = vmatprep.subr.mxu1 %v7327_v20  ;;  %v7354_v20 = vld [vmem:[#allocation179_spill] sm:$0xff] }
 0x49e   :  { %1680 = vmatprep.subr.mxu0 %v7328_v18  ;;  %1792 = vmatpush2.msra.mxu1 %v7329_v35  ;;  %v7355_v35 = vld [vmem:[#allocation45_spill] sm:$0xff] }
 0x49f   :  { %1681 = vmatpush2.msra.mxu0 %v7330_v57  ;;  %1793 = vmatprep.subr.mxu1 %v7331_v39  ;;  %v7356_v39 = vld [vmem:[#allocation180_spill] sm:$0xff] }
 0x4a0   :  { %1682 = vmatprep.subr.mxu0 %v7332_v28  ;;  %1794 = vmatpush2.msra.mxu1 %v7333_v21  ;;  %v7357_v21 = vld [vmem:[#allocation47_spill] sm:$0xff] }
 0x4a1   :  { %1683 = vmatpush2.msra.mxu0 %v7334_v4  ;;  %1795 = vmatprep.subr.mxu1 %v7335_v2  ;;  %v7358_v2 = vld [vmem:[#allocation181_spill] sm:$0xff] }
 0x4a2   :  { %1684 = vmatprep.subr.mxu0 %v7336_v14  ;;  %1796 = vmatpush2.msra.mxu1 %v7337_v0  ;;  %v7359_v0 = vld [vmem:[#allocation49_spill] sm:$0xff] }
 0x4a3   :  { %1685 = vmatpush2.msra.mxu0 %v7338_v62  ;;  %1797 = vmatprep.subr.mxu1 %v7339_v60  ;;  %v7360_v60 = vld [vmem:[#allocation182_spill] sm:$0xff] }
 0x4a4   :  { %1686 = vmatprep.subr.mxu0 %v7340_v27  ;;  %1798 = vmatpush2.msra.mxu1 %v7341_v16  ;;  %v7361_v16 = vld [vmem:[#allocation51_spill] sm:$0xff] }
 0x4a5   :  { %1687 = vmatpush2.msra.mxu0 %v7342_v30  ;;  %1799 = vmatprep.subr.mxu1 %v7343_v10  ;;  %v7362_v10 = vld [vmem:[#allocation183_spill] sm:$0xff] }
 0x4a6   :  { %1688 = vmatprep.subr.mxu0 %v7344_v8  ;;  %1800 = vmatpush2.msra.mxu1 %v7345_v37  ;;  %v7363_v37 = vld [vmem:[#allocation53_spill] sm:$0xff] }
 0x4a7   :  { %1689 = vmatpush2.msra.mxu0 %v7346_v12  ;;  %1801 = vmatprep.subr.mxu1 %v7347_v43  ;;  %v7364_v43 = vld [vmem:[#allocation184_spill] sm:$0xff] }
 0x4a8   :  { %1690 = vmatprep.subr.mxu0 %v7348_v31  ;;  %1802 = vmatpush2.msra.mxu1 %v7349_v34  ;;  %v7365_v34 = vld [vmem:[#allocation55_spill] sm:$0xff] }
 0x4a9   :  { %1691 = vmatpush2.msra.mxu0 %v7350_v44  ;;  %1803 = vmatprep.subr.mxu1 %v7351_v48  ;;  %v7366_v48 = vld [vmem:[#allocation185_spill] sm:$0xff] }
 0x4aa   :  { %1692 = vmatprep.subr.mxu0 %v7352_v52  ;;  %1804 = vmatpush2.msra.mxu1 %v7353_v56  ;;  %v7367_v56 = vld [vmem:[#allocation57_spill] sm:$0xff] }
 0x4ab   :  { %1693 = vmatpush2.msra.mxu0 %v7354_v20  ;;  %1805 = vmatprep.subr.mxu1 %v7355_v35  ;;  %v7368_v35 = vld [vmem:[#allocation186_spill] sm:$0xff]  ;;  %v7457_v20 = vld [vmem:[#allocation87_spill] sm:$0xff] }
 0x4ac   :  { %1694 = vmatprep.subr.mxu0 %v7356_v39  ;;  %1806 = vmatpush2.msra.mxu1 %v7357_v21  ;;  %v7369_v21 = vld [vmem:[#allocation59_spill] sm:$0xff] }
 0x4ad   :  { %1695 = vmatpush2.msra.mxu0 %v7358_v2  ;;  %1807 = vmatprep.subr.mxu1 %v7359_v0  ;;  %v7370_v0 = vld [vmem:[#allocation187_spill] sm:$0xff]  ;;  %v7456_v2 = vld [vmem:[#allocation78_spill] sm:$0xff] }
 0x4ae   :  { %1696 = vmatprep.subr.mxu0 %v7360_v60  ;;  %1808 = vmatpush2.msra.mxu1 %v7361_v16  ;;  %v7371_v60 = vld [vmem:[#allocation61_spill] sm:$0xff]  ;;  %v7372_v16 = vld [vmem:[#allocation188_spill] sm:$0xff] }
 0x4af   :  { %1697 = vmatpush2.msra.mxu0 %v7362_v10  ;;  %1809 = vmatprep.subr.mxu1 %v7363_v37  ;;  %v7373_v10 = vld [vmem:[#allocation63_spill] sm:$0xff]  ;;  %v7374_v37 = vld [vmem:[#allocation189_spill] sm:$0xff] }
 0x4b0   :  { %1698 = vmatprep.subr.mxu0 %v7364_v43  ;;  %1810 = vmatpush2.msra.mxu1 %v7365_v34  ;;  %v7375_v43 = vld [vmem:[#allocation65_spill] sm:$0xff]  ;;  %v7376_v34 = vld [vmem:[#allocation190_spill] sm:$0xff] }
 0x4b1   :  { %1699 = vmatpush2.msra.mxu0 %v7366_v48  ;;  %1811 = vmatprep.subr.mxu1 %v7367_v56  ;;  %v7377_v48 = vld [vmem:[#allocation66_spill] sm:$0xff]  ;;  %v7378_v56 = vld [vmem:[#allocation191_spill] sm:$0xff] }
 0x4b2   :  { %1700 = vmatprep.subr.mxu0 %v7368_v35  ;;  %1812 = vmatpush2.msra.mxu1 %v7369_v21  ;;  %v7379_v35 = vld [vmem:[#allocation68_spill] sm:$0xff]  ;;  %v5292_v21 = vld [vmem:[#allocation2 + $0x358] sm:$0xff] }
 0x4b3   :  { %1701 = vmatpush2.msra.mxu0 %v7370_v0  ;;  %1813 = vmatprep.subr.mxu1 %v7371_v60  ;;  %7380 = vst [vmem:[#allocation48_spill] sm:$0xff] %v5292_v21  ;;  %v7381_v60 = vld [vmem:[#allocation69_spill] sm:$0xff]  ;;  %v7427_v0 = vld [vmem:[#allocation26_spill] sm:$0xff] }
 0x4b4   :  { %1702 = vmatprep.subr.mxu0 %v7372_v16  ;;  %1814 = vmatpush2.msra.mxu1 %v7373_v10  ;;  %v5296_v16 = vld [vmem:[#allocation2 + $0x350] sm:$0xff] }
 0x4b5   :  { %1703 = vmatpush2.msra.mxu0 %v7374_v37  ;;  %1815 = vmatprep.subr.mxu1 %v7375_v43  ;;  %7382 = vst [vmem:[#allocation50_spill] sm:$0xff] %v5296_v16  ;;  %v7383_v10 = vld [vmem:[#allocation74_spill] sm:$0xff]  ;;  %v5300_v43 = vld [vmem:[#allocation2 + $0x328] sm:$0xff] }
 0x4b6   :  { %1704 = vmatprep.subr.mxu0 %v7376_v34  ;;  %1816 = vmatpush2.msra.mxu1 %v7377_v48  ;;  %7384 = vst [vmem:[#allocation52_spill] sm:$0xff] %v5300_v43  ;;  %v7385_v48 = vld [vmem:[#allocation76_spill] sm:$0xff]  ;;  %v7425_v37 = vld [vmem:[#allocation22_spill] sm:$0xff] }
 0x4b7   :  { %1705 = vmatpush2.msra.mxu0 %v7378_v56  ;;  %1817 = vmatprep.subr.mxu1 %v7379_v35  ;;  %v5304_v56 = vld [vmem:[#allocation2 + $0x320] sm:$0xff] }
 0x4b8   :  { %1706 = vmatprep.subr.mxu0 %v5292_v21  ;;  %1818 = vmatpush2.msra.mxu1 %v7381_v60  ;;  %7386 = vst [vmem:[#allocation54_spill] sm:$0xff] %v5304_v56  ;;  %v7387_v35 = vld [vmem:[#allocation108_spill] sm:$0xff]  ;;  %v5309_v60 = vld [vmem:[#allocation2 + $0x2e8] sm:$0xff]  ;;  %v7421_v21 = vld [vmem:[#allocation114_spill] sm:$0xff] }
 0x4b9   :  { %1707 = vmatpush2.msra.mxu0 %v5296_v16  ;;  %1819 = vmatprep.subr.mxu1 %v7383_v10  ;;  %7388 = vst [vmem:[#allocation56_spill] sm:$0xff] %v5309_v60  ;;  %v5312_v16 = vld [vmem:[#allocation2 + $0x2e0] sm:$0xff]  ;;  %v7390_v10 = vld [vmem:[#allocation109_spill] sm:$0xff] }
 0x4ba   :  { %1708 = vmatprep.subr.mxu0 %v5300_v43  ;;  %1820 = vmatpush2.msra.mxu1 %v7385_v48  ;;  %7389 = vst [vmem:[#allocation58_spill] sm:$0xff] %v5312_v16  ;;  %v5316_v43 = vld [vmem:[#allocation2 + $0x2b8] sm:$0xff]  ;;  %v7392_v48 = vld [vmem:[#allocation110_spill] sm:$0xff]  ;;  %v7423_v34 = vld [vmem:[#allocation116_spill] sm:$0xff] }
 0x4bb   :  { %1709 = vmatpush2.msra.mxu0 %v5304_v56  ;;  %1821 = vmatprep.subr.mxu1 %v7387_v35  ;;  %7391 = vst [vmem:[#allocation60_spill] sm:$0xff] %v5316_v43  ;;  %v5320_v56 = vld [vmem:[#allocation2 + $0x2b0] sm:$0xff]  ;;  %v5323_v35 = vld [vmem:[#allocation2 + $0x288] sm:$0xff] }
 0x4bc   :  { %1711 = vmatmul.mubr.f32.vlgmr.msra.gmra.mxu0 %v5166_v61  ;;  %1830 = vmatprep.subr.mxu0 %v5309_v60  ;;  %7393 = vst [vmem:[#allocation62_spill] sm:$0xff] %v5320_v56  ;;  %7394 = vst [vmem:[#allocation64_spill] sm:$0xff] %v5323_v35  ;;  %v5326_v60 = vld [vmem:[#allocation2 + $0x280] sm:$0xff] }
 0x4bd   :  { %1831 = vmatpush1.msra.mxu0 %v5312_v16  ;;  %1822 = vmatpush2.msra.mxu1 %v7390_v10  ;;  %7395 = vst [vmem:[#allocation67_spill] sm:$0xff] %v5326_v60  ;;  %v5329_v16 = vld [vmem:[#allocation2 + $0x258] sm:$0xff]  ;;  %v5332_v10 = vld [vmem:[#allocation2 + $0x250] sm:$0xff] }
 0x4be   :  { %1832 = vmatprep.subr.mxu0 %v5316_v43  ;;  %1901 = vmatprep.subr.mxu1 %v7392_v48  ;;  %7396 = vst [vmem:[#allocation117_spill] sm:$0xff] %v5329_v16  ;;  %7397 = vst [vmem:[#allocation118_spill] sm:$0xff] %v5332_v10  ;;  %v5335_v48 = vld [vmem:[#allocation2 + $0x228] sm:$0xff]  ;;  %v7419_v43 = vld [vmem:[#allocation112_spill] sm:$0xff] }
 0x4bf   :  { %1833 = vmatpush1.msra.mxu0 %v5320_v56  ;;  %7398 = vst [vmem:[#allocation119_spill] sm:$0xff] %v5335_v48  ;;  %v5338_v56 = vld [vmem:[#allocation2 + $0x220] sm:$0xff] }
 0x4c0   :  { %1834 = vmatprep.subr.mxu0 %v5323_v35  ;;  %7399 = vst [vmem:[#allocation120_spill] sm:$0xff] %v5338_v56  ;;  %v5341_v35 = vld [vmem:[#allocation2 + $0x1f8] sm:$0xff] }
 0x4c1   :  { %1835 = vmatpush1.msra.mxu0 %v5326_v60  ;;  %7400 = vst [vmem:[#allocation121_spill] sm:$0xff] %v5341_v35  ;;  %v5344_v60 = vld [vmem:[#allocation2 + $0x1f0] sm:$0xff] }
 0x4c2   :  { %1836 = vmatprep.subr.mxu0 %v5329_v16  ;;  %7401 = vst [vmem:[#allocation122_spill] sm:$0xff] %v5344_v60  ;;  %v5347_v16 = vld [vmem:[#allocation2 + $0x1c8] sm:$0xff] }
 0x4c3   :  { %1837 = vmatpush1.msra.mxu0 %v5332_v10  ;;  %7402 = vst [vmem:[#allocation123_spill] sm:$0xff] %v5347_v16  ;;  %v5350_v10 = vld [vmem:[#allocation2 + $0x1c0] sm:$0xff] }
 0x4c4   :  { %1838 = vmatprep.subr.mxu0 %v5335_v48  ;;  %7403 = vst [vmem:[#allocation124_spill] sm:$0xff] %v5350_v10  ;;  %v5353_v48 = vld [vmem:[#allocation2 + $0x198] sm:$0xff] }
 0x4c5   :  { %1839 = vmatpush1.msra.mxu0 %v5338_v56  ;;  %7404 = vst [vmem:[#allocation125_spill] sm:$0xff] %v5353_v48  ;;  %v5356_v56 = vld [vmem:[#allocation2 + $0x190] sm:$0xff] }
 0x4c6   :  { %1840 = vmatprep.subr.mxu0 %v5341_v35  ;;  %7405 = vst [vmem:[#allocation126_spill] sm:$0xff] %v5356_v56  ;;  %v5359_v35 = vld [vmem:[#allocation2 + $0x168] sm:$0xff] }
 0x4c7   :  { %1841 = vmatpush1.msra.mxu0 %v5344_v60  ;;  %7406 = vst [vmem:[#allocation127_spill] sm:$0xff] %v5359_v35  ;;  %v5362_v60 = vld [vmem:[#allocation2 + $0x160] sm:$0xff] }
 0x4c8   :  { %1842 = vmatprep.subr.mxu0 %v5347_v16  ;;  %7407 = vst [vmem:[#allocation128_spill] sm:$0xff] %v5362_v60  ;;  %v5365_v16 = vld [vmem:[#allocation2 + $0x138] sm:$0xff] }
 0x4c9   :  { %1843 = vmatpush1.msra.mxu0 %v5350_v10  ;;  %7408 = vst [vmem:[#allocation129_spill] sm:$0xff] %v5365_v16  ;;  %v5368_v10 = vld [vmem:[#allocation2 + $0x130] sm:$0xff] }
 0x4ca   :  { %1844 = vmatprep.subr.mxu0 %v5353_v48  ;;  %7409 = vst [vmem:[#allocation130_spill] sm:$0xff] %v5368_v10  ;;  %v5371_v48 = vld [vmem:[#allocation2 + $0x108] sm:$0xff] }
 0x4cb   :  { %1845 = vmatpush1.msra.mxu0 %v5356_v56  ;;  %7410 = vst [vmem:[#allocation131_spill] sm:$0xff] %v5371_v48  ;;  %v5374_v56 = vld [vmem:[#allocation2 + $0x100] sm:$0xff] }
 0x4cc   :  { %1846 = vmatprep.subr.mxu0 %v5359_v35  ;;  %7411 = vst [vmem:[#allocation132_spill] sm:$0xff] %v5374_v56  ;;  %v5377_v35 = vld [vmem:[#allocation2 + $0xd8] sm:$0xff] }
 0x4cd   :  { %1847 = vmatpush1.msra.mxu0 %v5362_v60  ;;  %7412 = vst [vmem:[#allocation133_spill] sm:$0xff] %v5377_v35  ;;  %v5380_v60 = vld [vmem:[#allocation2 + $0xd0] sm:$0xff] }
 0x4ce   :  { %1848 = vmatprep.subr.mxu0 %v5365_v16  ;;  %7413 = vst [vmem:[#allocation134_spill] sm:$0xff] %v5380_v60  ;;  %v5383_v16 = vld [vmem:[#allocation2 + $0xa8] sm:$0xff] }
 0x4cf   :  { %1849 = vmatpush1.msra.mxu0 %v5368_v10  ;;  %7414 = vst [vmem:[#allocation135_spill] sm:$0xff] %v5383_v16  ;;  %v5386_v10 = vld [vmem:[#allocation2 + $0xa0] sm:$0xff] }
 0x4d0   :  { %1850 = vmatprep.subr.mxu0 %v5371_v48  ;;  %7415 = vst [vmem:[#allocation136_spill] sm:$0xff] %v5386_v10  ;;  %v5389_v48 = vld [vmem:[#allocation2 + $0x78] sm:$0xff] }
 0x4d1   :  { %1851 = vmatpush1.msra.mxu0 %v5374_v56  ;;  %7416 = vst [vmem:[#allocation137_spill] sm:$0xff] %v5389_v48  ;;  %v5392_v56 = vld [vmem:[#allocation2 + $0x70] sm:$0xff] }
 0x4d2   :  { %1852 = vmatprep.subr.mxu0 %v5377_v35  ;;  %7417 = vst [vmem:[#allocation138_spill] sm:$0xff] %v5392_v56  ;;  %v7418_v35 = vld [vmem:[#allocation111_spill] sm:$0xff] }
 0x4d3   :  { %1853 = vmatpush1.msra.mxu0 %v5380_v60  ;;  %v7420_v60 = vld [vmem:[#allocation113_spill] sm:$0xff] }
 0x4d4   :  { %1854 = vmatprep.subr.mxu0 %v5383_v16  ;;  %v7422_v16 = vld [vmem:[#allocation115_spill] sm:$0xff] }
 0x4d5   :  { %1855 = vmatpush1.msra.mxu0 %v5386_v10  ;;  %v7424_v10 = vld [vmem:[#allocation20_spill] sm:$0xff] }
 0x4d6   :  { %1856 = vmatprep.subr.mxu0 %v5389_v48  ;;  %v7426_v48 = vld [vmem:[#allocation24_spill] sm:$0xff] }
 0x4d7   :  { %1857 = vmatpush1.msra.mxu0 %v5392_v56  ;;  %v7428_v56 = vld [vmem:[#allocation28_spill] sm:$0xff] }
 0x4d8   :  { %1858 = vmatprep.subr.mxu0 %v7418_v35  ;;  %v7429_v35 = vld [vmem:[#allocation30_spill] sm:$0xff] }
 0x4d9   :  { %1859 = vmatpush1.msra.mxu0 %v7419_v43  ;;  %v7430_v43 = vld [vmem:[#allocation32_spill] sm:$0xff] }
 0x4da   :  { %1860 = vmatprep.subr.mxu0 %v7420_v60  ;;  %v7431_v60 = vld [vmem:[#allocation34_spill] sm:$0xff] }
 0x4db   :  { %1861 = vmatpush1.msra.mxu0 %v7421_v21  ;;  %v7432_v21 = vld [vmem:[#allocation36_spill] sm:$0xff] }
 0x4dc   :  { %1862 = vmatprep.subr.mxu0 %v7422_v16  ;;  %v7433_v16 = vld [vmem:[#allocation38_spill] sm:$0xff] }
 0x4dd   :  { %1863 = vmatpush2.msra.mxu0 %v7423_v34  ;;  %v7434_v34 = vld [vmem:[#allocation40_spill] sm:$0xff] }
 0x4de   :  { %1864 = vmatprep.subr.mxu0 %v7424_v10  ;;  %v7435_v10 = vld [vmem:[#allocation42_spill] sm:$0xff] }
 0x4df   :  { %1865 = vmatpush2.msra.mxu0 %v7425_v37  ;;  %v7436_v37 = vld [vmem:[#allocation44_spill] sm:$0xff] }
 0x4e0   :  { %1866 = vmatprep.subr.mxu0 %v7426_v48  ;;  %v7437_v48 = vld [vmem:[#allocation46_spill] sm:$0xff] }
 0x4e1   :  { %1867 = vmatpush2.msra.mxu0 %v7427_v0  ;;  %v7438_v0 = vld [vmem:[#allocation139_spill] sm:$0xff] }
 0x4e2   :  { %1868 = vmatprep.subr.mxu0 %v7428_v56  ;;  %v7439_v56 = vld [vmem:[#allocation140_spill] sm:$0xff] }
 0x4e3   :  { %1869 = vmatpush2.msra.mxu0 %v7429_v35  ;;  %v7440_v35 = vld [vmem:[#allocation141_spill] sm:$0xff] }
 0x4e4   :  { %1870 = vmatprep.subr.mxu0 %v7430_v43  ;;  %v7441_v43 = vld [vmem:[#allocation142_spill] sm:$0xff] }
 0x4e5   :  { %1871 = vmatpush2.msra.mxu0 %v7431_v60  ;;  %v7442_v60 = vld [vmem:[#allocation143_spill] sm:$0xff] }
 0x4e6   :  { %1872 = vmatprep.subr.mxu0 %v7432_v21  ;;  %v7443_v21 = vld [vmem:[#allocation144_spill] sm:$0xff] }
 0x4e7   :  { %1873 = vmatpush2.msra.mxu0 %v7433_v16  ;;  %v7444_v16 = vld [vmem:[#allocation145_spill] sm:$0xff] }
 0x4e8   :  { %1874 = vmatprep.subr.mxu0 %v7434_v34  ;;  %v7445_v34 = vld [vmem:[#allocation146_spill] sm:$0xff] }
 0x4e9   :  { %1875 = vmatpush2.msra.mxu0 %v7435_v10  ;;  %v7446_v10 = vld [vmem:[#allocation147_spill] sm:$0xff] }
 0x4ea   :  { %1876 = vmatprep.subr.mxu0 %v7436_v37  ;;  %v7447_v37 = vld [vmem:[#allocation148_spill] sm:$0xff] }
 0x4eb   :  { %1877 = vmatpush2.msra.mxu0 %v7437_v48  ;;  %v7448_v48 = vld [vmem:[#allocation149_spill] sm:$0xff] }
 0x4ec   :  { %1878 = vmatprep.subr.mxu0 %v7438_v0  ;;  %v7449_v0 = vld [vmem:[#allocation150_spill] sm:$0xff] }
 0x4ed   :  { %1879 = vmatpush2.msra.mxu0 %v7439_v56  ;;  %v7450_v56 = vld [vmem:[#allocation151_spill] sm:$0xff] }
 0x4ee   :  { %1880 = vmatprep.subr.mxu0 %v7440_v35  ;;  %v7451_v35 = vld [vmem:[#allocation152_spill] sm:$0xff] }
 0x4ef   :  { %1881 = vmatpush2.msra.mxu0 %v7441_v43  ;;  %v7452_v43 = vld [vmem:[#allocation153_spill] sm:$0xff] }
 0x4f0   :  { %1882 = vmatprep.subr.mxu0 %v7442_v60  ;;  %v7453_v60 = vld [vmem:[#allocation154_spill] sm:$0xff] }
 0x4f1   :  { %1883 = vmatpush2.msra.mxu0 %v7443_v21  ;;  %v5431_v21 = vld [vmem:[#allocation2 + $0x2d8] sm:$0xff] }
 0x4f2   :  { %1884 = vmatprep.subr.mxu0 %v7444_v16  ;;  %7454 = vst [vmem:[#allocation8_spill] sm:$0xff] %v5431_v21 }
 0x4f3   :  { %1885 = vmatpush2.msra.mxu0 %v7445_v34 }
 0x4f4   :  { %1886 = vmatprep.subr.mxu0 %v7446_v10  ;;  %v7455_v10 = vld [vmem:[#allocation77_spill] sm:$0xff] }
 0x4f5   :  { %1887 = vmatpush2.msra.mxu0 %v7447_v37 }
 0x4f6   :  { %1888 = vmatprep.subr.mxu0 %v7448_v48 }
 0x4f7   :  { %1889 = vmatpush2.msra.mxu0 %v7449_v0 }
 0x4f8   :  { %1890 = vmatprep.subr.mxu0 %v7450_v56 }
 0x4f9   :  { %1891 = vmatpush2.msra.mxu0 %v7451_v35 }
 0x4fa   :  { %1892 = vmatprep.subr.mxu0 %v7452_v43 }
 0x4fb   :  { %1893 = vmatpush2.msra.mxu0 %v7453_v60  ;;  %v7458_v60 = vld [vmem:[#allocation89_spill] sm:$0xff] }
 0x4fc   :  { %2014 = vmatprep.subr.mxu0 %v5431_v21 }
 0x53c   :  { %v1570_v16 = vpop.f32.mrf.mxu0  ;;  %v1641_v56 = vpop.f32.mrf.mxu1 }
 0x53d   :  { %v1717_v37 = vadd.f32 %v1570_v16, %v7455_v10  ;;  %v1731_v43 = vadd.f32 %v1641_v56, %v7457_v20 }
 0x53e   :  { %v1572_v34 = vpop.f32.mrf.mxu0  ;;  %v1643_v35 = vpop.f32.mrf.mxu1 }
 0x53f   :  { %v1718_v48 = vadd.f32 %v1572_v34, %v7456_v2  ;;  %v2686_v39 = vmul.f32 -1.442695, %v1717_v37  ;;  %v1732_v44 = vadd.f32 %v1643_v35, %v7458_v60  ;;  %v2688_v12 = vmul.f32 -1.442695, %v1731_v43  ;;  %v7459_v35 = vld [vmem:[#allocation101_spill] sm:$0xff] }
 0x541   :  { %v2687_v0 = vmul.f32 -1.442695, %v1718_v48  ;;  %2825 = vpow2.f32 %v2686_v39  ;;  %v2689_v8 = vmul.f32 -1.442695, %v1732_v44 }
 0x543   :  { %2827 = vpow2.f32 %v2687_v0 }
 0x544   :  { %2829 = vpow2.f32 %v2688_v12  ;;  %v7460_v12 = vld [vmem:[#allocation102_spill] sm:$0xff] }
 0x54e   :  { %v2826_v52 = vpop.eup %2825 }
 0x54f   :  { %v1725_v21 = vadd.f32 1.0, %v2826_v52 }
 0x550   :  { %v2828_v31 = vpop.eup %2827 }
 0x551   :  { %v1726_v30 = vadd.f32 1.0, %v2828_v31  ;;  %2831 = vrcp.f32 %v1725_v21  ;;  %v2830_v16 = vpop.eup %2829 }
 0x552   :  { %2833 = vpow2.f32 %v2689_v8  ;;  %v1739_v56 = vadd.f32 1.0, %v2830_v16 }
 0x553   :  { %2835 = vrcp.f32 %v1726_v30 }
 0x55e   :  { %v2832_v34 = vpop.eup %2831 }
 0x55f   :  { %v2834_v37 = vpop.eup %2833 }
 0x560   :  { %v2836_v0 = vpop.eup %2835  ;;  %v1740_v31 = vadd.f32 1.0, %v2834_v37  ;;  %v5463_v37 = vld [vmem:[#allocation2 + $0x2a0] sm:$0xff] }
 0x57c   :  { %v1712_v2 = vpop.f32.mrf.mxu0 }
 0x57d   :  { %v1745_v39 = vadd.f32 %v1712_v2, %v3955_v51 }
 0x57e   :  { %v1714_v10 = vpop.f32.mrf.mxu0 }
 0x57f   :  { %v1747_v20 = vmul.f32 %v2832_v34, %v1745_v39  ;;  %v1746_v48 = vadd.f32 %v1714_v10, %v3966_v13 }
 0x581   :  { %v1749_v52 = vadd.f32 %v1747_v20, %v7459_v35  ;;  %v1748_v44 = vmul.f32 %v2836_v0, %v1746_v48  ;;  %v5611_v48 = vld [vmem:[#allocation2 + $0x518] sm:$0xff]  ;;  %v5615_v0 = vld [vmem:[#allocation2 + $0x510] sm:$0xff]  ;;  %v5623_v35 = vld [vmem:[#allocation2 + $0x4e0] sm:$0xff] }
 0x582   :  { %7463 = vst [vmem:[#allocation73_spill] sm:$0xff] %v5615_v0  ;;  %7467 = vst [vmem:[#allocation83_spill] sm:$0xff] %v5623_v35 }
 0x583   :  { %2837 = vtanh.f32 %v1749_v52  ;;  %v1750_v8 = vadd.f32 %v1748_v44, %v7460_v12  ;;  %v7468_v52 = vld [vmem:[#allocation177_spill] sm:$0xff]  ;;  %v5627_v44 = vld [vmem:[#allocation2 + $0x4b8] sm:$0xff]  ;;  %v5631_v12 = vld [vmem:[#allocation2 + $0x4b0] sm:$0xff] }
 0x584   :  { %2839 = vrcp.f32 %v1739_v56  ;;  %v5619_v56 = vld [vmem:[#allocation2 + $0x4e8] sm:$0xff]  ;;  %7469 = vst [vmem:[#allocation85_spill] sm:$0xff] %v5627_v44  ;;  %7471 = vst [vmem:[#allocation99_spill] sm:$0xff] %v5631_v12 }
 0x585   :  { %2841 = vtanh.f32 %v1750_v8  ;;  %7465 = vst [vmem:[#allocation75_spill] sm:$0xff] %v5619_v56  ;;  %v7472_v8 = vld [vmem:[#allocation179_spill] sm:$0xff] }
 0x586   :  { %2843 = vrcp.f32 %v1740_v31  ;;  %v7470_v31 = vld [vmem:[#allocation178_spill] sm:$0xff] }
 0x590   :  { %v2838_v30 = vpop.eup %2837 }
 0x591   :  { %v2840_v21 = vpop.eup %2839  ;;  %v1753_v43 = vsub.f32 %v5166_v61, %v2838_v30  ;;  %v5455_v61 = vld [vmem:[#allocation2 + $0x2d0] sm:$0xff] }
 0x592   :  { %v2842_v60 = vpop.eup %2841 }
 0x593   :  { %v1754_v2 = vsub.f32 %v5168_v6, %v2842_v60  ;;  %v1755_v39 = vmul.f32 %v2840_v21, %v1753_v43  ;;  %v2844_v34 = vpop.eup %2843  ;;  %v5459_v6 = vld [vmem:[#allocation2 + $0x2a8] sm:$0xff]  ;;  %v7474_v21 = vld [vmem:[#allocation180_spill] sm:$0xff] }
 0x594   :  { %v5639_v43 = vld [vmem:[#allocation2 + $0x480] sm:$0xff] }
 0x595   :  { %v1756_v16 = vmul.f32 %v2844_v34, %v1754_v2  ;;  %v5444_v10 = vadd.f32 %v2838_v30, %v1755_v39  ;;  %v5635_v30 = vld [vmem:[#allocation2 + $0x488] sm:$0xff]  ;;  %7475 = vst [vmem:[#allocation71_spill] sm:$0xff] %v5639_v43  ;;  %v5643_v2 = vld [vmem:[#allocation2 + $0x458] sm:$0xff]  ;;  %v7478_v39 = vld [vmem:[#allocation182_spill] sm:$0xff] }
 0x596   :  { %7473 = vst [vmem:[#allocation100_spill] sm:$0xff] %v5635_v30  ;;  %7477 = vst [vmem:[#allocation72_spill] sm:$0xff] %v5643_v2  ;;  %v5647_v34 = vld [vmem:[#allocation2 + $0x450] sm:$0xff] }
 0x597   :  { %v5446_v20 = vadd.f32 %v2842_v60, %v1756_v16  ;;  %v7476_v60 = vld [vmem:[#allocation181_spill] sm:$0xff]  ;;  %7479 = vst [vmem:[#allocation79_spill] sm:$0xff] %v5647_v34  ;;  %v7480_v16 = vld [vmem:[#allocation183_spill] sm:$0xff] }
 0x599   :  { %1823 = vmatprep.mubr.f32.mxu1 %v5446_v20  ;;  %1894 = vmatprep.mubr.f32.mxu0 %v5446_v20 }
 0x59a   :  { %1824 = vmatmul.mubr.f32.vlgmr.msra.gmra.mxu1 %v5444_v10  ;;  %1895 = vmatmul.mubr.f32.vlgmr.msra.gmra.mxu0 %v5444_v10 }
 0x59b   :  { %1902 = vmatpush1.msra.mxu1 %v4844_v25  ;;  %1965 = vmatprep.mubr.f32.mxu1 %v5446_v20  ;;  %v5467_v25 = vld [vmem:[#allocation2 + $0x278] sm:$0xff] }
 0x59c   :  { %1903 = vmatprep.subr.mxu1 %v4848_v59  ;;  %2015 = vmatpush1.msra.mxu0 %v5455_v61  ;;  %v5471_v59 = vld [vmem:[#allocation2 + $0x270] sm:$0xff] }
 0x59d   :  { %1904 = vmatpush1.msra.mxu1 %v4852_v19  ;;  %2016 = vmatprep.subr.mxu0 %v5459_v6  ;;  %v5475_v19 = vld [vmem:[#allocation2 + $0x248] sm:$0xff] }
 0x59e   :  { %1905 = vmatprep.subr.mxu1 %v4856_v63  ;;  %2017 = vmatpush1.msra.mxu0 %v5463_v37  ;;  %v5479_v63 = vld [vmem:[#allocation2 + $0x240] sm:$0xff] }
 0x59f   :  { %1906 = vmatpush1.msra.mxu1 %v4860_v1  ;;  %2018 = vmatprep.subr.mxu0 %v5467_v25  ;;  %v5483_v1 = vld [vmem:[#allocation2 + $0x218] sm:$0xff] }
 0x5a0   :  { %1907 = vmatprep.subr.mxu1 %v4864_v22  ;;  %2019 = vmatpush1.msra.mxu0 %v5471_v59  ;;  %v5487_v22 = vld [vmem:[#allocation2 + $0x210] sm:$0xff] }
 0x5a1   :  { %1908 = vmatpush1.msra.mxu1 %v4868_v7  ;;  %2020 = vmatprep.subr.mxu0 %v5475_v19  ;;  %v5491_v7 = vld [vmem:[#allocation2 + $0x1e8] sm:$0xff] }
 0x5a2   :  { %1909 = vmatprep.subr.mxu1 %v4872_v49  ;;  %2021 = vmatpush1.msra.mxu0 %v5479_v63  ;;  %v5495_v49 = vld [vmem:[#allocation2 + $0x1e0] sm:$0xff] }
 0x5a3   :  { %1910 = vmatpush1.msra.mxu1 %v4876_v23  ;;  %2022 = vmatprep.subr.mxu0 %v5483_v1  ;;  %v5499_v23 = vld [vmem:[#allocation2 + $0x1b8] sm:$0xff] }
 0x5a4   :  { %1911 = vmatprep.subr.mxu1 %v4880_v40  ;;  %2023 = vmatpush1.msra.mxu0 %v5487_v22  ;;  %v5503_v40 = vld [vmem:[#allocation2 + $0x1b0] sm:$0xff] }
 0x5a5   :  { %1912 = vmatpush1.msra.mxu1 %v4884_v45  ;;  %2024 = vmatprep.subr.mxu0 %v5491_v7  ;;  %v5507_v45 = vld [vmem:[#allocation2 + $0x188] sm:$0xff] }
 0x5a6   :  { %1913 = vmatprep.subr.mxu1 %v4888_v9  ;;  %2025 = vmatpush1.msra.mxu0 %v5495_v49  ;;  %v5511_v9 = vld [vmem:[#allocation2 + $0x180] sm:$0xff] }
 0x5a7   :  { %1914 = vmatpush1.msra.mxu1 %v4892_v11  ;;  %2026 = vmatprep.subr.mxu0 %v5499_v23  ;;  %v5515_v11 = vld [vmem:[#allocation2 + $0x158] sm:$0xff] }
 0x5a8   :  { %1915 = vmatprep.subr.mxu1 %v4896_v41  ;;  %2027 = vmatpush1.msra.mxu0 %v5503_v40  ;;  %v5519_v41 = vld [vmem:[#allocation2 + $0x150] sm:$0xff] }
 0x5a9   :  { %1916 = vmatpush1.msra.mxu1 %v4900_v47  ;;  %2028 = vmatprep.subr.mxu0 %v5507_v45  ;;  %v5523_v47 = vld [vmem:[#allocation2 + $0x128] sm:$0xff] }
 0x5aa   :  { %1917 = vmatprep.subr.mxu1 %v4904_v24  ;;  %2029 = vmatpush1.msra.mxu0 %v5511_v9  ;;  %v5527_v24 = vld [vmem:[#allocation2 + $0x120] sm:$0xff] }
 0x5ab   :  { %1918 = vmatpush1.msra.mxu1 %v7303_v5  ;;  %2030 = vmatprep.subr.mxu0 %v5515_v11  ;;  %v5531_v5 = vld [vmem:[#allocation2 + $0xf8] sm:$0xff] }
 0x5ac   :  { %1919 = vmatprep.subr.mxu1 %v7304_v32  ;;  %2031 = vmatpush1.msra.mxu0 %v5519_v41  ;;  %v5535_v32 = vld [vmem:[#allocation2 + $0xf0] sm:$0xff] }
 0x5ad   :  { %1920 = vmatpush1.msra.mxu1 %v7305_v53  ;;  %2032 = vmatprep.subr.mxu0 %v5523_v47  ;;  %v5539_v53 = vld [vmem:[#allocation2 + $0xc8] sm:$0xff] }
 0x5ae   :  { %1921 = vmatprep.subr.mxu1 %v7306_v15  ;;  %2033 = vmatpush1.msra.mxu0 %v5527_v24  ;;  %v5543_v15 = vld [vmem:[#allocation2 + $0xc0] sm:$0xff] }
 0x5af   :  { %1922 = vmatpush1.msra.mxu1 %v7307_v26  ;;  %2034 = vmatprep.subr.mxu0 %v5531_v5  ;;  %v5547_v26 = vld [vmem:[#allocation2 + $0x98] sm:$0xff] }
 0x5b0   :  { %1923 = vmatprep.subr.mxu1 %v7308_v17  ;;  %2035 = vmatpush1.msra.mxu0 %v5535_v32  ;;  %v5551_v17 = vld [vmem:[#allocation2 + $0x90] sm:$0xff] }
 0x5b1   :  { %1924 = vmatpush1.msra.mxu1 %v7309_v36  ;;  %2036 = vmatprep.subr.mxu0 %v5539_v53  ;;  %v5555_v36 = vld [vmem:[#allocation2 + $0x68] sm:$0xff] }
 0x5b2   :  { %1925 = vmatprep.subr.mxu1 %v7310_v55  ;;  %2037 = vmatpush1.msra.mxu0 %v5543_v15  ;;  %v5559_v55 = vld [vmem:[#allocation2 + $0x60] sm:$0xff] }
 0x5b3   :  { %1926 = vmatpush1.msra.mxu1 %v7311_v3  ;;  %2038 = vmatprep.subr.mxu0 %v5547_v26  ;;  %v5563_v3 = vld [vmem:[#allocation2 + $0x38] sm:$0xff] }
 0x5b4   :  { %1927 = vmatprep.subr.mxu1 %v7312_v38  ;;  %2039 = vmatpush1.msra.mxu0 %v5551_v17  ;;  %v5567_v38 = vld [vmem:[#allocation2 + $0x30] sm:$0xff] }
 0x5b5   :  { %1928 = vmatpush1.msra.mxu1 %v7314_v29  ;;  %2040 = vmatprep.subr.mxu0 %v5555_v36  ;;  %v5571_v29 = vld [vmem:[#allocation2 + $0x8] sm:$0xff] }
 0x5b6   :  { %1929 = vmatprep.subr.mxu1 %v7316_v33  ;;  %2041 = vmatpush1.msra.mxu0 %v5559_v55  ;;  %v5575_v33 = vld [vmem:[#allocation2] sm:$0xff] }
 0x5b7   :  { %1930 = vmatpush1.msra.mxu1 %v7318_v42  ;;  %2042 = vmatprep.subr.mxu0 %v5563_v3  ;;  %v5579_v42 = vld [vmem:[#allocation2 + $0x5d8] sm:$0xff] }
 0x5b8   :  { %1931 = vmatprep.subr.mxu1 %v7320_v46  ;;  %2043 = vmatpush1.msra.mxu0 %v5567_v38  ;;  %v5583_v46 = vld [vmem:[#allocation2 + $0x5d0] sm:$0xff] }
 0x5b9   :  { %1932 = vmatpush1.msra.mxu1 %v7322_v50  ;;  %2044 = vmatprep.subr.mxu0 %v5571_v29  ;;  %v5587_v50 = vld [vmem:[#allocation2 + $0x5a8] sm:$0xff] }
 0x5ba   :  { %1933 = vmatprep.subr.mxu1 %v7324_v54  ;;  %2045 = vmatpush1.msra.mxu0 %v5575_v33  ;;  %v5591_v54 = vld [vmem:[#allocation2 + $0x5a0] sm:$0xff] }
 0x5bb   :  { %1934 = vmatpush2.msra.mxu1 %v7326_v58  ;;  %2046 = vmatprep.subr.mxu0 %v5579_v42  ;;  %v5595_v58 = vld [vmem:[#allocation2 + $0x578] sm:$0xff] }
 0x5bc   :  { %1935 = vmatprep.subr.mxu1 %v7328_v18  ;;  %2047 = vmatpush2.msra.mxu0 %v5583_v46  ;;  %v5599_v18 = vld [vmem:[#allocation2 + $0x570] sm:$0xff] }
 0x5bd   :  { %1936 = vmatpush2.msra.mxu1 %v7330_v57  ;;  %2048 = vmatprep.subr.mxu0 %v5587_v50  ;;  %v5603_v57 = vld [vmem:[#allocation2 + $0x548] sm:$0xff] }
 0x5be   :  { %1937 = vmatprep.subr.mxu1 %v7332_v28  ;;  %2049 = vmatpush2.msra.mxu0 %v5591_v54  ;;  %v5607_v28 = vld [vmem:[#allocation2 + $0x540] sm:$0xff] }
 0x5bf   :  { %1938 = vmatpush2.msra.mxu1 %v7334_v4  ;;  %2050 = vmatprep.subr.mxu0 %v5595_v58  ;;  %v7461_v4 = vld [vmem:[#allocation173_spill] sm:$0xff] }
 0x5c0   :  { %1939 = vmatprep.subr.mxu1 %v7336_v14  ;;  %2051 = vmatpush2.msra.mxu0 %v5599_v18  ;;  %v7462_v14 = vld [vmem:[#allocation174_spill] sm:$0xff] }
 0x5c1   :  { %1940 = vmatpush2.msra.mxu1 %v7338_v62  ;;  %2052 = vmatprep.subr.mxu0 %v5603_v57  ;;  %v7464_v62 = vld [vmem:[#allocation175_spill] sm:$0xff] }
 0x5c2   :  { %1941 = vmatprep.subr.mxu1 %v7340_v27  ;;  %2053 = vmatpush2.msra.mxu0 %v5607_v28  ;;  %v7466_v27 = vld [vmem:[#allocation176_spill] sm:$0xff] }
 0x5c3   :  { %1942 = vmatpush2.msra.mxu1 %v7461_v4  ;;  %2054 = vmatprep.subr.mxu0 %v5611_v48  ;;  %v5651_v4 = vld [vmem:[#allocation2 + $0x428] sm:$0xff] }
 0x5c4   :  { %1943 = vmatprep.subr.mxu1 %v7462_v14  ;;  %2055 = vmatpush2.msra.mxu0 %v5615_v0  ;;  %7481 = vst [vmem:[#allocation81_spill] sm:$0xff] %v5651_v4  ;;  %v7482_v14 = vld [vmem:[#allocation184_spill] sm:$0xff] }
 0x5c5   :  { %1944 = vmatpush2.msra.mxu1 %v7464_v62  ;;  %2056 = vmatprep.subr.mxu0 %v5619_v56  ;;  %v5655_v62 = vld [vmem:[#allocation2 + $0x420] sm:$0xff] }
 0x5c6   :  { %1945 = vmatprep.subr.mxu1 %v7466_v27  ;;  %2057 = vmatpush2.msra.mxu0 %v5623_v35  ;;  %7483 = vst [vmem:[#allocation97_spill] sm:$0xff] %v5655_v62  ;;  %v7484_v27 = vld [vmem:[#allocation185_spill] sm:$0xff] }
 0x5c7   :  { %1946 = vmatpush2.msra.mxu1 %v7468_v52  ;;  %2058 = vmatprep.subr.mxu0 %v5627_v44  ;;  %v5659_v52 = vld [vmem:[#allocation2 + $0x3f8] sm:$0xff] }
 0x5c8   :  { %1947 = vmatprep.subr.mxu1 %v7470_v31  ;;  %2059 = vmatpush2.msra.mxu0 %v5631_v12  ;;  %7485 = vst [vmem:[#allocation98_spill] sm:$0xff] %v5659_v52  ;;  %v7486_v31 = vld [vmem:[#allocation186_spill] sm:$0xff]  ;;  %v7576_v12 = vld [vmem:[#allocation93_spill] sm:$0xff] }
 0x5c9   :  { %1948 = vmatpush2.msra.mxu1 %v7472_v8  ;;  %2060 = vmatprep.subr.mxu0 %v5635_v30  ;;  %v5663_v8 = vld [vmem:[#allocation2 + $0x3f0] sm:$0xff] }
 0x5ca   :  { %1949 = vmatprep.subr.mxu1 %v7474_v21  ;;  %2061 = vmatpush2.msra.mxu0 %v5639_v43  ;;  %7487 = vst [vmem:[#allocation155_spill] sm:$0xff] %v5663_v8  ;;  %v7488_v21 = vld [vmem:[#allocation187_spill] sm:$0xff] }
 0x5cb   :  { %1950 = vmatpush2.msra.mxu1 %v7476_v60  ;;  %2062 = vmatprep.subr.mxu0 %v5643_v2  ;;  %v5667_v60 = vld [vmem:[#allocation2 + $0x3c8] sm:$0xff]  ;;  %v7575_v43 = vld [vmem:[#allocation91_spill] sm:$0xff] }
 0x5cc   :  { %1951 = vmatprep.subr.mxu1 %v7478_v39  ;;  %2063 = vmatpush2.msra.mxu0 %v5647_v34  ;;  %7489 = vst [vmem:[#allocation156_spill] sm:$0xff] %v5667_v60  ;;  %v7490_v39 = vld [vmem:[#allocation188_spill] sm:$0xff] }
 0x5cd   :  { %1952 = vmatpush2.msra.mxu1 %v7480_v16  ;;  %2064 = vmatprep.subr.mxu0 %v5651_v4  ;;  %v5671_v16 = vld [vmem:[#allocation2 + $0x3c0] sm:$0xff]  ;;  %v7520_v4 = vld [vmem:[#allocation123_spill] sm:$0xff] }
 0x5ce   :  { %1953 = vmatprep.subr.mxu1 %v7482_v14  ;;  %2065 = vmatpush2.msra.mxu0 %v5655_v62  ;;  %7491 = vst [vmem:[#allocation157_spill] sm:$0xff] %v5671_v16  ;;  %v7492_v14 = vld [vmem:[#allocation189_spill] sm:$0xff]  ;;  %v7517_v62 = vld [vmem:[#allocation120_spill] sm:$0xff] }
 0x5cf   :  { %1954 = vmatpush2.msra.mxu1 %v7484_v27  ;;  %2066 = vmatprep.subr.mxu0 %v5659_v52  ;;  %v5675_v27 = vld [vmem:[#allocation2 + $0x398] sm:$0xff]  ;;  %v7514_v52 = vld [vmem:[#allocation117_spill] sm:$0xff] }
 0x5d0   :  { %1955 = vmatprep.subr.mxu1 %v7486_v31  ;;  %2067 = vmatpush2.msra.mxu0 %v5663_v8  ;;  %7493 = vst [vmem:[#allocation158_spill] sm:$0xff] %v5675_v27  ;;  %v7494_v31 = vld [vmem:[#allocation190_spill] sm:$0xff] }
 0x5d1   :  { %1956 = vmatpush2.msra.mxu1 %v7488_v21  ;;  %2068 = vmatprep.subr.mxu0 %v5667_v60  ;;  %v5679_v8 = vld [vmem:[#allocation2 + $0x390] sm:$0xff]  ;;  %v7496_v21 = vld [vmem:[#allocation191_spill] sm:$0xff]  ;;  %v5683_v60 = vld [vmem:[#allocation2 + $0x368] sm:$0xff] }
 0x5d2   :  { %1957 = vmatprep.subr.mxu1 %v7490_v39  ;;  %2069 = vmatpush2.msra.mxu0 %v5671_v16  ;;  %7495 = vst [vmem:[#allocation11_spill] sm:$0xff] %v5679_v8  ;;  %7497 = vst [vmem:[#allocation159_spill] sm:$0xff] %v5683_v60  ;;  %v7498_v39 = vld [vmem:[#allocation48_spill] sm:$0xff] }
 0x5d3   :  { %1958 = vmatpush2.msra.mxu1 %v7492_v14  ;;  %2070 = vmatprep.subr.mxu0 %v5675_v27  ;;  %v5687_v16 = vld [vmem:[#allocation2 + $0x360] sm:$0xff]  ;;  %v7500_v14 = vld [vmem:[#allocation50_spill] sm:$0xff]  ;;  %v5691_v27 = vld [vmem:[#allocation2 + $0x338] sm:$0xff] }
 0x5d4   :  { %1959 = vmatprep.subr.mxu1 %v7494_v31  ;;  %2071 = vmatpush2.msra.mxu0 %v5679_v8  ;;  %7499 = vst [vmem:[#allocation12_spill] sm:$0xff] %v5687_v16  ;;  %7501 = vst [vmem:[#allocation160_spill] sm:$0xff] %v5691_v27  ;;  %v7502_v31 = vld [vmem:[#allocation52_spill] sm:$0xff]  ;;  %v5695_v8 = vld [vmem:[#allocation2 + $0x330] sm:$0xff] }
 0x5d5   :  { %1960 = vmatpush2.msra.mxu1 %v7496_v21  ;;  %2072 = vmatprep.subr.mxu0 %v5683_v60  ;;  %7503 = vst [vmem:[#allocation13_spill] sm:$0xff] %v5695_v8  ;;  %v7504_v21 = vld [vmem:[#allocation54_spill] sm:$0xff]  ;;  %v5699_v60 = vld [vmem:[#allocation2 + $0x308] sm:$0xff] }
 0x5d6   :  { %1961 = vmatprep.subr.mxu1 %v7498_v39  ;;  %2073 = vmatpush2.msra.mxu0 %v5687_v16  ;;  %7505 = vst [vmem:[#allocation161_spill] sm:$0xff] %v5699_v60  ;;  %v7506_v16 = vld [vmem:[#allocation56_spill] sm:$0xff] }
 0x5d7   :  { %1962 = vmatpush2.msra.mxu1 %v7500_v14  ;;  %2074 = vmatprep.subr.mxu0 %v5691_v27  ;;  %v7507_v14 = vld [vmem:[#allocation58_spill] sm:$0xff]  ;;  %v5705_v39 = vld [vmem:[#allocation2 + $0x300] sm:$0xff]  ;;  %v5709_v27 = vld [vmem:[#allocation2 + $0x2f8] sm:$0xff] }
 0x5d8   :  { %1963 = vmatprep.subr.mxu1 %v7502_v31  ;;  %2075 = vmatpush2.msra.mxu0 %v5695_v8  ;;  %7508 = vst [vmem:[#allocation14_spill] sm:$0xff] %v5705_v39  ;;  %v7509_v31 = vld [vmem:[#allocation60_spill] sm:$0xff]  ;;  %7510 = vst [vmem:[#allocation162_spill] sm:$0xff] %v5709_v27 }
 0x5d9   :  { %1964 = vmatpush2.msra.mxu1 %v7504_v21  ;;  %2076 = vmatprep.subr.mxu0 %v5699_v60  ;;  %v7511_v21 = vld [vmem:[#allocation62_spill] sm:$0xff]  ;;  %v7512_v8 = vld [vmem:[#allocation64_spill] sm:$0xff]  ;;  %v7513_v60 = vld [vmem:[#allocation67_spill] sm:$0xff] }
 0x5da   :  { %1966 = vmatmul.mubr.f32.vlgmr.msra.gmra.mxu1 %v5444_v10  ;;  %2085 = vmatprep.subr.mxu1 %v7506_v16  ;;  %v7515_v16 = vld [vmem:[#allocation118_spill] sm:$0xff] }
 0x5db   :  { %2086 = vmatpush1.msra.mxu1 %v7507_v14  ;;  %2077 = vmatpush2.msra.mxu0 %v5705_v39  ;;  %v7516_v14 = vld [vmem:[#allocation119_spill] sm:$0xff]  ;;  %v7518_v39 = vld [vmem:[#allocation121_spill] sm:$0xff] }
 0x5dc   :  { %2087 = vmatprep.subr.mxu1 %v7509_v31  ;;  %2156 = vmatprep.subr.mxu0 %v5709_v27  ;;  %v7519_v31 = vld [vmem:[#allocation122_spill] sm:$0xff]  ;;  %v7521_v27 = vld [vmem:[#allocation124_spill] sm:$0xff] }
 0x5dd   :  { %2088 = vmatpush1.msra.mxu1 %v7511_v21  ;;  %v7522_v21 = vld [vmem:[#allocation125_spill] sm:$0xff] }
 0x5de   :  { %2089 = vmatprep.subr.mxu1 %v7512_v8  ;;  %v7523_v8 = vld [vmem:[#allocation126_spill] sm:$0xff] }
 0x5df   :  { %2090 = vmatpush1.msra.mxu1 %v7513_v60  ;;  %v7524_v60 = vld [vmem:[#allocation127_spill] sm:$0xff] }
 0x5e0   :  { %2091 = vmatprep.subr.mxu1 %v7514_v52  ;;  %v7525_v52 = vld [vmem:[#allocation128_spill] sm:$0xff] }
 0x5e1   :  { %2092 = vmatpush1.msra.mxu1 %v7515_v16  ;;  %v7526_v16 = vld [vmem:[#allocation129_spill] sm:$0xff] }
 0x5e2   :  { %2093 = vmatprep.subr.mxu1 %v7516_v14  ;;  %v7527_v14 = vld [vmem:[#allocation130_spill] sm:$0xff] }
 0x5e3   :  { %2094 = vmatpush1.msra.mxu1 %v7517_v62  ;;  %v7528_v62 = vld [vmem:[#allocation131_spill] sm:$0xff] }
 0x5e4   :  { %2095 = vmatprep.subr.mxu1 %v7518_v39  ;;  %v7529_v39 = vld [vmem:[#allocation132_spill] sm:$0xff] }
 0x5e5   :  { %2096 = vmatpush1.msra.mxu1 %v7519_v31  ;;  %v7530_v31 = vld [vmem:[#allocation133_spill] sm:$0xff] }
 0x5e6   :  { %2097 = vmatprep.subr.mxu1 %v7520_v4  ;;  %v7531_v4 = vld [vmem:[#allocation134_spill] sm:$0xff] }
 0x5e7   :  { %2098 = vmatpush1.msra.mxu1 %v7521_v27  ;;  %v7532_v27 = vld [vmem:[#allocation135_spill] sm:$0xff] }
 0x5e8   :  { %2099 = vmatprep.subr.mxu1 %v7522_v21  ;;  %v7533_v21 = vld [vmem:[#allocation136_spill] sm:$0xff] }
 0x5e9   :  { %2100 = vmatpush1.msra.mxu1 %v7523_v8  ;;  %v7534_v8 = vld [vmem:[#allocation137_spill] sm:$0xff] }
 0x5ea   :  { %2101 = vmatprep.subr.mxu1 %v7524_v60  ;;  %v7535_v60 = vld [vmem:[#allocation138_spill] sm:$0xff] }
 0x5eb   :  { %2102 = vmatpush1.msra.mxu1 %v7525_v52  ;;  %v5737_v52 = vld [vmem:[#allocation2 + $0x48] sm:$0xff] }
 0x5ec   :  { %2103 = vmatprep.subr.mxu1 %v7526_v16  ;;  %7536 = vst [vmem:[#allocation15_spill] sm:$0xff] %v5737_v52 }
 0x5ed   :  { %2104 = vmatpush1.msra.mxu1 %v7527_v14  ;;  %v5740_v14 = vld [vmem:[#allocation2 + $0x40] sm:$0xff] }
 0x5ee   :  { %2105 = vmatprep.subr.mxu1 %v7528_v62  ;;  %7537 = vst [vmem:[#allocation163_spill] sm:$0xff] %v5740_v14  ;;  %v7574_v62 = vld [vmem:[#allocation82_spill] sm:$0xff] }
 0x5ef   :  { %2106 = vmatpush1.msra.mxu1 %v7529_v39  ;;  %v5743_v39 = vld [vmem:[#allocation2 + $0x18] sm:$0xff] }
 0x5f0   :  { %2107 = vmatprep.subr.mxu1 %v7530_v31  ;;  %7538 = vst [vmem:[#allocation16_spill] sm:$0xff] %v5743_v39 }
 0x5f1   :  { %2108 = vmatpush1.msra.mxu1 %v7531_v4  ;;  %v5746_v4 = vld [vmem:[#allocation2 + $0x10] sm:$0xff] }
 0x5f2   :  { %2109 = vmatprep.subr.mxu1 %v7532_v27  ;;  %7539 = vst [vmem:[#allocation164_spill] sm:$0xff] %v5746_v4  ;;  %v7573_v27 = vld [vmem:[#allocation80_spill] sm:$0xff] }
 0x5f3   :  { %2110 = vmatpush1.msra.mxu1 %v7533_v21  ;;  %v5749_v21 = vld [vmem:[#allocation2 + $0x5e8] sm:$0xff] }
 0x5f4   :  { %2111 = vmatprep.subr.mxu1 %v7534_v8  ;;  %7540 = vst [vmem:[#allocation17_spill] sm:$0xff] %v5749_v21 }
 0x5f5   :  { %2112 = vmatpush1.msra.mxu1 %v7535_v60  ;;  %v5752_v60 = vld [vmem:[#allocation2 + $0x5e0] sm:$0xff] }
 0x5f6   :  { %2113 = vmatprep.subr.mxu1 %v5737_v52  ;;  %7541 = vst [vmem:[#allocation165_spill] sm:$0xff] %v5752_v60  ;;  %v5755_v52 = vld [vmem:[#allocation2 + $0x5b8] sm:$0xff] }
 0x5f7   :  { %2114 = vmatpush1.msra.mxu1 %v5740_v14  ;;  %7542 = vst [vmem:[#allocation18_spill] sm:$0xff] %v5755_v52  ;;  %v5758_v14 = vld [vmem:[#allocation2 + $0x5b0] sm:$0xff] }
 0x5f8   :  { %2115 = vmatprep.subr.mxu1 %v5743_v39  ;;  %7543 = vst [vmem:[#allocation166_spill] sm:$0xff] %v5758_v14  ;;  %v5761_v39 = vld [vmem:[#allocation2 + $0x588] sm:$0xff] }
 0x5f9   :  { %2116 = vmatpush1.msra.mxu1 %v5746_v4  ;;  %7544 = vst [vmem:[#allocation19_spill] sm:$0xff] %v5761_v39  ;;  %v5764_v4 = vld [vmem:[#allocation2 + $0x580] sm:$0xff] }
 0x5fa   :  { %2117 = vmatprep.subr.mxu1 %v5749_v21  ;;  %7545 = vst [vmem:[#allocation167_spill] sm:$0xff] %v5764_v4  ;;  %v5767_v21 = vld [vmem:[#allocation2 + $0x558] sm:$0xff] }
 0x5fb   :  { %2118 = vmatpush2.msra.mxu1 %v5752_v60  ;;  %7546 = vst [vmem:[#allocation21_spill] sm:$0xff] %v5767_v21  ;;  %v5770_v60 = vld [vmem:[#allocation2 + $0x550] sm:$0xff] }
 0x5fc   :  { %2119 = vmatprep.subr.mxu1 %v5755_v52  ;;  %7547 = vst [vmem:[#allocation168_spill] sm:$0xff] %v5770_v60  ;;  %v5773_v52 = vld [vmem:[#allocation2 + $0x528] sm:$0xff] }
 0x5fd   :  { %2120 = vmatpush2.msra.mxu1 %v5758_v14  ;;  %7548 = vst [vmem:[#allocation23_spill] sm:$0xff] %v5773_v52  ;;  %v5776_v14 = vld [vmem:[#allocation2 + $0x520] sm:$0xff] }
 0x5fe   :  { %2121 = vmatprep.subr.mxu1 %v5761_v39  ;;  %7549 = vst [vmem:[#allocation169_spill] sm:$0xff] %v5776_v14  ;;  %v5779_v39 = vld [vmem:[#allocation2 + $0x4f8] sm:$0xff] }
 0x5ff   :  { %2122 = vmatpush2.msra.mxu1 %v5764_v4  ;;  %7550 = vst [vmem:[#allocation25_spill] sm:$0xff] %v5779_v39  ;;  %v5782_v4 = vld [vmem:[#allocation2 + $0x4f0] sm:$0xff] }
 0x600   :  { %2123 = vmatprep.subr.mxu1 %v5767_v21  ;;  %7551 = vst [vmem:[#allocation170_spill] sm:$0xff] %v5782_v4  ;;  %v5785_v21 = vld [vmem:[#allocation2 + $0x4c8] sm:$0xff] }
 0x601   :  { %2124 = vmatpush2.msra.mxu1 %v5770_v60  ;;  %7552 = vst [vmem:[#allocation27_spill] sm:$0xff] %v5785_v21  ;;  %v5788_v60 = vld [vmem:[#allocation2 + $0x4c0] sm:$0xff] }
 0x602   :  { %2125 = vmatprep.subr.mxu1 %v5773_v52  ;;  %7553 = vst [vmem:[#allocation171_spill] sm:$0xff] %v5788_v60  ;;  %v5791_v52 = vld [vmem:[#allocation2 + $0x498] sm:$0xff] }
 0x603   :  { %2126 = vmatpush2.msra.mxu1 %v5776_v14  ;;  %7554 = vst [vmem:[#allocation29_spill] sm:$0xff] %v5791_v52  ;;  %v5794_v14 = vld [vmem:[#allocation2 + $0x490] sm:$0xff] }
 0x604   :  { %2127 = vmatprep.subr.mxu1 %v5779_v39  ;;  %7555 = vst [vmem:[#allocation172_spill] sm:$0xff] %v5794_v14  ;;  %v5797_v39 = vld [vmem:[#allocation2 + $0x468] sm:$0xff] }
 0x605   :  { %2128 = vmatpush2.msra.mxu1 %v5782_v4  ;;  %7556 = vst [vmem:[#allocation31_spill] sm:$0xff] %v5797_v39  ;;  %v5800_v4 = vld [vmem:[#allocation2 + $0x460] sm:$0xff] }
 0x606   :  { %2129 = vmatprep.subr.mxu1 %v5785_v21  ;;  %7557 = vst [vmem:[#allocation33_spill] sm:$0xff] %v5800_v4  ;;  %v5803_v21 = vld [vmem:[#allocation2 + $0x438] sm:$0xff] }
 0x607   :  { %2130 = vmatpush2.msra.mxu1 %v5788_v60  ;;  %7558 = vst [vmem:[#allocation35_spill] sm:$0xff] %v5803_v21  ;;  %v5806_v60 = vld [vmem:[#allocation2 + $0x430] sm:$0xff] }
 0x608   :  { %2131 = vmatprep.subr.mxu1 %v5791_v52  ;;  %7559 = vst [vmem:[#allocation37_spill] sm:$0xff] %v5806_v60  ;;  %v5809_v52 = vld [vmem:[#allocation2 + $0x408] sm:$0xff] }
 0x609   :  { %2132 = vmatpush2.msra.mxu1 %v5794_v14  ;;  %7560 = vst [vmem:[#allocation39_spill] sm:$0xff] %v5809_v52  ;;  %v5812_v14 = vld [vmem:[#allocation2 + $0x400] sm:$0xff] }
 0x60a   :  { %2133 = vmatprep.subr.mxu1 %v5797_v39  ;;  %7561 = vst [vmem:[#allocation41_spill] sm:$0xff] %v5812_v14  ;;  %v5815_v39 = vld [vmem:[#allocation2 + $0x3d8] sm:$0xff] }
 0x60b   :  { %2134 = vmatpush2.msra.mxu1 %v5800_v4  ;;  %7562 = vst [vmem:[#allocation43_spill] sm:$0xff] %v5815_v39  ;;  %v5818_v4 = vld [vmem:[#allocation2 + $0x3d0] sm:$0xff] }
 0x60c   :  { %2135 = vmatprep.subr.mxu1 %v5803_v21  ;;  %7563 = vst [vmem:[#allocation45_spill] sm:$0xff] %v5818_v4  ;;  %v5821_v21 = vld [vmem:[#allocation2 + $0x3a8] sm:$0xff] }
 0x60d   :  { %2136 = vmatpush2.msra.mxu1 %v5806_v60  ;;  %7564 = vst [vmem:[#allocation47_spill] sm:$0xff] %v5821_v21  ;;  %v5824_v60 = vld [vmem:[#allocation2 + $0x3a0] sm:$0xff] }
 0x60e   :  { %2137 = vmatprep.subr.mxu1 %v5809_v52  ;;  %7565 = vst [vmem:[#allocation49_spill] sm:$0xff] %v5824_v60  ;;  %v5827_v52 = vld [vmem:[#allocation2 + $0x378] sm:$0xff] }
 0x60f   :  { %2138 = vmatpush2.msra.mxu1 %v5812_v14  ;;  %7566 = vst [vmem:[#allocation51_spill] sm:$0xff] %v5827_v52  ;;  %v5830_v14 = vld [vmem:[#allocation2 + $0x370] sm:$0xff] }
 0x610   :  { %2139 = vmatprep.subr.mxu1 %v5815_v39  ;;  %7567 = vst [vmem:[#allocation53_spill] sm:$0xff] %v5830_v14  ;;  %v5833_v39 = vld [vmem:[#allocation2 + $0x348] sm:$0xff] }
 0x611   :  { %2140 = vmatpush2.msra.mxu1 %v5818_v4  ;;  %7568 = vst [vmem:[#allocation55_spill] sm:$0xff] %v5833_v39  ;;  %v5836_v4 = vld [vmem:[#allocation2 + $0x340] sm:$0xff] }
 0x612   :  { %2141 = vmatprep.subr.mxu1 %v5821_v21  ;;  %7569 = vst [vmem:[#allocation57_spill] sm:$0xff] %v5836_v4  ;;  %v5839_v21 = vld [vmem:[#allocation2 + $0x318] sm:$0xff] }
 0x613   :  { %2142 = vmatpush2.msra.mxu1 %v5824_v60  ;;  %7570 = vst [vmem:[#allocation59_spill] sm:$0xff] %v5839_v21  ;;  %v5842_v60 = vld [vmem:[#allocation2 + $0x310] sm:$0xff] }
 0x614   :  { %2143 = vmatprep.subr.mxu1 %v5827_v52  ;;  %7571 = vst [vmem:[#allocation61_spill] sm:$0xff] %v5842_v60  ;;  %v7572_v52 = vld [vmem:[#allocation8_spill] sm:$0xff] }
 0x615   :  { %2144 = vmatpush2.msra.mxu1 %v5830_v14 }
 0x616   :  { %2145 = vmatprep.subr.mxu1 %v5833_v39 }
 0x617   :  { %2146 = vmatpush2.msra.mxu1 %v5836_v4 }
 0x618   :  { %2147 = vmatprep.subr.mxu1 %v5839_v21 }
 0x619   :  { %2148 = vmatpush2.msra.mxu1 %v5842_v60 }
 0x61a   :  { %2269 = vmatprep.subr.mxu1 %v7572_v52 }
 0x65a   :  { %v1825_v8 = vpop.f32.mrf.mxu1  ;;  %v1896_v4 = vpop.f32.mrf.mxu0 }
 0x65b   :  { %v1972_v31 = vadd.f32 %v1825_v8, %v7573_v27  ;;  %v1986_v21 = vadd.f32 %v1896_v4, %v7575_v43 }
 0x65c   :  { %v1827_v14 = vpop.f32.mrf.mxu1  ;;  %v1898_v2 = vpop.f32.mrf.mxu0 }
 0x65d   :  { %v1973_v39 = vadd.f32 %v1827_v14, %v7574_v62  ;;  %v2690_v16 = vmul.f32 -1.442695, %v1972_v31  ;;  %v1987_v44 = vadd.f32 %v1898_v2, %v7576_v12  ;;  %v2692_v35 = vmul.f32 -1.442695, %v1986_v21  ;;  %v7577_v14 = vld [vmem:[#allocation103_spill] sm:$0xff] }
 0x65f   :  { %v2691_v34 = vmul.f32 -1.442695, %v1973_v39  ;;  %2845 = vpow2.f32 %v2690_v16  ;;  %v2693_v56 = vmul.f32 -1.442695, %v1987_v44 }
 0x661   :  { %2847 = vpow2.f32 %v2691_v34 }
 0x662   :  { %2849 = vpow2.f32 %v2692_v35  ;;  %v7578_v35 = vld [vmem:[#allocation104_spill] sm:$0xff] }
 0x66c   :  { %v2846_v30 = vpop.eup %2845 }
 0x66d   :  { %v1980_v52 = vadd.f32 1.0, %v2846_v30 }
 0x66e   :  { %v2848_v60 = vpop.eup %2847 }
 0x66f   :  { %v1981_v0 = vadd.f32 1.0, %v2848_v60  ;;  %2851 = vrcp.f32 %v1980_v52  ;;  %v2850_v8 = vpop.eup %2849 }
 0x670   :  { %2853 = vpow2.f32 %v2693_v56  ;;  %v1994_v2 = vadd.f32 1.0, %v2850_v8 }
 0x671   :  { %2855 = vrcp.f32 %v1981_v0 }
 0x67c   :  { %v2852_v16 = vpop.eup %2851 }
 0x67d   :  { %v2854_v39 = vpop.eup %2853 }
 0x67e   :  { %v2856_v12 = vpop.eup %2855  ;;  %v1995_v60 = vadd.f32 1.0, %v2854_v39  ;;  %v5864_v39 = vld [vmem:[#allocation2 + $0x2f0] sm:$0xff] }
 0x69a   :  { %v1967_v62 = vpop.f32.mrf.mxu1 }
 0x69b   :  { %v2000_v34 = vadd.f32 %v1967_v62, %v3955_v51 }
 0x69c   :  { %v1969_v27 = vpop.f32.mrf.mxu1 }
 0x69d   :  { %v2002_v43 = vmul.f32 %v2852_v16, %v2000_v34  ;;  %v2001_v4 = vadd.f32 %v1969_v27, %v3966_v13 }
 0x69f   :  { %v2004_v30 = vadd.f32 %v2002_v43, %v7577_v14  ;;  %v2003_v44 = vmul.f32 %v2856_v12, %v2001_v4  ;;  %v5876_v4 = vld [vmem:[#allocation2 + $0x298] sm:$0xff]  ;;  %v5880_v12 = vld [vmem:[#allocation2 + $0x290] sm:$0xff]  ;;  %v6032_v14 = vld [vmem:[#allocation2 + $0x500] sm:$0xff] }
 0x6a0   :  { %7582 = vst [vmem:[#allocation66_spill] sm:$0xff] %v6032_v14 }
 0x6a1   :  { %2857 = vtanh.f32 %v2004_v30  ;;  %v2005_v56 = vadd.f32 %v2003_v44, %v7578_v35  ;;  %v6036_v30 = vld [vmem:[#allocation2 + $0x4d8] sm:$0xff]  ;;  %v6040_v44 = vld [vmem:[#allocation2 + $0x4d0] sm:$0xff] }
 0x6a2   :  { %2859 = vrcp.f32 %v1994_v2  ;;  %v5884_v2 = vld [vmem:[#allocation2 + $0x268] sm:$0xff]  ;;  %7584 = vst [vmem:[#allocation68_spill] sm:$0xff] %v6036_v30  ;;  %7586 = vst [vmem:[#allocation69_spill] sm:$0xff] %v6040_v44  ;;  %v7589_v35 = vld [vmem:[#allocation99_spill] sm:$0xff] }
 0x6a3   :  { %2861 = vtanh.f32 %v2005_v56  ;;  %v6048_v56 = vld [vmem:[#allocation2 + $0x4a0] sm:$0xff] }
 0x6a4   :  { %2863 = vrcp.f32 %v1995_v60  ;;  %v6044_v60 = vld [vmem:[#allocation2 + $0x4a8] sm:$0xff]  ;;  %7590 = vst [vmem:[#allocation76_spill] sm:$0xff] %v6048_v56 }
 0x6a5   :  { %7588 = vst [vmem:[#allocation74_spill] sm:$0xff] %v6044_v60 }
 0x6ae   :  { %v2858_v0 = vpop.eup %2857 }
 0x6af   :  { %v2860_v31 = vpop.eup %2859  ;;  %v2008_v21 = vsub.f32 %v5444_v10, %v2858_v0  ;;  %v5868_v10 = vld [vmem:[#allocation2 + $0x2c8] sm:$0xff] }
 0x6b0   :  { %v2862_v52 = vpop.eup %2861 }
 0x6b1   :  { %v2009_v62 = vsub.f32 %v5446_v20, %v2862_v52  ;;  %v2010_v34 = vmul.f32 %v2860_v31, %v2008_v21  ;;  %v2864_v16 = vpop.eup %2863  ;;  %v5872_v20 = vld [vmem:[#allocation2 + $0x2c0] sm:$0xff]  ;;  %v6052_v31 = vld [vmem:[#allocation2 + $0x478] sm:$0xff] }
 0x6b2   :  { %7592 = vst [vmem:[#allocation108_spill] sm:$0xff] %v6052_v31  ;;  %v7593_v21 = vld [vmem:[#allocation71_spill] sm:$0xff] }
 0x6b3   :  { %v2011_v8 = vmul.f32 %v2864_v16, %v2009_v62  ;;  %v5856_v27 = vadd.f32 %v2858_v0, %v2010_v34  ;;  %v7591_v0 = vld [vmem:[#allocation100_spill] sm:$0xff]  ;;  %v6060_v34 = vld [vmem:[#allocation2 + $0x448] sm:$0xff]  ;;  %v7597_v16 = vld [vmem:[#allocation79_spill] sm:$0xff] }
 0x6b4   :  { %v7595_v62 = vld [vmem:[#allocation72_spill] sm:$0xff]  ;;  %7596 = vst [vmem:[#allocation110_spill] sm:$0xff] %v6060_v34 }
 0x6b5   :  { %v5858_v43 = vadd.f32 %v2862_v52, %v2011_v8  ;;  %v6056_v52 = vld [vmem:[#allocation2 + $0x470] sm:$0xff]  ;;  %v6064_v8 = vld [vmem:[#allocation2 + $0x440] sm:$0xff] }
 0x6b6   :  { %7594 = vst [vmem:[#allocation109_spill] sm:$0xff] %v6056_v52  ;;  %7598 = vst [vmem:[#allocation111_spill] sm:$0xff] %v6064_v8 }
 0x6b7   :  { %2078 = vmatprep.mubr.f32.mxu0 %v5858_v43  ;;  %2149 = vmatprep.mubr.f32.mxu1 %v5858_v43 }
 0x6b8   :  { %2079 = vmatmul.mubr.f32.vlgmr.msra.gmra.mxu0 %v5856_v27  ;;  %2150 = vmatmul.mubr.f32.vlgmr.msra.gmra.mxu1 %v5856_v27 }
 0x6b9   :  { %2157 = vmatpush1.msra.mxu0 %v5864_v39  ;;  %2220 = vmatprep.mubr.f32.mxu0 %v5858_v43 }
 0x6ba   :  { %2158 = vmatprep.subr.mxu0 %v5868_v10  ;;  %2270 = vmatpush1.msra.mxu1 %v5455_v61  ;;  %v5888_v61 = vld [vmem:[#allocation2 + $0x260] sm:$0xff] }
 0x6bb   :  { %2159 = vmatpush1.msra.mxu0 %v5872_v20  ;;  %2271 = vmatprep.subr.mxu1 %v5459_v6  ;;  %v5892_v6 = vld [vmem:[#allocation2 + $0x238] sm:$0xff] }
 0x6bc   :  { %2160 = vmatprep.subr.mxu0 %v5876_v4  ;;  %2272 = vmatpush1.msra.mxu1 %v5463_v37  ;;  %v5896_v37 = vld [vmem:[#allocation2 + $0x230] sm:$0xff] }
 0x6bd   :  { %2161 = vmatpush1.msra.mxu0 %v5880_v12  ;;  %2273 = vmatprep.subr.mxu1 %v5467_v25  ;;  %v5900_v25 = vld [vmem:[#allocation2 + $0x208] sm:$0xff] }
 0x6be   :  { %2162 = vmatprep.subr.mxu0 %v5884_v2  ;;  %2274 = vmatpush1.msra.mxu1 %v5471_v59  ;;  %v5904_v59 = vld [vmem:[#allocation2 + $0x200] sm:$0xff] }
 0x6bf   :  { %2163 = vmatpush1.msra.mxu0 %v5888_v61  ;;  %2275 = vmatprep.subr.mxu1 %v5475_v19  ;;  %v5908_v19 = vld [vmem:[#allocation2 + $0x1d8] sm:$0xff] }
 0x6c0   :  { %2164 = vmatprep.subr.mxu0 %v5892_v6  ;;  %2276 = vmatpush1.msra.mxu1 %v5479_v63  ;;  %v5912_v63 = vld [vmem:[#allocation2 + $0x1d0] sm:$0xff] }
 0x6c1   :  { %2165 = vmatpush1.msra.mxu0 %v5896_v37  ;;  %2277 = vmatprep.subr.mxu1 %v5483_v1  ;;  %v5916_v1 = vld [vmem:[#allocation2 + $0x1a8] sm:$0xff] }
 0x6c2   :  { %2166 = vmatprep.subr.mxu0 %v5900_v25  ;;  %2278 = vmatpush1.msra.mxu1 %v5487_v22  ;;  %v5920_v22 = vld [vmem:[#allocation2 + $0x1a0] sm:$0xff] }
 0x6c3   :  { %2167 = vmatpush1.msra.mxu0 %v5904_v59  ;;  %2279 = vmatprep.subr.mxu1 %v5491_v7  ;;  %v5924_v7 = vld [vmem:[#allocation2 + $0x178] sm:$0xff] }
 0x6c4   :  { %2168 = vmatprep.subr.mxu0 %v5908_v19  ;;  %2280 = vmatpush1.msra.mxu1 %v5495_v49  ;;  %v5928_v49 = vld [vmem:[#allocation2 + $0x170] sm:$0xff] }
 0x6c5   :  { %2169 = vmatpush1.msra.mxu0 %v5912_v63  ;;  %2281 = vmatprep.subr.mxu1 %v5499_v23  ;;  %v5932_v23 = vld [vmem:[#allocation2 + $0x148] sm:$0xff] }
 0x6c6   :  { %2170 = vmatprep.subr.mxu0 %v5916_v1  ;;  %2282 = vmatpush1.msra.mxu1 %v5503_v40  ;;  %v5936_v40 = vld [vmem:[#allocation2 + $0x140] sm:$0xff] }
 0x6c7   :  { %2171 = vmatpush1.msra.mxu0 %v5920_v22  ;;  %2283 = vmatprep.subr.mxu1 %v5507_v45  ;;  %v5940_v45 = vld [vmem:[#allocation2 + $0x118] sm:$0xff] }
 0x6c8   :  { %2172 = vmatprep.subr.mxu0 %v5924_v7  ;;  %2284 = vmatpush1.msra.mxu1 %v5511_v9  ;;  %v5944_v9 = vld [vmem:[#allocation2 + $0x110] sm:$0xff] }
 0x6c9   :  { %2173 = vmatpush1.msra.mxu0 %v5928_v49  ;;  %2285 = vmatprep.subr.mxu1 %v5515_v11  ;;  %v5948_v11 = vld [vmem:[#allocation2 + $0xe8] sm:$0xff] }
 0x6ca   :  { %2174 = vmatprep.subr.mxu0 %v5932_v23  ;;  %2286 = vmatpush1.msra.mxu1 %v5519_v41  ;;  %v5952_v41 = vld [vmem:[#allocation2 + $0xe0] sm:$0xff] }
 0x6cb   :  { %2175 = vmatpush1.msra.mxu0 %v5936_v40  ;;  %2287 = vmatprep.subr.mxu1 %v5523_v47  ;;  %v5956_v47 = vld [vmem:[#allocation2 + $0xb8] sm:$0xff] }
 0x6cc   :  { %2176 = vmatprep.subr.mxu0 %v5940_v45  ;;  %2288 = vmatpush1.msra.mxu1 %v5527_v24  ;;  %v5960_v24 = vld [vmem:[#allocation2 + $0xb0] sm:$0xff] }
 0x6cd   :  { %2177 = vmatpush1.msra.mxu0 %v5944_v9  ;;  %2289 = vmatprep.subr.mxu1 %v5531_v5  ;;  %v5964_v5 = vld [vmem:[#allocation2 + $0x88] sm:$0xff] }
 0x6ce   :  { %2178 = vmatprep.subr.mxu0 %v5948_v11  ;;  %2290 = vmatpush1.msra.mxu1 %v5535_v32  ;;  %v5968_v32 = vld [vmem:[#allocation2 + $0x80] sm:$0xff] }
 0x6cf   :  { %2179 = vmatpush1.msra.mxu0 %v5952_v41  ;;  %2291 = vmatprep.subr.mxu1 %v5539_v53  ;;  %v5972_v53 = vld [vmem:[#allocation2 + $0x58] sm:$0xff] }
 0x6d0   :  { %2180 = vmatprep.subr.mxu0 %v5956_v47  ;;  %2292 = vmatpush1.msra.mxu1 %v5543_v15  ;;  %v5976_v15 = vld [vmem:[#allocation2 + $0x50] sm:$0xff] }
 0x6d1   :  { %2181 = vmatpush1.msra.mxu0 %v5960_v24  ;;  %2293 = vmatprep.subr.mxu1 %v5547_v26  ;;  %v5980_v26 = vld [vmem:[#allocation2 + $0x28] sm:$0xff] }
 0x6d2   :  { %2182 = vmatprep.subr.mxu0 %v5964_v5  ;;  %2294 = vmatpush1.msra.mxu1 %v5551_v17  ;;  %v5984_v17 = vld [vmem:[#allocation2 + $0x20] sm:$0xff] }
 0x6d3   :  { %2183 = vmatpush1.msra.mxu0 %v5968_v32  ;;  %2295 = vmatprep.subr.mxu1 %v5555_v36  ;;  %v5988_v36 = vld [vmem:[#allocation2 + $0x5f8] sm:$0xff] }
 0x6d4   :  { %2184 = vmatprep.subr.mxu0 %v5972_v53  ;;  %2296 = vmatpush1.msra.mxu1 %v5559_v55  ;;  %v5992_v55 = vld [vmem:[#allocation2 + $0x5f0] sm:$0xff] }
 0x6d5   :  { %2185 = vmatpush1.msra.mxu0 %v5976_v15  ;;  %2297 = vmatprep.subr.mxu1 %v5563_v3  ;;  %v5996_v3 = vld [vmem:[#allocation2 + $0x5c8] sm:$0xff] }
 0x6d6   :  { %2186 = vmatprep.subr.mxu0 %v5980_v26  ;;  %2298 = vmatpush1.msra.mxu1 %v5567_v38  ;;  %v6000_v38 = vld [vmem:[#allocation2 + $0x5c0] sm:$0xff] }
 0x6d7   :  { %2187 = vmatpush1.msra.mxu0 %v5984_v17  ;;  %2299 = vmatprep.subr.mxu1 %v5571_v29  ;;  %v6004_v29 = vld [vmem:[#allocation2 + $0x598] sm:$0xff] }
 0x6d8   :  { %2188 = vmatprep.subr.mxu0 %v5988_v36  ;;  %2300 = vmatpush1.msra.mxu1 %v5575_v33  ;;  %v6008_v33 = vld [vmem:[#allocation2 + $0x590] sm:$0xff] }
 0x6d9   :  { %2189 = vmatpush2.msra.mxu0 %v5992_v55  ;;  %2301 = vmatprep.subr.mxu1 %v5579_v42  ;;  %v6012_v42 = vld [vmem:[#allocation2 + $0x568] sm:$0xff] }
 0x6da   :  { %2190 = vmatprep.subr.mxu0 %v5996_v3  ;;  %2302 = vmatpush2.msra.mxu1 %v5583_v46  ;;  %v6016_v46 = vld [vmem:[#allocation2 + $0x560] sm:$0xff] }
 0x6db   :  { %2191 = vmatpush2.msra.mxu0 %v6000_v38  ;;  %2303 = vmatprep.subr.mxu1 %v5587_v50  ;;  %v6020_v50 = vld [vmem:[#allocation2 + $0x538] sm:$0xff] }
 0x6dc   :  { %2192 = vmatprep.subr.mxu0 %v6004_v29  ;;  %2304 = vmatpush2.msra.mxu1 %v5591_v54  ;;  %v6024_v54 = vld [vmem:[#allocation2 + $0x530] sm:$0xff] }
 0x6dd   :  { %2193 = vmatpush2.msra.mxu0 %v6008_v33  ;;  %2305 = vmatprep.subr.mxu1 %v5595_v58  ;;  %7579 = vst [vmem:[#allocation63_spill] sm:$0xff] %v6024_v54  ;;  %v6028_v58 = vld [vmem:[#allocation2 + $0x508] sm:$0xff] }
 0x6de   :  { %2194 = vmatprep.subr.mxu0 %v6012_v42  ;;  %2306 = vmatpush2.msra.mxu1 %v5599_v18  ;;  %7580 = vst [vmem:[#allocation65_spill] sm:$0xff] %v6028_v58  ;;  %v7581_v18 = vld [vmem:[#allocation73_spill] sm:$0xff] }
 0x6df   :  { %2195 = vmatpush2.msra.mxu0 %v6016_v46  ;;  %2307 = vmatprep.subr.mxu1 %v5603_v57  ;;  %v7583_v57 = vld [vmem:[#allocation75_spill] sm:$0xff] }
 0x6e0   :  { %2196 = vmatprep.subr.mxu0 %v6020_v50  ;;  %2308 = vmatpush2.msra.mxu1 %v5607_v28  ;;  %v7585_v28 = vld [vmem:[#allocation83_spill] sm:$0xff] }
 0x6e1   :  { %2197 = vmatpush2.msra.mxu0 %v6024_v54  ;;  %2309 = vmatprep.subr.mxu1 %v5611_v48  ;;  %v7587_v48 = vld [vmem:[#allocation85_spill] sm:$0xff] }
 0x6e2   :  { %2198 = vmatprep.subr.mxu0 %v6028_v58  ;;  %2310 = vmatpush2.msra.mxu1 %v7581_v18  ;;  %v7599_v18 = vld [vmem:[#allocation81_spill] sm:$0xff] }
 0x6e3   :  { %2199 = vmatpush2.msra.mxu0 %v6032_v14  ;;  %2311 = vmatprep.subr.mxu1 %v7583_v57  ;;  %v6068_v57 = vld [vmem:[#allocation2 + $0x418] sm:$0xff] }
 0x6e4   :  { %2200 = vmatprep.subr.mxu0 %v6036_v30  ;;  %2312 = vmatpush2.msra.mxu1 %v7585_v28  ;;  %7600 = vst [vmem:[#allocation112_spill] sm:$0xff] %v6068_v57  ;;  %v7601_v28 = vld [vmem:[#allocation97_spill] sm:$0xff] }
 0x6e5   :  { %2201 = vmatpush2.msra.mxu0 %v6040_v44  ;;  %2313 = vmatprep.subr.mxu1 %v7587_v48  ;;  %v6072_v48 = vld [vmem:[#allocation2 + $0x410] sm:$0xff] }
 0x6e6   :  { %2202 = vmatprep.subr.mxu0 %v6044_v60  ;;  %2314 = vmatpush2.msra.mxu1 %v7589_v35  ;;  %7602 = vst [vmem:[#allocation113_spill] sm:$0xff] %v6072_v48  ;;  %v7603_v35 = vld [vmem:[#allocation98_spill] sm:$0xff] }
 0x6e7   :  { %2203 = vmatpush2.msra.mxu0 %v6048_v56  ;;  %2315 = vmatprep.subr.mxu1 %v7591_v0  ;;  %v6076_v0 = vld [vmem:[#allocation2 + $0x3e8] sm:$0xff]  ;;  %v7692_v60 = vld [vmem:[#allocation94_spill] sm:$0xff] }
 0x6e8   :  { %2204 = vmatprep.subr.mxu0 %v6052_v31  ;;  %2316 = vmatpush2.msra.mxu1 %v7593_v21  ;;  %7604 = vst [vmem:[#allocation114_spill] sm:$0xff] %v6076_v0  ;;  %v7605_v21 = vld [vmem:[#allocation155_spill] sm:$0xff]  ;;  %v7691_v31 = vld [vmem:[#allocation86_spill] sm:$0xff] }
 0x6e9   :  { %2205 = vmatpush2.msra.mxu0 %v6056_v52  ;;  %2317 = vmatprep.subr.mxu1 %v7595_v62  ;;  %v6080_v62 = vld [vmem:[#allocation2 + $0x3e0] sm:$0xff] }
 0x6ea   :  { %2206 = vmatprep.subr.mxu0 %v6060_v34  ;;  %2318 = vmatpush2.msra.mxu1 %v7597_v16  ;;  %7606 = vst [vmem:[#allocation115_spill] sm:$0xff] %v6080_v62  ;;  %v7607_v16 = vld [vmem:[#allocation156_spill] sm:$0xff]  ;;  %v7634_v34 = vld [vmem:[#allocation119_spill] sm:$0xff] }
 0x6eb   :  { %2207 = vmatpush2.msra.mxu0 %v6064_v8  ;;  %2319 = vmatprep.subr.mxu1 %v7599_v18  ;;  %v6084_v18 = vld [vmem:[#allocation2 + $0x3b8] sm:$0xff]  ;;  %v7621_v8 = vld [vmem:[#allocation13_spill] sm:$0xff]  ;;  %v7690_v52 = vld [vmem:[#allocation84_spill] sm:$0xff] }
 0x6ec   :  { %2208 = vmatprep.subr.mxu0 %v6068_v57  ;;  %2320 = vmatpush2.msra.mxu1 %v7601_v28  ;;  %7608 = vst [vmem:[#allocation116_spill] sm:$0xff] %v6084_v18  ;;  %v7609_v28 = vld [vmem:[#allocation157_spill] sm:$0xff]  ;;  %v7618_v57 = vld [vmem:[#allocation50_spill] sm:$0xff] }
 0x6ed   :  { %2209 = vmatpush2.msra.mxu0 %v6072_v48  ;;  %2321 = vmatprep.subr.mxu1 %v7603_v35  ;;  %v6088_v48 = vld [vmem:[#allocation2 + $0x3b0] sm:$0xff] }
 0x6ee   :  { %2210 = vmatprep.subr.mxu0 %v6076_v0  ;;  %2322 = vmatpush2.msra.mxu1 %v7605_v21  ;;  %7610 = vst [vmem:[#allocation20_spill] sm:$0xff] %v6088_v48  ;;  %v7611_v35 = vld [vmem:[#allocation158_spill] sm:$0xff]  ;;  %v6092_v0 = vld [vmem:[#allocation2 + $0x388] sm:$0xff]  ;;  %v7613_v21 = vld [vmem:[#allocation11_spill] sm:$0xff] }
 0x6ef   :  { %2211 = vmatpush2.msra.mxu0 %v6080_v62  ;;  %2323 = vmatprep.subr.mxu1 %v7607_v16  ;;  %7612 = vst [vmem:[#allocation22_spill] sm:$0xff] %v6092_v0  ;;  %v6096_v62 = vld [vmem:[#allocation2 + $0x380] sm:$0xff]  ;;  %v7615_v16 = vld [vmem:[#allocation159_spill] sm:$0xff] }
 0x6f0   :  { %2212 = vmatprep.subr.mxu0 %v6084_v18  ;;  %2324 = vmatpush2.msra.mxu1 %v7609_v28  ;;  %7614 = vst [vmem:[#allocation24_spill] sm:$0xff] %v6096_v62  ;;  %v7616_v18 = vld [vmem:[#allocation48_spill] sm:$0xff] }
 0x6f1   :  { %2213 = vmatpush2.msra.mxu0 %v6088_v48  ;;  %2325 = vmatprep.subr.mxu1 %v7611_v35  ;;  %v7617_v28 = vld [vmem:[#allocation12_spill] sm:$0xff] }
 0x6f2   :  { %2214 = vmatprep.subr.mxu0 %v6092_v0  ;;  %2326 = vmatpush2.msra.mxu1 %v7613_v21  ;;  %v7619_v48 = vld [vmem:[#allocation160_spill] sm:$0xff]  ;;  %v7622_v0 = vld [vmem:[#allocation54_spill] sm:$0xff]  ;;  %v7623_v21 = vld [vmem:[#allocation161_spill] sm:$0xff] }
 0x6f3   :  { %2215 = vmatpush2.msra.mxu0 %v6096_v62  ;;  %2327 = vmatprep.subr.mxu1 %v7615_v16  ;;  %v7620_v35 = vld [vmem:[#allocation52_spill] sm:$0xff]  ;;  %v7625_v16 = vld [vmem:[#allocation58_spill] sm:$0xff] }
 0x6f4   :  { %2216 = vmatprep.subr.mxu0 %v7616_v18  ;;  %2328 = vmatpush2.msra.mxu1 %v7617_v28  ;;  %v7624_v62 = vld [vmem:[#allocation56_spill] sm:$0xff]  ;;  %v7626_v18 = vld [vmem:[#allocation14_spill] sm:$0xff] }
 0x6f5   :  { %2217 = vmatpush2.msra.mxu0 %v7618_v57  ;;  %2329 = vmatprep.subr.mxu1 %v7619_v48  ;;  %v7627_v28 = vld [vmem:[#allocation60_spill] sm:$0xff]  ;;  %v7628_v57 = vld [vmem:[#allocation162_spill] sm:$0xff] }
 0x6f6   :  { %2218 = vmatprep.subr.mxu0 %v7620_v35  ;;  %2330 = vmatpush2.msra.mxu1 %v7621_v8  ;;  %v7629_v48 = vld [vmem:[#allocation62_spill] sm:$0xff]  ;;  %v7630_v35 = vld [vmem:[#allocation64_spill] sm:$0xff]  ;;  %v7631_v8 = vld [vmem:[#allocation67_spill] sm:$0xff] }
 0x6f7   :  { %2219 = vmatpush2.msra.mxu0 %v7622_v0  ;;  %2331 = vmatprep.subr.mxu1 %v7623_v21  ;;  %v7632_v0 = vld [vmem:[#allocation117_spill] sm:$0xff]  ;;  %v7633_v21 = vld [vmem:[#allocation118_spill] sm:$0xff] }
 0x6f8   :  { %2221 = vmatmul.mubr.f32.vlgmr.msra.gmra.mxu0 %v5856_v27  ;;  %2340 = vmatprep.subr.mxu0 %v7624_v62  ;;  %v7635_v62 = vld [vmem:[#allocation120_spill] sm:$0xff] }
 0x6f9   :  { %2341 = vmatpush1.msra.mxu0 %v7625_v16  ;;  %2332 = vmatpush2.msra.mxu1 %v7626_v18  ;;  %v7636_v16 = vld [vmem:[#allocation121_spill] sm:$0xff]  ;;  %v7637_v18 = vld [vmem:[#allocation122_spill] sm:$0xff] }
 0x6fa   :  { %2342 = vmatprep.subr.mxu0 %v7627_v28  ;;  %2411 = vmatprep.subr.mxu1 %v7628_v57  ;;  %v7638_v28 = vld [vmem:[#allocation123_spill] sm:$0xff]  ;;  %v7639_v57 = vld [vmem:[#allocation124_spill] sm:$0xff] }
 0x6fb   :  { %2343 = vmatpush1.msra.mxu0 %v7629_v48  ;;  %v7640_v48 = vld [vmem:[#allocation125_spill] sm:$0xff] }
 0x6fc   :  { %2344 = vmatprep.subr.mxu0 %v7630_v35  ;;  %v7641_v35 = vld [vmem:[#allocation126_spill] sm:$0xff] }
 0x6fd   :  { %2345 = vmatpush1.msra.mxu0 %v7631_v8  ;;  %v7642_v8 = vld [vmem:[#allocation127_spill] sm:$0xff] }
 0x6fe   :  { %2346 = vmatprep.subr.mxu0 %v7632_v0  ;;  %v7643_v0 = vld [vmem:[#allocation128_spill] sm:$0xff] }
 0x6ff   :  { %2347 = vmatpush1.msra.mxu0 %v7633_v21  ;;  %v7644_v21 = vld [vmem:[#allocation129_spill] sm:$0xff] }
 0x700   :  { %2348 = vmatprep.subr.mxu0 %v7634_v34  ;;  %v7645_v34 = vld [vmem:[#allocation130_spill] sm:$0xff] }
 0x701   :  { %2349 = vmatpush1.msra.mxu0 %v7635_v62  ;;  %v7646_v62 = vld [vmem:[#allocation131_spill] sm:$0xff] }
 0x702   :  { %2350 = vmatprep.subr.mxu0 %v7636_v16  ;;  %v7647_v16 = vld [vmem:[#allocation132_spill] sm:$0xff] }
 0x703   :  { %2351 = vmatpush1.msra.mxu0 %v7637_v18  ;;  %v7648_v18 = vld [vmem:[#allocation133_spill] sm:$0xff] }
 0x704   :  { %2352 = vmatprep.subr.mxu0 %v7638_v28  ;;  %v7649_v28 = vld [vmem:[#allocation134_spill] sm:$0xff] }
 0x705   :  { %2353 = vmatpush1.msra.mxu0 %v7639_v57  ;;  %v7650_v57 = vld [vmem:[#allocation135_spill] sm:$0xff] }
 0x706   :  { %2354 = vmatprep.subr.mxu0 %v7640_v48  ;;  %v7651_v48 = vld [vmem:[#allocation136_spill] sm:$0xff] }
 0x707   :  { %2355 = vmatpush1.msra.mxu0 %v7641_v35  ;;  %v7652_v35 = vld [vmem:[#allocation137_spill] sm:$0xff] }
 0x708   :  { %2356 = vmatprep.subr.mxu0 %v7642_v8  ;;  %v7653_v8 = vld [vmem:[#allocation138_spill] sm:$0xff] }
 0x709   :  { %2357 = vmatpush1.msra.mxu0 %v7643_v0  ;;  %v7654_v0 = vld [vmem:[#allocation15_spill] sm:$0xff] }
 0x70a   :  { %2358 = vmatprep.subr.mxu0 %v7644_v21  ;;  %v7655_v21 = vld [vmem:[#allocation163_spill] sm:$0xff] }
 0x70b   :  { %2359 = vmatpush1.msra.mxu0 %v7645_v34  ;;  %v7656_v34 = vld [vmem:[#allocation16_spill] sm:$0xff] }
 0x70c   :  { %2360 = vmatprep.subr.mxu0 %v7646_v62  ;;  %v7657_v62 = vld [vmem:[#allocation164_spill] sm:$0xff] }
 0x70d   :  { %2361 = vmatpush1.msra.mxu0 %v7647_v16  ;;  %v7658_v16 = vld [vmem:[#allocation17_spill] sm:$0xff] }
 0x70e   :  { %2362 = vmatprep.subr.mxu0 %v7648_v18  ;;  %v7659_v18 = vld [vmem:[#allocation165_spill] sm:$0xff] }
 0x70f   :  { %2363 = vmatpush1.msra.mxu0 %v7649_v28  ;;  %v7660_v28 = vld [vmem:[#allocation18_spill] sm:$0xff] }
 0x710   :  { %2364 = vmatprep.subr.mxu0 %v7650_v57  ;;  %v7661_v57 = vld [vmem:[#allocation166_spill] sm:$0xff] }
 0x711   :  { %2365 = vmatpush1.msra.mxu0 %v7651_v48  ;;  %v7662_v48 = vld [vmem:[#allocation19_spill] sm:$0xff] }
 0x712   :  { %2366 = vmatprep.subr.mxu0 %v7652_v35  ;;  %v7663_v35 = vld [vmem:[#allocation167_spill] sm:$0xff] }
 0x713   :  { %2367 = vmatpush1.msra.mxu0 %v7653_v8  ;;  %v7664_v8 = vld [vmem:[#allocation21_spill] sm:$0xff] }
 0x714   :  { %2368 = vmatprep.subr.mxu0 %v7654_v0  ;;  %v7665_v0 = vld [vmem:[#allocation168_spill] sm:$0xff] }
 0x715   :  { %2369 = vmatpush1.msra.mxu0 %v7655_v21  ;;  %v7666_v21 = vld [vmem:[#allocation23_spill] sm:$0xff] }
 0x716   :  { %2370 = vmatprep.subr.mxu0 %v7656_v34  ;;  %v7667_v34 = vld [vmem:[#allocation169_spill] sm:$0xff] }
 0x717   :  { %2371 = vmatpush1.msra.mxu0 %v7657_v62  ;;  %v7668_v62 = vld [vmem:[#allocation25_spill] sm:$0xff] }
 0x718   :  { %2372 = vmatprep.subr.mxu0 %v7658_v16  ;;  %v7669_v16 = vld [vmem:[#allocation170_spill] sm:$0xff] }
 0x719   :  { %2373 = vmatpush2.msra.mxu0 %v7659_v18  ;;  %v7670_v18 = vld [vmem:[#allocation27_spill] sm:$0xff] }
 0x71a   :  { %2374 = vmatprep.subr.mxu0 %v7660_v28  ;;  %v7671_v28 = vld [vmem:[#allocation171_spill] sm:$0xff] }
 0x71b   :  { %2375 = vmatpush2.msra.mxu0 %v7661_v57  ;;  %v7672_v57 = vld [vmem:[#allocation29_spill] sm:$0xff] }
 0x71c   :  { %2376 = vmatprep.subr.mxu0 %v7662_v48  ;;  %v7673_v48 = vld [vmem:[#allocation172_spill] sm:$0xff] }
 0x71d   :  { %2377 = vmatpush2.msra.mxu0 %v7663_v35  ;;  %v7674_v35 = vld [vmem:[#allocation31_spill] sm:$0xff] }
 0x71e   :  { %2378 = vmatprep.subr.mxu0 %v7664_v8  ;;  %v7675_v8 = vld [vmem:[#allocation33_spill] sm:$0xff] }
 0x71f   :  { %2379 = vmatpush2.msra.mxu0 %v7665_v0  ;;  %v7676_v0 = vld [vmem:[#allocation35_spill] sm:$0xff] }
 0x720   :  { %2380 = vmatprep.subr.mxu0 %v7666_v21  ;;  %v7677_v21 = vld [vmem:[#allocation37_spill] sm:$0xff] }
 0x721   :  { %2381 = vmatpush2.msra.mxu0 %v7667_v34  ;;  %v7678_v34 = vld [vmem:[#allocation39_spill] sm:$0xff] }
 0x722   :  { %2382 = vmatprep.subr.mxu0 %v7668_v62  ;;  %v7679_v62 = vld [vmem:[#allocation41_spill] sm:$0xff] }
 0x723   :  { %2383 = vmatpush2.msra.mxu0 %v7669_v16  ;;  %v7680_v16 = vld [vmem:[#allocation43_spill] sm:$0xff] }
 0x724   :  { %2384 = vmatprep.subr.mxu0 %v7670_v18  ;;  %v7681_v18 = vld [vmem:[#allocation45_spill] sm:$0xff] }
 0x725   :  { %2385 = vmatpush2.msra.mxu0 %v7671_v28  ;;  %v7682_v28 = vld [vmem:[#allocation47_spill] sm:$0xff] }
 0x726   :  { %2386 = vmatprep.subr.mxu0 %v7672_v57  ;;  %v7683_v57 = vld [vmem:[#allocation49_spill] sm:$0xff] }
 0x727   :  { %2387 = vmatpush2.msra.mxu0 %v7673_v48  ;;  %v7684_v48 = vld [vmem:[#allocation51_spill] sm:$0xff] }
 0x728   :  { %2388 = vmatprep.subr.mxu0 %v7674_v35  ;;  %v7685_v35 = vld [vmem:[#allocation53_spill] sm:$0xff] }
 0x729   :  { %2389 = vmatpush2.msra.mxu0 %v7675_v8  ;;  %v7686_v8 = vld [vmem:[#allocation55_spill] sm:$0xff] }
 0x72a   :  { %2390 = vmatprep.subr.mxu0 %v7676_v0  ;;  %v7687_v0 = vld [vmem:[#allocation57_spill] sm:$0xff] }
 0x72b   :  { %2391 = vmatpush2.msra.mxu0 %v7677_v21  ;;  %v7688_v21 = vld [vmem:[#allocation59_spill] sm:$0xff] }
 0x72c   :  { %2392 = vmatprep.subr.mxu0 %v7678_v34  ;;  %v7689_v34 = vld [vmem:[#allocation61_spill] sm:$0xff] }
 0x72d   :  { %2393 = vmatpush2.msra.mxu0 %v7679_v62 }
 0x72e   :  { %2394 = vmatprep.subr.mxu0 %v7680_v16 }
 0x72f   :  { %2395 = vmatpush2.msra.mxu0 %v7681_v18 }
 0x730   :  { %2396 = vmatprep.subr.mxu0 %v7682_v28 }
 0x731   :  { %2397 = vmatpush2.msra.mxu0 %v7683_v57 }
 0x732   :  { %2398 = vmatprep.subr.mxu0 %v7684_v48 }
 0x733   :  { %2399 = vmatpush2.msra.mxu0 %v7685_v35 }
 0x734   :  { %2400 = vmatprep.subr.mxu0 %v7686_v8 }
 0x735   :  { %2401 = vmatpush2.msra.mxu0 %v7687_v0  ;;  %v7693_v0 = vld [vmem:[#allocation95_spill] sm:$0xff] }
 0x736   :  { %2402 = vmatprep.subr.mxu0 %v7688_v21 }
 0x737   :  { %2403 = vmatpush2.msra.mxu0 %v7689_v34 }
 0x778   :  { %v2080_v62 = vpop.f32.mrf.mxu0  ;;  %v2151_v48 = vpop.f32.mrf.mxu1 }
 0x779   :  { %v2227_v18 = vadd.f32 %v2080_v62, %v7690_v52  ;;  %v2241_v8 = vadd.f32 %v2151_v48, %v7692_v60 }
 0x77a   :  { %v2082_v16 = vpop.f32.mrf.mxu0  ;;  %v2153_v35 = vpop.f32.mrf.mxu1 }
 0x77b   :  { %v2228_v28 = vadd.f32 %v2082_v16, %v7691_v31  ;;  %v2694_v56 = vmul.f32 -1.442695, %v2227_v18  ;;  %v2242_v30 = vadd.f32 %v2153_v35, %v7693_v0  ;;  %v2696_v14 = vmul.f32 -1.442695, %v2241_v8  ;;  %v7694_v35 = vld [vmem:[#allocation105_spill] sm:$0xff] }
 0x77d   :  { %v2695_v57 = vmul.f32 -1.442695, %v2228_v28  ;;  %2865 = vpow2.f32 %v2694_v56  ;;  %v2697_v58 = vmul.f32 -1.442695, %v2242_v30 }
 0x77f   :  { %2867 = vpow2.f32 %v2695_v57 }
 0x780   :  { %2869 = vpow2.f32 %v2696_v14  ;;  %v7695_v14 = vld [vmem:[#allocation106_spill] sm:$0xff] }
 0x78a   :  { %v2866_v44 = vpop.eup %2865 }
 0x78b   :  { %v2235_v34 = vadd.f32 1.0, %v2866_v44 }
 0x78c   :  { %v2868_v21 = vpop.eup %2867 }
 0x78d   :  { %v2236_v54 = vadd.f32 1.0, %v2868_v21  ;;  %2871 = vrcp.f32 %v2235_v34  ;;  %v2870_v52 = vpop.eup %2869 }
 0x78e   :  { %2873 = vpow2.f32 %v2697_v58  ;;  %v2249_v48 = vadd.f32 1.0, %v2870_v52 }
 0x78f   :  { %2875 = vrcp.f32 %v2236_v54 }
 0x79a   :  { %v2872_v62 = vpop.eup %2871 }
 0x79b   :  { %v2874_v18 = vpop.eup %2873 }
 0x79c   :  { %v2876_v57 = vpop.eup %2875  ;;  %v2250_v8 = vadd.f32 1.0, %v2874_v18  ;;  %v2530_v18 = vld [vmem:[#allocation4 + $0x30] sm:$0xff] }
 0x7b8   :  { %v2222_v31 = vpop.f32.mrf.mxu0 }
 0x7b9   :  { %v2255_v56 = vadd.f32 %v2222_v31, %v3955_v51 }
 0x7ba   :  { %v2224_v16 = vpop.f32.mrf.mxu0 }
 0x7bb   :  { %v2257_v60 = vmul.f32 %v2872_v62, %v2255_v56  ;;  %v2256_v28 = vadd.f32 %v2224_v16, %v3966_v13 }
 0x7bd   :  { %v2259_v44 = vadd.f32 %v2257_v60, %v7694_v35  ;;  %v2258_v30 = vmul.f32 %v2876_v57, %v2256_v28  ;;  %v2545_v28 = vld [vmem:[#allocation4 + $0xa8] sm:$0xff]  ;;  %v2528_v35 = vld [vmem:[#allocation4 + $0x20] sm:$0xff] }
 0x7be   :  { %v2529_v57 = vld [vmem:[#allocation4 + $0x28] sm:$0xff] }
 0x7bf   :  { %2877 = vtanh.f32 %v2259_v44  ;;  %v2260_v58 = vadd.f32 %v2258_v30, %v7695_v14  ;;  %v2543_v44 = vld [vmem:[#allocation4 + $0x98] sm:$0xff]  ;;  %v2526_v14 = vld [vmem:[#allocation4 + $0x10] sm:$0xff] }
 0x7c0   :  { %2879 = vrcp.f32 %v2249_v48  ;;  %v2544_v48 = vld [vmem:[#allocation4 + $0xa0] sm:$0xff]  ;;  %v2527_v30 = vld [vmem:[#allocation4 + $0x18] sm:$0xff] }
 0x7c1   :  { %2881 = vtanh.f32 %v2260_v58  ;;  %v2541_v58 = vld [vmem:[#allocation4 + $0x88] sm:$0xff] }
 0x7c2   :  { %2883 = vrcp.f32 %v2250_v8  ;;  %v2542_v8 = vld [vmem:[#allocation4 + $0x90] sm:$0xff] }
 0x7cc   :  { %v2878_v54 = vpop.eup %2877 }
 0x7cd   :  { %v2880_v0 = vpop.eup %2879  ;;  %v2263_v21 = vsub.f32 %v5856_v27, %v2878_v54  ;;  %v7696_v27 = vld [vmem:[#allocation63_spill] sm:$0xff] }
 0x7ce   :  { %v2882_v34 = vpop.eup %2881 }
 0x7cf   :  { %v2264_v31 = vsub.f32 %v5858_v43, %v2882_v34  ;;  %v2265_v56 = vmul.f32 %v2880_v0, %v2263_v21  ;;  %v2884_v62 = vpop.eup %2883  ;;  %v7697_v43 = vld [vmem:[#allocation65_spill] sm:$0xff]  ;;  %v2540_v0 = vld [vmem:[#allocation4 + $0x80] sm:$0xff] }
 0x7d0   :  { %v2524_v21 = vld [vmem:[#allocation4] sm:$0xff] }
 0x7d1   :  { %v2266_v52 = vmul.f32 %v2884_v62, %v2264_v31  ;;  %v6185_v16 = vadd.f32 %v2878_v54, %v2265_v56  ;;  %v2525_v54 = vld [vmem:[#allocation4 + $0x8] sm:$0xff]  ;;  %v7715_v56 = vld [vmem:[#allocation88_spill] sm:$0xff] }
 0x7d3   :  { %v6187_v60 = vadd.f32 %v2882_v34, %v2266_v52  ;;  %v7716_v52 = vld [vmem:[#allocation90_spill] sm:$0xff] }
 0x7d5   :  { %2333 = vmatprep.mubr.f32.mxu1 %v6187_v60  ;;  %2404 = vmatprep.mubr.f32.mxu0 %v6187_v60 }
 0x7d6   :  { %2334 = vmatmul.mubr.f32.vlgmr.msra.gmra.mxu1 %v6185_v16  ;;  %2405 = vmatmul.mubr.f32.vlgmr.msra.gmra.mxu0 %v6185_v16 }
 0x7d7   :  { %2412 = vmatpush1.msra.mxu1 %v5864_v39  ;;  %2475 = vmatprep.mubr.f32.mxu1 %v6187_v60  ;;  %v7698_v39 = vld [vmem:[#allocation66_spill] sm:$0xff] }
 0x7d8   :  { %2413 = vmatprep.subr.mxu1 %v5868_v10  ;;  %v7699_v10 = vld [vmem:[#allocation68_spill] sm:$0xff] }
 0x7d9   :  { %2414 = vmatpush1.msra.mxu1 %v5872_v20  ;;  %v7700_v20 = vld [vmem:[#allocation69_spill] sm:$0xff] }
 0x7da   :  { %2415 = vmatprep.subr.mxu1 %v5876_v4  ;;  %v7701_v4 = vld [vmem:[#allocation74_spill] sm:$0xff] }
 0x7db   :  { %2416 = vmatpush1.msra.mxu1 %v5880_v12  ;;  %v7702_v12 = vld [vmem:[#allocation76_spill] sm:$0xff] }
 0x7dc   :  { %2417 = vmatprep.subr.mxu1 %v5884_v2  ;;  %v7703_v2 = vld [vmem:[#allocation108_spill] sm:$0xff] }
 0x7dd   :  { %2418 = vmatpush1.msra.mxu1 %v5888_v61  ;;  %v7704_v61 = vld [vmem:[#allocation109_spill] sm:$0xff] }
 0x7de   :  { %2419 = vmatprep.subr.mxu1 %v5892_v6  ;;  %v7705_v6 = vld [vmem:[#allocation110_spill] sm:$0xff] }
 0x7df   :  { %2420 = vmatpush1.msra.mxu1 %v5896_v37  ;;  %v7706_v37 = vld [vmem:[#allocation111_spill] sm:$0xff] }
 0x7e0   :  { %2421 = vmatprep.subr.mxu1 %v5900_v25  ;;  %v7707_v25 = vld [vmem:[#allocation112_spill] sm:$0xff] }
 0x7e1   :  { %2422 = vmatpush1.msra.mxu1 %v5904_v59  ;;  %v7708_v59 = vld [vmem:[#allocation113_spill] sm:$0xff] }
 0x7e2   :  { %2423 = vmatprep.subr.mxu1 %v5908_v19  ;;  %v7709_v19 = vld [vmem:[#allocation114_spill] sm:$0xff] }
 0x7e3   :  { %2424 = vmatpush1.msra.mxu1 %v5912_v63  ;;  %v7710_v63 = vld [vmem:[#allocation115_spill] sm:$0xff] }
 0x7e4   :  { %2425 = vmatprep.subr.mxu1 %v5916_v1  ;;  %v7711_v1 = vld [vmem:[#allocation116_spill] sm:$0xff] }
 0x7e5   :  { %2426 = vmatpush1.msra.mxu1 %v5920_v22  ;;  %v7712_v22 = vld [vmem:[#allocation20_spill] sm:$0xff] }
 0x7e6   :  { %2427 = vmatprep.subr.mxu1 %v5924_v7  ;;  %v7713_v7 = vld [vmem:[#allocation22_spill] sm:$0xff] }
 0x7e7   :  { %2428 = vmatpush1.msra.mxu1 %v5928_v49  ;;  %v7714_v49 = vld [vmem:[#allocation24_spill] sm:$0xff] }
 0x7e8   :  { %2429 = vmatprep.subr.mxu1 %v5932_v23  ;;  %v3285_v23 = vld [vmem:[#allocation2 + $0x358] sm:$0xff] }
 0x7e9   :  { %2430 = vmatpush1.msra.mxu1 %v5936_v40  ;;  %v3286_v40 = vld [vmem:[#allocation2 + $0x350] sm:$0xff] }
 0x7ea   :  { %2431 = vmatprep.subr.mxu1 %v5940_v45  ;;  %v3287_v45 = vld [vmem:[#allocation2 + $0x328] sm:$0xff] }
 0x7eb   :  { %2432 = vmatpush1.msra.mxu1 %v5944_v9  ;;  %v3288_v9 = vld [vmem:[#allocation2 + $0x320] sm:$0xff] }
 0x7ec   :  { %2433 = vmatprep.subr.mxu1 %v5948_v11  ;;  %v2555_v11 = vld [vmem:[#allocation4 + $0xf8] sm:$0xff] }
 0x7ed   :  { %2434 = vmatpush1.msra.mxu1 %v5952_v41  ;;  %v2539_v41 = vld [vmem:[#allocation4 + $0x78] sm:$0xff]  ;;  %2703 = vmatprep.subr.mxu0 %v2555_v11 }
 0x7ee   :  { %2435 = vmatprep.subr.mxu1 %v5956_v47  ;;  %2704 = vmatpush3.msra.mxu0 %v2539_v41  ;;  %v2554_v47 = vld [vmem:[#allocation4 + $0xf0] sm:$0xff] }
 0x7ef   :  { %2436 = vmatpush1.msra.mxu1 %v5960_v24  ;;  %2705 = vmatprep.subr.mxu0 %v2554_v47  ;;  %v2538_v24 = vld [vmem:[#allocation4 + $0x70] sm:$0xff] }
 0x7f0   :  { %2437 = vmatprep.subr.mxu1 %v5964_v5  ;;  %2706 = vmatpush3.msra.mxu0 %v2538_v24  ;;  %v2553_v5 = vld [vmem:[#allocation4 + $0xe8] sm:$0xff] }
 0x7f1   :  { %2438 = vmatpush1.msra.mxu1 %v5968_v32  ;;  %2707 = vmatprep.subr.mxu0 %v2553_v5  ;;  %v2537_v32 = vld [vmem:[#allocation4 + $0x68] sm:$0xff]  ;;  %v7720_v5 = vld [vmem:[#allocation92_spill] sm:$0xff] }
 0x7f2   :  { %2439 = vmatprep.subr.mxu1 %v5972_v53  ;;  %2708 = vmatpush3.msra.mxu0 %v2537_v32  ;;  %v2552_v53 = vld [vmem:[#allocation4 + $0xe0] sm:$0xff]  ;;  %v7721_v32 = vld [vmem:[#allocation10_spill] sm:$0xff] }
 0x7f3   :  { %2440 = vmatpush1.msra.mxu1 %v5976_v15  ;;  %2709 = vmatprep.subr.mxu0 %v2552_v53  ;;  %v2536_v15 = vld [vmem:[#allocation4 + $0x60] sm:$0xff]  ;;  %v499_v53 = vadd.f32 %v7721_v32, %v7720_v5 }
 0x7f4   :  { %2441 = vmatprep.subr.mxu1 %v5980_v26  ;;  %2710 = vmatpush3.msra.mxu0 %v2536_v15  ;;  %v2551_v26 = vld [vmem:[#allocation4 + $0xd8] sm:$0xff] }
 0x7f5   :  { %2442 = vmatpush1.msra.mxu1 %v5984_v17  ;;  %2711 = vmatprep.subr.mxu0 %v2551_v26  ;;  %v2535_v17 = vld [vmem:[#allocation4 + $0x58] sm:$0xff] }
 0x7f6   :  { %2443 = vmatprep.subr.mxu1 %v5988_v36  ;;  %2712 = vmatpush3.msra.mxu0 %v2535_v17  ;;  %v2550_v36 = vld [vmem:[#allocation4 + $0xd0] sm:$0xff]  ;;  %v7722_v15 = vld [vmem:[#allocation107_spill] sm:$0xff] }
 0x7f7   :  { %2444 = vmatpush2.msra.mxu1 %v5992_v55  ;;  %2713 = vmatprep.subr.mxu0 %v2550_v36  ;;  %v2534_v55 = vld [vmem:[#allocation4 + $0x50] sm:$0xff] }
 0x7f8   :  { %2445 = vmatprep.subr.mxu1 %v5996_v3  ;;  %2714 = vmatpush3.msra.mxu0 %v2534_v55  ;;  %v2549_v3 = vld [vmem:[#allocation4 + $0xc8] sm:$0xff] }
 0x7f9   :  { %2446 = vmatpush2.msra.mxu1 %v6000_v38  ;;  %v2533_v38 = vld [vmem:[#allocation4 + $0x48] sm:$0xff]  ;;  %2715 = vmatprep.subr.mxu0 %v2549_v3 }
 0x7fa   :  { %2447 = vmatprep.subr.mxu1 %v6004_v29  ;;  %v2548_v29 = vld [vmem:[#allocation4 + $0xc0] sm:$0xff]  ;;  %2716 = vmatpush3.msra.mxu0 %v2533_v38 }
 0x7fb   :  { %2448 = vmatpush2.msra.mxu1 %v6008_v33  ;;  %v2532_v33 = vld [vmem:[#allocation4 + $0x40] sm:$0xff]  ;;  %2717 = vmatprep.subr.mxu0 %v2548_v29 }
 0x7fc   :  { %2449 = vmatprep.subr.mxu1 %v6012_v42  ;;  %v2547_v42 = vld [vmem:[#allocation4 + $0xb8] sm:$0xff]  ;;  %2718 = vmatpush3.msra.mxu0 %v2532_v33 }
 0x7fd   :  { %2450 = vmatpush2.msra.mxu1 %v6016_v46  ;;  %v2531_v46 = vld [vmem:[#allocation4 + $0x38] sm:$0xff]  ;;  %2719 = vmatprep.subr.mxu0 %v2547_v42 }
 0x7fe   :  { %2451 = vmatprep.subr.mxu1 %v6020_v50  ;;  %v2546_v50 = vld [vmem:[#allocation4 + $0xb0] sm:$0xff]  ;;  %2720 = vmatpush3.msra.mxu0 %v2531_v46 }
 0x7ff   :  { %2452 = vmatpush2.msra.mxu1 %v7696_v27  ;;  %2721 = vmatprep.subr.mxu0 %v2546_v50 }
 0x800   :  { %2453 = vmatprep.subr.mxu1 %v7697_v43  ;;  %2722 = vmatpush3.msra.mxu0 %v2530_v18 }
 0x801   :  { %2454 = vmatpush2.msra.mxu1 %v7698_v39  ;;  %2723 = vmatprep.subr.mxu0 %v2545_v28 }
 0x802   :  { %2455 = vmatprep.subr.mxu1 %v7699_v10  ;;  %2724 = vmatpush3.msra.mxu0 %v2529_v57  ;;  %v2702_v57 = vld [vmem:[%s6278_s6] ss:$0 sm:$0xff] }
 0x803   :  { %2456 = vmatpush2.msra.mxu1 %v7700_v20  ;;  %2725 = vmatprep.subr.mxu0 %v2544_v48 }
 0x804   :  { %2457 = vmatprep.subr.mxu1 %v7701_v4  ;;  %2726 = vmatpush3.msra.mxu0 %v2528_v35  ;;  %v7717_v4 = vld [vmem:[#allocation70_spill] sm:$0xff] }
 0x805   :  { %2458 = vmatpush2.msra.mxu1 %v7702_v12  ;;  %2727 = vmatprep.subr.mxu0 %v2543_v44  ;;  %v7718_v12 = vld [vmem:[#allocation9_spill] sm:$0xff] }
 0x806   :  { %2459 = vmatprep.subr.mxu1 %v7703_v2  ;;  %2728 = vmatpush3.msra.mxu0 %v2527_v30  ;;  %v386_v2 = vadd.f32 %v7718_v12, %v7717_v4 }
 0x807   :  { %2460 = vmatpush2.msra.mxu1 %v7704_v61  ;;  %2729 = vmatprep.subr.mxu0 %v2542_v8  ;;  %v7719_v61 = vld [vmem:[#allocation96_spill] sm:$0xff] }
 0x808   :  { %2461 = vmatprep.subr.mxu1 %v7705_v6  ;;  %2730 = vmatpush3.msra.mxu0 %v2526_v14 }
 0x809   :  { %2462 = vmatpush2.msra.mxu1 %v7706_v37  ;;  %2731 = vmatprep.subr.mxu0 %v2541_v58 }
 0x80a   :  { %2463 = vmatprep.subr.mxu1 %v7707_v25  ;;  %2732 = vmatpush3.msra.mxu0 %v2525_v54 }
 0x80b   :  { %2464 = vmatpush2.msra.mxu1 %v7708_v59  ;;  %2733 = vmatprep.subr.mxu0 %v2540_v0 }
 0x80c   :  { %2465 = vmatprep.subr.mxu1 %v7709_v19  ;;  %2734 = vmatpush3.msra.mxu0 %v2524_v21 }
 0x80d   :  { %2466 = vmatpush2.msra.mxu1 %v7710_v63 }
 0x80e   :  { %2467 = vmatprep.subr.mxu1 %v7711_v1 }
 0x80f   :  { %2468 = vmatpush2.msra.mxu1 %v7712_v22 }
 0x810   :  { %2469 = vmatprep.subr.mxu1 %v7713_v7 }
 0x811   :  { %2470 = vmatpush2.msra.mxu1 %v7714_v49 }
 0x812   :  { %2471 = vmatprep.subr.mxu1 %v3285_v23 }
 0x813   :  { %2472 = vmatpush2.msra.mxu1 %v3286_v40 }
 0x814   :  { %2473 = vmatprep.subr.mxu1 %v3287_v45 }
 0x815   :  { %2474 = vmatpush2.msra.mxu1 %v3288_v9 }
 0x816   :  { %2476 = vmatmul.mubr.f32.vlgmr.msra.gmra.mxu1 %v6185_v16 }
 0x896   :  { %v2335_v34 = vpop.f32.mrf.mxu1  ;;  %v2406_v10 = vpop.f32.mrf.mxu0 }
 0x897   :  { %v2482_v62 = vadd.f32 %v2335_v34, %v7715_v56  ;;  %v2496_v6 = vadd.f32 %v2406_v10, %v7719_v61 }
 0x898   :  { %v2337_v31 = vpop.f32.mrf.mxu1  ;;  %v2408_v20 = vpop.f32.mrf.mxu0 }
 0x899   :  { %v2483_v27 = vadd.f32 %v2337_v31, %v7716_v52  ;;  %v2698_v43 = vmul.f32 -1.442695, %v2482_v62  ;;  %v2497_v25 = vadd.f32 %v2408_v20, %v386_v2  ;;  %v2700_v19 = vmul.f32 -1.442695, %v2496_v6 }
 0x89b   :  { %v2699_v39 = vmul.f32 -1.442695, %v2483_v27  ;;  %2885 = vpow2.f32 %v2698_v43  ;;  %v2701_v1 = vmul.f32 -1.442695, %v2497_v25 }
 0x89d   :  { %2887 = vpow2.f32 %v2699_v39 }
 0x89e   :  { %2889 = vpow2.f32 %v2700_v19 }
 0x8a8   :  { %v2886_v37 = vpop.eup %2885 }
 0x8a9   :  { %v2490_v63 = vadd.f32 1.0, %v2886_v37 }
 0x8aa   :  { %v2888_v59 = vpop.eup %2887 }
 0x8ab   :  { %v2491_v22 = vadd.f32 1.0, %v2888_v59  ;;  %2891 = vrcp.f32 %v2490_v63  ;;  %v2890_v49 = vpop.eup %2889 }
 0x8ac   :  { %2893 = vpow2.f32 %v2701_v1  ;;  %v2504_v24 = vadd.f32 1.0, %v2890_v49 }
 0x8ad   :  { %2895 = vrcp.f32 %v2491_v22 }
 0x8b8   :  { %v2892_v40 = vpop.eup %2891 }
 0x8b9   :  { %v2894_v9 = vpop.eup %2893 }
 0x8ba   :  { %v2896_v47 = vpop.eup %2895  ;;  %v2505_v36 = vadd.f32 1.0, %v2894_v9 }
 0x8d6   :  { %v2477_v7 = vpop.f32.mrf.mxu1 }
 0x8d7   :  { %v2510_v23 = vadd.f32 %v2477_v7, %v3955_v51 }
 0x8d8   :  { %v2479_v45 = vpop.f32.mrf.mxu1 }
 0x8d9   :  { %v2512_v11 = vmul.f32 %v2892_v40, %v2510_v23  ;;  %v2511_v41 = vadd.f32 %v2479_v45, %v3966_v13 }
 0x8db   :  { %v2514_v26 = vadd.f32 %v2512_v11, %v7722_v15  ;;  %v2513_v17 = vmul.f32 %v2896_v47, %v2511_v41 }
 0x8dd   :  { %2897 = vtanh.f32 %v2514_v26  ;;  %v2515_v55 = vadd.f32 %v2513_v17, %v499_v53 }
 0x8de   :  { %2899 = vrcp.f32 %v2504_v24 }
 0x8df   :  { %2901 = vtanh.f32 %v2515_v55 }
 0x8e0   :  { %2903 = vrcp.f32 %v2505_v36 }
 0x8ea   :  { %v2898_v51 = vpop.eup %2897 }
 0x8eb   :  { %v2900_v3 = vpop.eup %2899  ;;  %v2518_v38 = vsub.f32 %v6185_v16, %v2898_v51 }
 0x8ec   :  { %v2902_v29 = vpop.eup %2901 }
 0x8ed   :  { %v2519_v13 = vsub.f32 %v6187_v60, %v2902_v29  ;;  %v2520_v33 = vmul.f32 %v2900_v3, %v2518_v38  ;;  %v2904_v42 = vpop.eup %2903 }
 0x8ef   :  { %v2521_v46 = vmul.f32 %v2904_v42, %v2519_v13  ;;  %v2522_v50 = vadd.f32 %v2898_v51, %v2520_v33 }
 0x8f1   :  { %v2523_v18 = vadd.f32 %v2902_v29, %v2521_v46 }
 0x8f3   :  { %2627 = vmatprep.mubr.f32.mxu0 %v2523_v18 }
 0x8f4   :  { %2628 = vmatmul.mubr.f32.vlgmr.msra.gmra.mxu0 %v2522_v50 }
 0x9b4   :  { %v2735_v28 = vpop.f32.mrf.mxu0 }
 0x9b6   :  { %v2736_v48 = vpop.f32.mrf.mxu0 }
 0x9b7   :  { %v2737_v35 = vadd.f32 %v2736_v48, %v2735_v28 }
 0x9b9   :  { %v2630_v44 = vadd.f32 %v2737_v35, %v2702_v57 }
 0x9bb   :  { %2633 = vst [vmem:[%s6279_s7] sm:$0xff] %v2630_v44 }
 0x9bc   :  { %2638 = vsyncpa [#allocation3], 1 }
 0x9bd   :  { %2639 = vsyncpa [#allocation5], 1 }

</bundles_post_ra>
